<compile_context>
chip_gen: v6e
topology: v6e:2x2x1
jax: 0.10.0
libtpu: 0.0.40
codegen_flags: <defaults>
</compile_context>

<pallas_src>
import functools

import jax
import jax.numpy as jnp
from jax.experimental import pallas as pl
from jax.experimental.pallas import tpu as pltpu


def _preconv_kernel(x_ref, w_ref, scale_ref, shift_ref, alpha_ref, *refs,
                    pad, dilation, kh_kw, h_out, w_out, with_preact):
    """One image per grid step: fused BN affine + PReLU + per-tap conv dots.

    x_ref:    (1, H, W, Cin)        bf16 input tile (NHWC)
    w_ref:    (KH*KW, Cin, Cout_p)  bf16 tap-indexed conv weight (Cout padded
                                    to a multiple of 128, padding columns zero)
    scale/shift/alpha: (1, Cin) f32 per-channel BN scale/shift, PReLU alpha
    outputs:  o_ref (1, h_out*w_out, Cout_p) [+ pre_ref (1, H, W, Cin)]
    scratch:  pad_scratch (H+2p, W+2p, Cin) bf16 zero-padded activations
              acc_ref     (h_out*w_out, Cout_p) f32 conv accumulator
    """
    if with_preact:
        o_ref, pre_ref, pad_scratch, acc_ref = refs
    else:
        o_ref, pad_scratch, acc_ref = refs
        pre_ref = None

    KH, KW = kh_kw
    _, H, W, Cin = x_ref.shape
    Hp, Wp, _ = pad_scratch.shape
    cdtype = pad_scratch.dtype

    # ---- fused BatchNorm (inference affine) + PReLU (f32 VPU math) ---------
    x = x_ref[0].astype(jnp.float32)                 # (H, W, Cin)
    y = x * scale_ref[0] + shift_ref[0]
    y = jnp.where(y >= 0, y, alpha_ref[0] * y)
    if with_preact:
        pre_ref[0] = y.astype(pre_ref.dtype)

    # ---- write activated interior (bf16); re-zero only the halo border -----
    # (interior is fully overwritten each step -> megacore-safe persistence)
    pad_scratch[pad:pad + H, pad:pad + W, :] = y.astype(cdtype)
    if pad > 0:
        zrow = jnp.zeros((pad, Wp, Cin), cdtype)
        pad_scratch[0:pad, :, :] = zrow                      # top strip
        pad_scratch[pad + H:Hp, :, :] = zrow                 # bottom strip
        zcol = jnp.zeros((H, pad, Cin), cdtype)
        pad_scratch[pad:pad + H, 0:pad, :] = zcol            # left strip
        pad_scratch[pad:pad + H, pad + W:Wp, :] = zcol       # right strip

    # ---- conv: KH*KW accumulated MXU dots into a persistent f32 accumulator
    # (no im2col materialization; each tap reads a shifted window in place).
    M2 = h_out * w_out
    for kh in range(KH):
        for kw in range(KW):
            oh = kh * dilation
            ow = kw * dilation
            win = pad_scratch[oh:oh + h_out, ow:ow + w_out, :]
            # layout-preserving when w_out is a multiple of the sublane pack
            win2d = win.reshape(M2, Cin)
            partial = jnp.dot(win2d, w_ref[kh * KW + kw],
                              preferred_element_type=jnp.float32)
            if kh == 0 and kw == 0:
                acc_ref[...] = partial
            else:
                acc_ref[...] += partial

    # lane-dense full-width store (Cout_p is a multiple of 128)
    o_ref[0] = acc_ref[...].astype(o_ref.dtype)


def preconv_block(x_nchw, params, *, stride=1, padding=1, dilation=1,
                  eps=1e-5, use_bn=True, activate=True, return_preact=False,
                  conv_dtype=jnp.bfloat16, out_dtype=None, preact_dtype=None):
    """PreConvBlock forward (eval mode). Input/weights in PyTorch NCHW/OIHW."""
    assert stride == 1, "TODO(synk): stride > 1 not implemented in this kernel"
    N, Cin, H, W = x_nchw.shape
    w_oihw = params["conv_w"]                        # (Cout, Cin, KH, KW)
    Cout, Cin_w, KH, KW = w_oihw.shape
    assert Cin_w == Cin

    # Lane-dense output channel count (padded weight columns are zero).
    Cout_p = pl.cdiv(Cout, 128) * 128

    # OIHW -> (KH*KW, Cin, Cout_p) tap-indexed im2col weight, bf16 at the MXU.
    w_taps = jnp.transpose(w_oihw, (2, 3, 1, 0)).reshape(KH * KW, Cin, Cout)
    w_taps = jnp.pad(w_taps, ((0, 0), (0, 0), (0, Cout_p - Cout)))
    w_taps = w_taps.astype(conv_dtype)

    if use_bn:
        scale = (params["gamma"] /
                 jnp.sqrt(params["running_var"] + eps)).astype(jnp.float32)
        shift = (params["beta"] -
                 params["running_mean"] * scale).astype(jnp.float32)
    else:
        scale = jnp.ones((Cin,), jnp.float32)
        shift = jnp.zeros((Cin,), jnp.float32)
    if activate:
        alpha = params["prelu_alpha"].astype(jnp.float32)
    else:
        alpha = jnp.ones((Cin,), jnp.float32)        # where(y>=0, y, 1*y) == y

    out_dtype = x_nchw.dtype if out_dtype is None else out_dtype
    preact_dtype = x_nchw.dtype if preact_dtype is None else preact_dtype

    # NCHW -> NHWC fused with the cast to bf16 (halves input HBM/DMA bytes).
    x_nhwc = jnp.transpose(x_nchw, (0, 2, 3, 1)).astype(conv_dtype)

    h_out = (H + 2 * padding - dilation * (KH - 1) - 1) // stride + 1
    w_out = (W + 2 * padding - dilation * (KW - 1) - 1) // stride + 1
    M2 = h_out * w_out
    Hp, Wp = H + 2 * padding, W + 2 * padding

    kernel = functools.partial(
        _preconv_kernel, pad=padding, dilation=dilation, kh_kw=(KH, KW),
        h_out=h_out, w_out=w_out, with_preact=return_preact)

    conv_struct = jax.ShapeDtypeStruct((N, M2, Cout_p), out_dtype)
    conv_spec = pl.BlockSpec((1, M2, Cout_p), lambda n: (n, 0, 0))
    if return_preact:
        out_shape = (conv_struct,
                     jax.ShapeDtypeStruct((N, H, W, Cin), preact_dtype))
        out_specs = (conv_spec,
                     pl.BlockSpec((1, H, W, Cin), lambda n: (n, 0, 0, 0)))
    else:
        out_shape = conv_struct
        out_specs = conv_spec

    # Scoped-VMEM budget from the actual blocks (double-buffered) + scratch.
    cbytes = jnp.dtype(conv_dtype).itemsize
    obytes = jnp.dtype(out_dtype).itemsize
    pbytes = jnp.dtype(preact_dtype).itemsize
    vmem_bytes = (
        2 * H * W * Cin * cbytes                      # x block
        + 2 * KH * KW * Cin * Cout_p * cbytes         # weight block
        + 2 * M2 * Cout_p * obytes                    # conv output block
        + (2 * H * W * Cin * pbytes if return_preact else 0)
        + Hp * Wp * Cin * cbytes                      # pad scratch
        + M2 * Cout_p * 4                             # f32 accumulator
        + 6 * 8 * 128 * 4                             # scale/shift/alpha blocks
    )
    vmem_limit = int(min(max(int(vmem_bytes * 1.5) + (2 << 20), 16 << 20),
                         64 << 20))

    results = pl.pallas_call(
        kernel,
        out_shape=out_shape,
        grid_spec=pltpu.PrefetchScalarGridSpec(
            num_scalar_prefetch=0,
            grid=(N,),
            in_specs=[
                pl.BlockSpec((1, H, W, Cin), lambda n: (n, 0, 0, 0)),
                pl.BlockSpec((KH * KW, Cin, Cout_p), lambda n: (0, 0, 0)),
                pl.BlockSpec((1, Cin), lambda n: (0, 0)),
                pl.BlockSpec((1, Cin), lambda n: (0, 0)),
                pl.BlockSpec((1, Cin), lambda n: (0, 0)),
            ],
            out_specs=out_specs,
            scratch_shapes=[
                pltpu.VMEM((Hp, Wp, Cin), conv_dtype),
                pltpu.VMEM((M2, Cout_p), jnp.float32),
            ],
        ),
        compiler_params=pltpu.CompilerParams(
            dimension_semantics=("parallel",),
            vmem_limit_bytes=vmem_limit),
    )(x_nhwc, w_taps,
      scale.reshape(1, Cin), shift.reshape(1, Cin), alpha.reshape(1, Cin))

    def _finish_conv(conv_flat):
        conv = conv_flat[:, :, :Cout].reshape(N, h_out, w_out, Cout)
        return jnp.transpose(conv, (0, 3, 1, 2))     # NHWC -> NCHW

    if return_preact:
        conv_flat, pre_nhwc = results
        return _finish_conv(conv_flat), jnp.transpose(pre_nhwc, (0, 3, 1, 2))
    return _finish_conv(results)


# ----------------------------- references -----------------------------------
def _bn_prelu_reference(x_nchw, params, *, eps=1e-5):
    scale = params["gamma"] / jnp.sqrt(params["running_var"] + eps)
    shift = params["beta"] - params["running_mean"] * scale
    y = x_nchw * scale[None, :, None, None] + shift[None, :, None, None]
    a = params["prelu_alpha"][None, :, None, None]
    return jnp.where(y >= 0, y, a * y)


def _reference(x_nchw, params, *, padding=1, dilation=1, eps=1e-5):
    """Pure-JAX reference matching PyTorch eval-mode forward with the kernel's
    bf16 roundings (input and conv operands rounded to bf16, f32 accumulation)."""
    x_bf = x_nchw.astype(jnp.bfloat16).astype(jnp.float32)
    y = _bn_prelu_reference(x_bf, params, eps=eps)
    y_bf = y.astype(jnp.bfloat16).astype(jnp.float32)
    w_bf = params["conv_w"].astype(jnp.bfloat16).astype(jnp.float32)
    return jax.lax.conv_general_dilated(
        y_bf, w_bf,
        window_strides=(1, 1),
        padding=((padding, padding), (padding, padding)),
        rhs_dilation=(dilation, dilation),
        dimension_numbers=("NCHW", "OIHW", "NCHW"),
    )


if __name__ == "__main__":
    key = jax.random.PRNGKey(0)
    k_x, k_w, k_g, k_b, k_m, k_v = jax.random.split(key, 6)

    N, Cin, H, W = 2, 4, 16, 16
    Cout, KH, KW = 8, 3, 3

    x = jax.random.normal(k_x, (N, Cin, H, W), jnp.float32)
    params = {
        "conv_w": jax.random.normal(k_w, (Cout, Cin, KH, KW), jnp.float32) * 0.1,
        "gamma": jax.random.normal(k_g, (Cin,), jnp.float32) * 0.1 + 1.0,
        "beta": jax.random.normal(k_b, (Cin,), jnp.float32) * 0.1,
        "running_mean": jax.random.normal(k_m, (Cin,), jnp.float32) * 0.1,
        "running_var": jax.random.uniform(k_v, (Cin,), jnp.float32, 0.5, 1.5),
        "prelu_alpha": jnp.full((Cin,), 0.25, jnp.float32),  # PyTorch default
    }

    ref = _reference(x, params, padding=1, dilation=1)

    # Common path: no pre-activation output (nothing extra written to HBM).
    out = preconv_block(x, params, stride=1, padding=1, dilation=1)
    out = jax.block_until_ready(out)
    assert out.shape == (N, Cout, H, W), out.shape
    assert jnp.allclose(out, ref, atol=5e-3, rtol=5e-3), \
        float(jnp.max(jnp.abs(out - ref)))

    # return_preact path (second output only materialized here).
    out2, pre = preconv_block(x, params, stride=1, padding=1, dilation=1,
                              return_preact=True)
    jax.block_until_ready((out2, pre))
    pre_ref = _bn_prelu_reference(
        x.astype(jnp.bfloat16).astype(jnp.float32), params)
    assert pre.shape == (N, Cin, H, W), pre.shape
    assert jnp.allclose(pre, pre_ref, atol=1e-4, rtol=1e-4), \
        float(jnp.max(jnp.abs(pre - pre_ref)))
    assert jnp.allclose(out2, ref, atol=5e-3, rtol=5e-3), \
        float(jnp.max(jnp.abs(out2 - ref)))

    print("KERNEL_OK")
</pallas_src>

<mosaic_0001>
module attributes {stable_mosaic.version = 11 : i64} {
  func.func @_preconv_kernel(%arg0: i32, %arg1: memref<1x16x16x4xbf16, #tpu.memory_space<vmem>>, %arg2: memref<9x4x128xbf16, #tpu.memory_space<vmem>>, %arg3: memref<1x4xf32, #tpu.memory_space<vmem>>, %arg4: memref<1x4xf32, #tpu.memory_space<vmem>>, %arg5: memref<1x4xf32, #tpu.memory_space<vmem>>, %arg6: memref<1x256x128xf32, #tpu.memory_space<vmem>>, %arg7: memref<18x18x4xbf16, #tpu.memory_space<vmem>>, %arg8: memref<256x128xf32, #tpu.memory_space<vmem>>) attributes {dimension_semantics = [#tpu.dimension_semantics<parallel>], iteration_bounds = array<i64: 2>, scalar_prefetch = 0 : i64, scratch_operands = 2 : i64, tpu.core_type = #tpu.core_type<tc>, window_params = [{transform_indices = @transform_0, window_bounds = array<i64: 1, 16, 16, 4>}, {pipeline_mode = #tpu.pipeline_mode<synchronous>, transform_indices = @transform_1, window_bounds = array<i64: 9, 4, 128>}, {pipeline_mode = #tpu.pipeline_mode<synchronous>, transform_indices = @transform_2, window_bounds = array<i64: 1, 4>}, {pipeline_mode = #tpu.pipeline_mode<synchronous>, transform_indices = @transform_3, window_bounds = array<i64: 1, 4>}, {pipeline_mode = #tpu.pipeline_mode<synchronous>, transform_indices = @transform_4, window_bounds = array<i64: 1, 4>}, {transform_indices = @transform_5, window_bounds = array<i64: 1, 256, 128>}]} {
    %c0 = arith.constant 0 : index
    %c0_0 = arith.constant 0 : index
    %c0_1 = arith.constant 0 : index
    %c0_2 = arith.constant 0 : index
    %0 = vector.load %arg1[%c0, %c0_0, %c0_1, %c0_2] : memref<1x16x16x4xbf16, #tpu.memory_space<vmem>>, vector<1x16x16x4xbf16>
    %1 = vector.shape_cast %0 : vector<1x16x16x4xbf16> to vector<16x16x4xbf16>
    %2 = arith.extf %1 : vector<16x16x4xbf16> to vector<16x16x4xf32>
    %c0_3 = arith.constant 0 : index
    %c0_4 = arith.constant 0 : index
    %3 = vector.load %arg3[%c0_3, %c0_4] : memref<1x4xf32, #tpu.memory_space<vmem>>, vector<1x4xf32>
    %4 = vector.shape_cast %3 : vector<1x4xf32> to vector<4xf32>
    %5 = vector.shape_cast %4 : vector<4xf32> to vector<1x1x4xf32>
    %6 = vector.broadcast %5 : vector<1x1x4xf32> to vector<16x16x4xf32>
    %7 = arith.mulf %2, %6 : vector<16x16x4xf32>
    %c0_5 = arith.constant 0 : index
    %c0_6 = arith.constant 0 : index
    %8 = vector.load %arg4[%c0_5, %c0_6] : memref<1x4xf32, #tpu.memory_space<vmem>>, vector<1x4xf32>
    %9 = vector.shape_cast %8 : vector<1x4xf32> to vector<4xf32>
    %10 = vector.shape_cast %9 : vector<4xf32> to vector<1x1x4xf32>
    %11 = vector.broadcast %10 : vector<1x1x4xf32> to vector<16x16x4xf32>
    %12 = arith.addf %7, %11 : vector<16x16x4xf32>
    %cst = arith.constant 0.000000e+00 : f32
    %13 = vector.broadcast %cst : f32 to vector<16x16x4xf32>
    %14 = arith.cmpf oge, %12, %13 : vector<16x16x4xf32>
    %c0_7 = arith.constant 0 : index
    %c0_8 = arith.constant 0 : index
    %15 = vector.load %arg5[%c0_7, %c0_8] : memref<1x4xf32, #tpu.memory_space<vmem>>, vector<1x4xf32>
    %16 = vector.shape_cast %15 : vector<1x4xf32> to vector<4xf32>
    %17 = vector.shape_cast %16 : vector<4xf32> to vector<1x1x4xf32>
    %18 = vector.broadcast %17 : vector<1x1x4xf32> to vector<16x16x4xf32>
    %19 = arith.mulf %18, %12 : vector<16x16x4xf32>
    %20 = arith.select %14, %12, %19 : vector<16x16x4xi1>, vector<16x16x4xf32>
    %21 = arith.truncf %20 : vector<16x16x4xf32> to vector<16x16x4xbf16>
    %c1 = arith.constant 1 : index
    %c1_9 = arith.constant 1 : index
    %c0_10 = arith.constant 0 : index
    %22 = vector.load %arg7[%c1, %c1_9, %c0_10] : memref<18x18x4xbf16, #tpu.memory_space<vmem>>, vector<16x16x4xbf16>
    tpu.vector_store %arg7[%c1, %c1_9, %c0_10], %21 {strides = array<i32>} : memref<18x18x4xbf16, #tpu.memory_space<vmem>>, vector<16x16x4xbf16>,
    %cst_11 = arith.constant 0.000000e+00 : bf16
    %23 = vector.broadcast %cst_11 : bf16 to vector<1x18x4xbf16>
    %c0_12 = arith.constant 0 : index
    %c0_13 = arith.constant 0 : index
    %c0_14 = arith.constant 0 : index
    %24 = vector.load %arg7[%c0_12, %c0_13, %c0_14] : memref<18x18x4xbf16, #tpu.memory_space<vmem>>, vector<1x18x4xbf16>
    tpu.vector_store %arg7[%c0_12, %c0_13, %c0_14], %23 {strides = array<i32>} : memref<18x18x4xbf16, #tpu.memory_space<vmem>>, vector<1x18x4xbf16>,
    %c17 = arith.constant 17 : index
    %c0_15 = arith.constant 0 : index
    %c0_16 = arith.constant 0 : index
    %25 = vector.load %arg7[%c17, %c0_15, %c0_16] : memref<18x18x4xbf16, #tpu.memory_space<vmem>>, vector<1x18x4xbf16>
    tpu.vector_store %arg7[%c17, %c0_15, %c0_16], %23 {strides = array<i32>} : memref<18x18x4xbf16, #tpu.memory_space<vmem>>, vector<1x18x4xbf16>,
    %cst_17 = arith.constant 0.000000e+00 : bf16
    %26 = vector.broadcast %cst_17 : bf16 to vector<16x1x4xbf16>
    %c1_18 = arith.constant 1 : index
    %c0_19 = arith.constant 0 : index
    %c0_20 = arith.constant 0 : index
    %27 = vector.load %arg7[%c1_18, %c0_19, %c0_20] : memref<18x18x4xbf16, #tpu.memory_space<vmem>>, vector<16x1x4xbf16>
    tpu.vector_store %arg7[%c1_18, %c0_19, %c0_20], %26 {strides = array<i32>} : memref<18x18x4xbf16, #tpu.memory_space<vmem>>, vector<16x1x4xbf16>,
    %c1_21 = arith.constant 1 : index
    %c17_22 = arith.constant 17 : index
    %c0_23 = arith.constant 0 : index
    %28 = vector.load %arg7[%c1_21, %c17_22, %c0_23] : memref<18x18x4xbf16, #tpu.memory_space<vmem>>, vector<16x1x4xbf16>
    tpu.vector_store %arg7[%c1_21, %c17_22, %c0_23], %26 {strides = array<i32>} : memref<18x18x4xbf16, #tpu.memory_space<vmem>>, vector<16x1x4xbf16>,
    %c0_24 = arith.constant 0 : index
    %c0_25 = arith.constant 0 : index
    %c0_26 = arith.constant 0 : index
    %29 = vector.load %arg7[%c0_24, %c0_25, %c0_26] : memref<18x18x4xbf16, #tpu.memory_space<vmem>>, vector<16x16x4xbf16>
    %30 = vector.shape_cast %29 : vector<16x16x4xbf16> to vector<256x4xbf16>
    %c0_27 = arith.constant 0 : index
    %c0_28 = arith.constant 0 : index
    %c0_29 = arith.constant 0 : index
    %31 = vector.load %arg2[%c0_27, %c0_28, %c0_29] : memref<9x4x128xbf16, #tpu.memory_space<vmem>>, vector<1x4x128xbf16>
    %32 = vector.shape_cast %31 : vector<1x4x128xbf16> to vector<4x128xbf16>
    %cst_30 = arith.constant dense<0.000000e+00> : vector<256x128xf32>
    %33 = tpu.matmul %30, %32, %cst_30 {dimension_numbers = #tpu.dot_dimension_numbers<[1], [0], [0], [1], [0, 0, 1, 1], [], []>} : vector<256x4xbf16>, vector<4x128xbf16>, vector<256x128xf32> -> vector<256x128xf32>
    %c0_31 = arith.constant 0 : index
    %c0_32 = arith.constant 0 : index
    %34 = vector.load %arg8[%c0_31, %c0_32] : memref<256x128xf32, #tpu.memory_space<vmem>>, vector<256x128xf32>
    tpu.vector_store %arg8[%c0_31, %c0_32], %33 {strides = array<i32>} : memref<256x128xf32, #tpu.memory_space<vmem>>, vector<256x128xf32>,
    %c0_33 = arith.constant 0 : index
    %c1_34 = arith.constant 1 : index
    %c0_35 = arith.constant 0 : index
    %35 = vector.load %arg7[%c0_33, %c1_34, %c0_35] : memref<18x18x4xbf16, #tpu.memory_space<vmem>>, vector<16x16x4xbf16>
    %36 = vector.shape_cast %35 : vector<16x16x4xbf16> to vector<256x4xbf16>
    %c1_36 = arith.constant 1 : index
    %c0_37 = arith.constant 0 : index
    %c0_38 = arith.constant 0 : index
    %37 = vector.load %arg2[%c1_36, %c0_37, %c0_38] : memref<9x4x128xbf16, #tpu.memory_space<vmem>>, vector<1x4x128xbf16>
    %38 = vector.shape_cast %37 : vector<1x4x128xbf16> to vector<4x128xbf16>
    %cst_39 = arith.constant dense<0.000000e+00> : vector<256x128xf32>
    %39 = tpu.matmul %36, %38, %cst_39 {dimension_numbers = #tpu.dot_dimension_numbers<[1], [0], [0], [1], [0, 0, 1, 1], [], []>} : vector<256x4xbf16>, vector<4x128xbf16>, vector<256x128xf32> -> vector<256x128xf32>
    %c0_40 = arith.constant 0 : index
    %c0_41 = arith.constant 0 : index
    %40 = vector.load %arg8[%c0_40, %c0_41] : memref<256x128xf32, #tpu.memory_space<vmem>>, vector<256x128xf32>
    %41 = arith.addf %40, %39 : vector<256x128xf32>
    %c0_42 = arith.constant 0 : index
    %c0_43 = arith.constant 0 : index
    %42 = vector.load %arg8[%c0_42, %c0_43] : memref<256x128xf32, #tpu.memory_space<vmem>>, vector<256x128xf32>
    tpu.vector_store %arg8[%c0_42, %c0_43], %41 {strides = array<i32>} : memref<256x128xf32, #tpu.memory_space<vmem>>, vector<256x128xf32>,
    %c0_44 = arith.constant 0 : index
    %c2 = arith.constant 2 : index
    %c0_45 = arith.constant 0 : index
    %43 = vector.load %arg7[%c0_44, %c2, %c0_45] : memref<18x18x4xbf16, #tpu.memory_space<vmem>>, vector<16x16x4xbf16>
    %44 = vector.shape_cast %43 : vector<16x16x4xbf16> to vector<256x4xbf16>
    %c2_46 = arith.constant 2 : index
    %c0_47 = arith.constant 0 : index
    %c0_48 = arith.constant 0 : index
    %45 = vector.load %arg2[%c2_46, %c0_47, %c0_48] : memref<9x4x128xbf16, #tpu.memory_space<vmem>>, vector<1x4x128xbf16>
    %46 = vector.shape_cast %45 : vector<1x4x128xbf16> to vector<4x128xbf16>
    %cst_49 = arith.constant dense<0.000000e+00> : vector<256x128xf32>
    %47 = tpu.matmul %44, %46, %cst_49 {dimension_numbers = #tpu.dot_dimension_numbers<[1], [0], [0], [1], [0, 0, 1, 1], [], []>} : vector<256x4xbf16>, vector<4x128xbf16>, vector<256x128xf32> -> vector<256x128xf32>
    %c0_50 = arith.constant 0 : index
    %c0_51 = arith.constant 0 : index
    %48 = vector.load %arg8[%c0_50, %c0_51] : memref<256x128xf32, #tpu.memory_space<vmem>>, vector<256x128xf32>
    %49 = arith.addf %48, %47 : vector<256x128xf32>
    %c0_52 = arith.constant 0 : index
    %c0_53 = arith.constant 0 : index
    %50 = vector.load %arg8[%c0_52, %c0_53] : memref<256x128xf32, #tpu.memory_space<vmem>>, vector<256x128xf32>
    tpu.vector_store %arg8[%c0_52, %c0_53], %49 {strides = array<i32>} : memref<256x128xf32, #tpu.memory_space<vmem>>, vector<256x128xf32>,
    %c1_54 = arith.constant 1 : index
    %c0_55 = arith.constant 0 : index
    %c0_56 = arith.constant 0 : index
    %51 = vector.load %arg7[%c1_54, %c0_55, %c0_56] : memref<18x18x4xbf16, #tpu.memory_space<vmem>>, vector<16x16x4xbf16>
    %52 = vector.shape_cast %51 : vector<16x16x4xbf16> to vector<256x4xbf16>
    %c3 = arith.constant 3 : index
    %c0_57 = arith.constant 0 : index
    %c0_58 = arith.constant 0 : index
    %53 = vector.load %arg2[%c3, %c0_57, %c0_58] : memref<9x4x128xbf16, #tpu.memory_space<vmem>>, vector<1x4x128xbf16>
    %54 = vector.shape_cast %53 : vector<1x4x128xbf16> to vector<4x128xbf16>
    %cst_59 = arith.constant dense<0.000000e+00> : vector<256x128xf32>
    %55 = tpu.matmul %52, %54, %cst_59 {dimension_numbers = #tpu.dot_dimension_numbers<[1], [0], [0], [1], [0, 0, 1, 1], [], []>} : vector<256x4xbf16>, vector<4x128xbf16>, vector<256x128xf32> -> vector<256x128xf32>
    %c0_60 = arith.constant 0 : index
    %c0_61 = arith.constant 0 : index
    %56 = vector.load %arg8[%c0_60, %c0_61] : memref<256x128xf32, #tpu.memory_space<vmem>>, vector<256x128xf32>
    %57 = arith.addf %56, %55 : vector<256x128xf32>
    %c0_62 = arith.constant 0 : index
    %c0_63 = arith.constant 0 : index
    %58 = vector.load %arg8[%c0_62, %c0_63] : memref<256x128xf32, #tpu.memory_space<vmem>>, vector<256x128xf32>
    tpu.vector_store %arg8[%c0_62, %c0_63], %57 {strides = array<i32>} : memref<256x128xf32, #tpu.memory_space<vmem>>, vector<256x128xf32>,
    %c1_64 = arith.constant 1 : index
    %c1_65 = arith.constant 1 : index
    %c0_66 = arith.constant 0 : index
    %59 = vector.load %arg7[%c1_64, %c1_65, %c0_66] : memref<18x18x4xbf16, #tpu.memory_space<vmem>>, vector<16x16x4xbf16>
    %60 = vector.shape_cast %59 : vector<16x16x4xbf16> to vector<256x4xbf16>
    %c4 = arith.constant 4 : index
    %c0_67 = arith.constant 0 : index
    %c0_68 = arith.constant 0 : index
    %61 = vector.load %arg2[%c4, %c0_67, %c0_68] : memref<9x4x128xbf16, #tpu.memory_space<vmem>>, vector<1x4x128xbf16>
    %62 = vector.shape_cast %61 : vector<1x4x128xbf16> to vector<4x128xbf16>
    %cst_69 = arith.constant dense<0.000000e+00> : vector<256x128xf32>
    %63 = tpu.matmul %60, %62, %cst_69 {dimension_numbers = #tpu.dot_dimension_numbers<[1], [0], [0], [1], [0, 0, 1, 1], [], []>} : vector<256x4xbf16>, vector<4x128xbf16>, vector<256x128xf32> -> vector<256x128xf32>
    %c0_70 = arith.constant 0 : index
    %c0_71 = arith.constant 0 : index
    %64 = vector.load %arg8[%c0_70, %c0_71] : memref<256x128xf32, #tpu.memory_space<vmem>>, vector<256x128xf32>
    %65 = arith.addf %64, %63 : vector<256x128xf32>
    %c0_72 = arith.constant 0 : index
    %c0_73 = arith.constant 0 : index
    %66 = vector.load %arg8[%c0_72, %c0_73] : memref<256x128xf32, #tpu.memory_space<vmem>>, vector<256x128xf32>
    tpu.vector_store %arg8[%c0_72, %c0_73], %65 {strides = array<i32>} : memref<256x128xf32, #tpu.memory_space<vmem>>, vector<256x128xf32>,
    %c1_74 = arith.constant 1 : index
    %c2_75 = arith.constant 2 : index
    %c0_76 = arith.constant 0 : index
    %67 = vector.load %arg7[%c1_74, %c2_75, %c0_76] : memref<18x18x4xbf16, #tpu.memory_space<vmem>>, vector<16x16x4xbf16>
    %68 = vector.shape_cast %67 : vector<16x16x4xbf16> to vector<256x4xbf16>
    %c5 = arith.constant 5 : index
    %c0_77 = arith.constant 0 : index
    %c0_78 = arith.constant 0 : index
    %69 = vector.load %arg2[%c5, %c0_77, %c0_78] : memref<9x4x128xbf16, #tpu.memory_space<vmem>>, vector<1x4x128xbf16>
    %70 = vector.shape_cast %69 : vector<1x4x128xbf16> to vector<4x128xbf16>
    %cst_79 = arith.constant dense<0.000000e+00> : vector<256x128xf32>
    %71 = tpu.matmul %68, %70, %cst_79 {dimension_numbers = #tpu.dot_dimension_numbers<[1], [0], [0], [1], [0, 0, 1, 1], [], []>} : vector<256x4xbf16>, vector<4x128xbf16>, vector<256x128xf32> -> vector<256x128xf32>
    %c0_80 = arith.constant 0 : index
    %c0_81 = arith.constant 0 : index
    %72 = vector.load %arg8[%c0_80, %c0_81] : memref<256x128xf32, #tpu.memory_space<vmem>>, vector<256x128xf32>
    %73 = arith.addf %72, %71 : vector<256x128xf32>
    %c0_82 = arith.constant 0 : index
    %c0_83 = arith.constant 0 : index
    %74 = vector.load %arg8[%c0_82, %c0_83] : memref<256x128xf32, #tpu.memory_space<vmem>>, vector<256x128xf32>
    tpu.vector_store %arg8[%c0_82, %c0_83], %73 {strides = array<i32>} : memref<256x128xf32, #tpu.memory_space<vmem>>, vector<256x128xf32>,
    %c2_84 = arith.constant 2 : index
    %c0_85 = arith.constant 0 : index
    %c0_86 = arith.constant 0 : index
    %75 = vector.load %arg7[%c2_84, %c0_85, %c0_86] : memref<18x18x4xbf16, #tpu.memory_space<vmem>>, vector<16x16x4xbf16>
    %76 = vector.shape_cast %75 : vector<16x16x4xbf16> to vector<256x4xbf16>
    %c6 = arith.constant 6 : index
    %c0_87 = arith.constant 0 : index
    %c0_88 = arith.constant 0 : index
    %77 = vector.load %arg2[%c6, %c0_87, %c0_88] : memref<9x4x128xbf16, #tpu.memory_space<vmem>>, vector<1x4x128xbf16>
    %78 = vector.shape_cast %77 : vector<1x4x128xbf16> to vector<4x128xbf16>
    %cst_89 = arith.constant dense<0.000000e+00> : vector<256x128xf32>
    %79 = tpu.matmul %76, %78, %cst_89 {dimension_numbers = #tpu.dot_dimension_numbers<[1], [0], [0], [1], [0, 0, 1, 1], [], []>} : vector<256x4xbf16>, vector<4x128xbf16>, vector<256x128xf32> -> vector<256x128xf32>
    %c0_90 = arith.constant 0 : index
    %c0_91 = arith.constant 0 : index
    %80 = vector.load %arg8[%c0_90, %c0_91] : memref<256x128xf32, #tpu.memory_space<vmem>>, vector<256x128xf32>
    %81 = arith.addf %80, %79 : vector<256x128xf32>
    %c0_92 = arith.constant 0 : index
    %c0_93 = arith.constant 0 : index
    %82 = vector.load %arg8[%c0_92, %c0_93] : memref<256x128xf32, #tpu.memory_space<vmem>>, vector<256x128xf32>
    tpu.vector_store %arg8[%c0_92, %c0_93], %81 {strides = array<i32>} : memref<256x128xf32, #tpu.memory_space<vmem>>, vector<256x128xf32>,
    %c2_94 = arith.constant 2 : index
    %c1_95 = arith.constant 1 : index
    %c0_96 = arith.constant 0 : index
    %83 = vector.load %arg7[%c2_94, %c1_95, %c0_96] : memref<18x18x4xbf16, #tpu.memory_space<vmem>>, vector<16x16x4xbf16>
    %84 = vector.shape_cast %83 : vector<16x16x4xbf16> to vector<256x4xbf16>
    %c7 = arith.constant 7 : index
    %c0_97 = arith.constant 0 : index
    %c0_98 = arith.constant 0 : index
    %85 = vector.load %arg2[%c7, %c0_97, %c0_98] : memref<9x4x128xbf16, #tpu.memory_space<vmem>>, vector<1x4x128xbf16>
    %86 = vector.shape_cast %85 : vector<1x4x128xbf16> to vector<4x128xbf16>
    %cst_99 = arith.constant dense<0.000000e+00> : vector<256x128xf32>
    %87 = tpu.matmul %84, %86, %cst_99 {dimension_numbers = #tpu.dot_dimension_numbers<[1], [0], [0], [1], [0, 0, 1, 1], [], []>} : vector<256x4xbf16>, vector<4x128xbf16>, vector<256x128xf32> -> vector<256x128xf32>
    %c0_100 = arith.constant 0 : index
    %c0_101 = arith.constant 0 : index
    %88 = vector.load %arg8[%c0_100, %c0_101] : memref<256x128xf32, #tpu.memory_space<vmem>>, vector<256x128xf32>
    %89 = arith.addf %88, %87 : vector<256x128xf32>
    %c0_102 = arith.constant 0 : index
    %c0_103 = arith.constant 0 : index
    %90 = vector.load %arg8[%c0_102, %c0_103] : memref<256x128xf32, #tpu.memory_space<vmem>>, vector<256x128xf32>
    tpu.vector_store %arg8[%c0_102, %c0_103], %89 {strides = array<i32>} : memref<256x128xf32, #tpu.memory_space<vmem>>, vector<256x128xf32>,
    %c2_104 = arith.constant 2 : index
    %c2_105 = arith.constant 2 : index
    %c0_106 = arith.constant 0 : index
    %91 = vector.load %arg7[%c2_104, %c2_105, %c0_106] : memref<18x18x4xbf16, #tpu.memory_space<vmem>>, vector<16x16x4xbf16>
    %92 = vector.shape_cast %91 : vector<16x16x4xbf16> to vector<256x4xbf16>
    %c8 = arith.constant 8 : index
    %c0_107 = arith.constant 0 : index
    %c0_108 = arith.constant 0 : index
    %93 = vector.load %arg2[%c8, %c0_107, %c0_108] : memref<9x4x128xbf16, #tpu.memory_space<vmem>>, vector<1x4x128xbf16>
    %94 = vector.shape_cast %93 : vector<1x4x128xbf16> to vector<4x128xbf16>
    %cst_109 = arith.constant dense<0.000000e+00> : vector<256x128xf32>
    %95 = tpu.matmul %92, %94, %cst_109 {dimension_numbers = #tpu.dot_dimension_numbers<[1], [0], [0], [1], [0, 0, 1, 1], [], []>} : vector<256x4xbf16>, vector<4x128xbf16>, vector<256x128xf32> -> vector<256x128xf32>
    %c0_110 = arith.constant 0 : index
    %c0_111 = arith.constant 0 : index
    %96 = vector.load %arg8[%c0_110, %c0_111] : memref<256x128xf32, #tpu.memory_space<vmem>>, vector<256x128xf32>
    %97 = arith.addf %96, %95 : vector<256x128xf32>
    %c0_112 = arith.constant 0 : index
    %c0_113 = arith.constant 0 : index
    %98 = vector.load %arg8[%c0_112, %c0_113] : memref<256x128xf32, #tpu.memory_space<vmem>>, vector<256x128xf32>
    tpu.vector_store %arg8[%c0_112, %c0_113], %97 {strides = array<i32>} : memref<256x128xf32, #tpu.memory_space<vmem>>, vector<256x128xf32>,
    %c0_114 = arith.constant 0 : index
    %c0_115 = arith.constant 0 : index
    %99 = vector.load %arg8[%c0_114, %c0_115] : memref<256x128xf32, #tpu.memory_space<vmem>>, vector<256x128xf32>
    %c0_116 = arith.constant 0 : index
    %c0_117 = arith.constant 0 : index
    %c0_118 = arith.constant 0 : index
    %100 = vector.load %arg6[%c0_116, %c0_117, %c0_118] : memref<1x256x128xf32, #tpu.memory_space<vmem>>, vector<1x256x128xf32>
    %101 = vector.shape_cast %100 : vector<1x256x128xf32> to vector<256x128xf32>
    %102 = vector.shape_cast %99 : vector<256x128xf32> to vector<1x256x128xf32>
    tpu.vector_store %arg6[%c0_116, %c0_117, %c0_118], %102 {strides = array<i32>} : memref<1x256x128xf32, #tpu.memory_space<vmem>>, vector<1x256x128xf32>,
    return
  }
  func.func @transform_0(%arg0: i32) -> (i32, i32, i32, i32) {
    %c0_i32 = arith.constant 0 : i32
    %c0_i32_0 = arith.constant 0 : i32
    %c0_i32_1 = arith.constant 0 : i32
    %c0_i32_2 = arith.constant 0 : i32
    return %arg0, %c0_i32, %c0_i32_0, %c0_i32_1 : i32, i32, i32, i32
  }
  func.func @transform_1(%arg0: i32) -> (i32, i32, i32) {
    %c0_i32 = arith.constant 0 : i32
    %c0_i32_0 = arith.constant 0 : i32
    %c0_i32_1 = arith.constant 0 : i32
    %c0_i32_2 = arith.constant 0 : i32
    return %c0_i32, %c0_i32_0, %c0_i32_1 : i32, i32, i32
  }
  func.func @transform_2(%arg0: i32) -> (i32, i32) {
    %c0_i32 = arith.constant 0 : i32
    %c0_i32_0 = arith.constant 0 : i32
    %c0_i32_1 = arith.constant 0 : i32
    return %c0_i32, %c0_i32_0 : i32, i32
  }
  func.func @transform_3(%arg0: i32) -> (i32, i32) {
    %c0_i32 = arith.constant 0 : i32
    %c0_i32_0 = arith.constant 0 : i32
    %c0_i32_1 = arith.constant 0 : i32
    return %c0_i32, %c0_i32_0 : i32, i32
  }
  func.func @transform_4(%arg0: i32) -> (i32, i32) {
    %c0_i32 = arith.constant 0 : i32
    %c0_i32_0 = arith.constant 0 : i32
    %c0_i32_1 = arith.constant 0 : i32
    return %c0_i32, %c0_i32_0 : i32, i32
  }
  func.func @transform_5(%arg0: i32) -> (i32, i32, i32) {
    %c0_i32 = arith.constant 0 : i32
    %c0_i32_0 = arith.constant 0 : i32
    %c0_i32_1 = arith.constant 0 : i32
    return %arg0, %c0_i32, %c0_i32_0 : i32, i32, i32
  }
}

</mosaic_0001>

<bundles_post_ra>
// kernel: tpu_custom_call.1
= control target key start
LH: loop header
LB: loop body
LE: loop exit
PB: predicated region body
PF: predicated region fallthrough
CT: control target
= control target key end

     0   :  { %10 = vsyncpa [#allocation5], 0  ;;  %s10107_s0 = inlined_call_operand.vmem [shape: bf16[2,16,16,4], index: 0, kind: input, shape index: {}]   ;;  %s10108_s1 = inlined_call_operand.vmem [shape: bf16[9,4,128], index: 1, kind: input, shape index: {}]   ;;  %s10109_s2 = inlined_call_operand.vmem [shape: f32[1,4], index: 2, kind: input, shape index: {}]   ;;  %s10110_s3 = inlined_call_operand.vmem [shape: f32[1,4], index: 3, kind: input, shape index: {}]   ;;  %s10111_s4 = inlined_call_operand.vmem [shape: f32[1,4], index: 4, kind: input, shape index: {}]   ;;  %s10112_s5 = inlined_call_operand.hbm [shape: f32[2,256,128], index: 5, kind: output, shape index: {}]  }
   0x1   :  { %12 = vsyncpa [#allocation5 + $0x1], 0  ;;  %s7698_s18 = smov 0   ;;  %s7700_s19 = smov 0  }
   0x2   :  { %s7702_s20 = smov 0   ;;  %s7704_s21 = smov 0  }
   0x3 LB: > { %s7719_s22 = sadd.s32 4294967295, %s7662_s21   ;;  %s6530_s23 = sadd.s32 4294967294, %s7662_s21   ;;  %s7662_s21 = sphi %s7704_s21, %s10394_s21   ;;  %s7658_s20 = sphi %s7702_s20, %s10393_s20   ;;  %s7654_s19 = sphi %s7700_s19, %s10392_s19   ;;  %s7650_s18 = sphi %s7698_s18, %s10391_s18  }
   0x4   : > { %s7723_s24 = sadd.s32 1, %s7662_s21   ;;  %s135_s25 = sadd.s32 1, %s7658_s20 }
   0x5   : > { %s132_s26 = ssub.s32 %s7662_s21, %s7723_s24  ;;  %p145_p0 = scmp.ne.s32.totalorder %s7658_s20, %s7654_s19 }
   0x6   : > { %p133_p1 = scmp.eq.s32.totalorder %s132_s26, 0  ;;  %p146_p2 = scmp.eq.s32.totalorder %s7719_s22, 1 }
   0x7   : > { %p151_p3 = scmp.ne.s32.totalorder %s7654_s19, %s7650_s18  ;;  %p152_p4 = scmp.eq.s32.totalorder %s6530_s23, 1 }
   0x8   : > { %s7734_s27 = scalar_select %p133_p1, %s7658_s20, %s135_s25  }
   0x9   : > { %p7736_p5 = por %p146_p2, %p145_p0  ;;  %p7740_p6 = por %p152_p4, %p151_p3 }
   0xa   : > { %p6533_p7 = scmp.ge.s32.totalorder %s7662_s21, 1  ;;  %p190_p8 = scmp.lt.s32.totalorder %s7662_s21, 3 }
   0xc   : > { %p191_p9 = pnand %p6533_p7, %p190_p8 }
   0xe   : > { %194 = sbr.rel (%p191_p9) target bundleno = 687 (0x2af), region = 40 }
  0x13   : > { %v1144_v0 = vld [vmem:[%s10108_s1] sm:$0x3]  ;;  %vm1274_vm0 = vcmask 1041408   ;;  %vm889_vm1 = vcmask 27648   ;;  %v7664_v2 = vmov 0   ;;  %p218_p10 = scmp.lt.s32.totalorder %s7719_s22, 1 }
  0x14   : > { %7495 = vmatprep.subr.msk.bf16.mxu0 %vm1274_vm0, %v1144_v0  ;;  %7496 = vmatprep.subr.msk.bf16.mxu1 %vm1274_vm0, %v1144_v0  ;;  %v1276_v1 = vsel %vm1274_vm0, %v1144_v0, 0  ;;  %1007 = vst.msk [vmem:[#allocation2] sm:$0xf] %vm889_vm1, %v7664_v2  ;;  %1008 = vst.msk [vmem:[#allocation2 + $0x4] sm:$0xf] %vm889_vm1, %v7664_v2  ;;  %vm897_vm2 = vcmask 24576  }
  0x15   : > { %1012 = vst.msk [vmem:[#allocation2 + $0xcc] sm:$0xf] %vm889_vm1, %v7664_v2  ;;  %1013 = vst.msk [vmem:[#allocation2 + $0xd0] sm:$0xf] %vm889_vm1, %v7664_v2  ;;  %7188 = vmatpush3.bf16.msra.mxu0 %v1276_v1  ;;  %7494 = vmatpush3.bf16.msra.mxu1 %v1276_v1  ;;  %s219_s7 = scalar_select %p218_p10, %s7719_s22, 1  ;;  %vm1225_vm5 = vcmask 31744  }
  0x16   : > { %1010 = vst.msk [vmem:[#allocation2 + $0x8] sm:$0x1] %vm897_vm2, %v7664_v2  ;;  %1014 = vst.msk [vmem:[#allocation2 + $0xd4] sm:$0x1] %vm897_vm2, %v7664_v2  ;;  %vm890_vm3 = vsmask.f32 7938 }
  0x17   : > { %s6921_s8 = sshll.u32 %s219_s7, 7  ;;  %v6604_v3 = vld [vmem:[%s10108_s1 + $0x2] sm:$0x3]  ;;  %v7771_v4 = vld [vmem:[%s10109_s2] ss:$0 sm:$0xff]  ;;  %vm7775_vm4 = vmand %vm897_vm2, %vm890_vm3  ;;  %s215_s17 = sand.u32 1, %s7654_s19  }
  0x18   : > { %s7766_s13 = scalar_lea.vmem %s10107_s0, %s6921_s8  ;;  %7497 = vmatprep.subr.msk.bf16.mxu1 %vm1274_vm0, %v6604_v3  ;;  %v6653_v6 = vld [vmem:[%s10108_s1 + $0x4] sm:$0x3]  ;;  %v7790_v15 = vld [vmem:[%s10110_s3] ss:$0 sm:$0xff]  ;;  %v7793_v18 = vsel %vm1274_vm0, %v6604_v3, 0  ;;  %vm7839_vm15 = vmand %vm889_vm1, %vm890_vm3  ;;  %s6534_s23 = sshll.u32 %s215_s17, 8 }
  0x19   : > { %v6956_v7 = vld [vmem:[%s7766_s13] sm:$0xff]   ;;  %v7025_v8 = vld [vmem:[%s7766_s13 + $0x38] sm:$0xff]   ;;  %7498 = vmatprep.subr.msk.bf16.mxu0 %vm1274_vm0, %v6653_v6  ;;  %v7796_v19 = vsel %vm1274_vm0, %v6653_v6, 0  ;;  %v7019_v20 = vld [vmem:[%s7766_s13 + $0x8] sm:$0xff]   ;;  %vm565_vm6 = vsmask.f32 256 }
  0x1a   : > { %v7026_v9 = vld [vmem:[%s7766_s13 + $0x40] sm:$0xff]   ;;  %v6957_v11 = vunpack.c.l.bf16 %v6956_v7  ;;  %v6958_v12 = vunpack.c.h.bf16 %v6956_v7  ;;  %v6985_v13 = vunpack.c.l.bf16 %v7025_v8  ;;  %v6986_v14 = vunpack.c.h.bf16 %v7025_v8  ;;  %v892_v2 = vld [vmem:[#allocation2 + $0xc] sm:$0xf]  ;;  %v899_v3 = vld [vmem:[#allocation2 + $0x14] sm:$0x1]  ;;  %s9944_s25 = scalar_lea.vmem [#allocation4], %s6534_s23 }
  0x1b   : > { %v7547_v10 = vld [vmem:[#allocation2] sm:$0xff]   ;;  %v6989_v16 = vunpack.c.l.bf16 %v7026_v9  ;;  %v6990_v17 = vunpack.c.h.bf16 %v7026_v9  ;;  %vm566_vm7 = vsmask.f32 4368  ;;  %v6961_v28 = vunpack.c.l.bf16 %v7019_v20  ;;  %vm7845_vm3 = vmand %vm897_vm2, %vm565_vm6  ;;  %s6954_s26 = sshll.u32 %s7719_s22, 12  ;;  %s10067_s22 = scalar_lea.sflag [#allocation5], %s215_s17 }
  0x1c   : > { %7189 = vmatprep.mubr.msk.bf16.mxu0 %vm1225_vm5, %v7547_v10  ;;  %v295_v21 = vmul.f32 %v6957_v11, %v7771_v4  ;;  %v296_v22 = vmul.f32 %v6958_v12, %v7771_v4  ;;  %v309_v23 = vmul.f32 %v6985_v13, %v7771_v4  ;;  %v310_v24 = vmul.f32 %v6986_v14, %v7771_v4  ;;  %v7807_v25 = vld [vmem:[%s10111_s4] ss:$0 sm:$0xff]  ;;  %vm7831_vm14 = vmor %vm565_vm6, %vm566_vm7  ;;  %s10059_s7 = scalar_lea.hbm %s10112_s5, %s6954_s26  ;;  %s7665_s9 = smov [#allocation4]  }
  0x1d   : > { %v311_v26 = vmul.f32 %v6989_v16, %v7771_v4  ;;  %v312_v27 = vmul.f32 %v6990_v17, %v7771_v4  ;;  %v6962_v29 = vunpack.c.h.bf16 %v7019_v20  ;;  %v7818_v36 = vmul.f32 %v6961_v28, %v7771_v4  ;;  %v944_v14 = vld [vmem:[#allocation2 + $0x60] sm:$0xf]  ;;  %v948_v16 = vld [vmem:[#allocation2 + $0x68] sm:$0x1]  ;;  %s7606_s10 = sshll.u32 %s7665_s9, 4  ;;  %s7607_s10 = int_to_ptr.vmem [resolvable:$false] %s7606_s10 }
  0x1e   : > { %v334_v30 = vadd.f32 %v7790_v15, %v295_v21  ;;  %v335_v31 = vadd.f32 %v7790_v15, %v296_v22  ;;  %v348_v32 = vadd.f32 %v7790_v15, %v309_v23  ;;  %v349_v33 = vadd.f32 %v7790_v15, %v310_v24  ;;  %v7020_v24 = vld [vmem:[%s7766_s13 + $0x10] sm:$0xff]   ;;  %s7608_s11 = scalar_lea.vmem %s7607_s10, 8192 }
  0x1f   : > { %v350_v34 = vadd.f32 %v7790_v15, %v311_v26  ;;  %v351_v35 = vadd.f32 %v7790_v15, %v312_v27  ;;  %v7821_v37 = vmul.f32 %v6962_v29, %v7771_v4 }
  0x20   : > { %vm366_vm8 = vcmp.ge.f32.partialorder %v334_v30, 0.0  ;;  %vm367_vm9 = vcmp.ge.f32.partialorder %v335_v31, 0.0  ;;  %v405_v38 = vmul.f32 %v7807_v25, %v334_v30  ;;  %v406_v39 = vmul.f32 %v7807_v25, %v335_v31 }
  0x21   : > { %vm380_vm10 = vcmp.ge.f32.partialorder %v348_v32, 0.0  ;;  %vm381_vm11 = vcmp.ge.f32.partialorder %v349_v33, 0.0  ;;  %v419_v40 = vmul.f32 %v7807_v25, %v348_v32  ;;  %v420_v41 = vmul.f32 %v7807_v25, %v349_v33 }
  0x22   : > { %v437_v42 = vsel %vm366_vm8, %v334_v30, %v405_v38  ;;  %v438_v43 = vsel %vm367_vm9, %v335_v31, %v406_v39  ;;  %vm382_vm12 = vcmp.ge.f32.partialorder %v350_v34, 0.0  ;;  %vm383_vm13 = vcmp.ge.f32.partialorder %v351_v35, 0.0  ;;  %v7857_v30 = vld [vmem:[%s7766_s13 + $0x48] sm:$0xff]  }
  0x23   : > { %v6922_v44 = vpack.c.bf16 %v437_v42, %v437_v42  ;;  %v6923_v45 = vpack.c.bf16 %v438_v43, %v438_v43  ;;  %v451_v46 = vsel %vm380_vm10, %v348_v32, %v419_v40  ;;  %v452_v47 = vsel %vm381_vm11, %v349_v33, %v420_v41  ;;  %v951_v41 = vld [vmem:[#allocation2 + $0x6c] sm:$0xf] }
  0x24   : > { %v6936_v48 = vpack.c.bf16 %v451_v46, %v451_v46  ;;  %v6937_v49 = vpack.c.bf16 %v452_v47, %v452_v47  ;;  %v421_v50 = vmul.f32 %v7807_v25, %v350_v34  ;;  %v422_v51 = vmul.f32 %v7807_v25, %v351_v35 }
  0x25   : > { %v569_v52 = vshrl.u32 %v6922_v44, 16  ;;  %v572_v53 = vshll.u32 %v6922_v44, 16  ;;  %v577_v54 = vshrl.u32 %v6923_v45, 16  ;;  %v580_v55 = vshll.u32 %v6923_v45, 16 }
  0x26   : > { %v688_v56 = vshrl.u32 %v6936_v48, 16  ;;  %v691_v57 = vshll.u32 %v6936_v48, 16  ;;  %v696_v58 = vshrl.u32 %v6937_v49, 16  ;;  %v699_v59 = vshll.u32 %v6937_v49, 16 }
  0x27   : > { %v571_v61 = vrot.slane %v569_v52, 7  ;;  %v579_v62 = vrot.slane %v577_v54, 7  ;;  %v453_v63 = vsel %vm382_vm12, %v350_v34, %v421_v50  ;;  %v454_v0 = vsel %vm383_vm13, %v351_v35, %v422_v51 }
  0x28   : > { %v690_v6 = vrot.slane %v688_v56, 7  ;;  %v698_v7 = vrot.slane %v696_v58, 7  ;;  %v6938_v8 = vpack.c.bf16 %v453_v63, %v453_v63  ;;  %v6939_v9 = vpack.c.bf16 %v454_v0, %v454_v0 }
  0x29   : > { %v574_v10 = vor.u32 %v572_v53, %v571_v61  ;;  %v575_v11 = vrot.slane %v571_v61, 4  ;;  %v582_v12 = vor.u32 %v580_v55, %v579_v62  ;;  %v584_v13 = vrot.slane %v579_v62, 4 }
  0x2a   : > { %v693_v20 = vor.u32 %v691_v57, %v690_v6  ;;  %v694_v21 = vrot.slane %v690_v6, 4  ;;  %v701_v22 = vor.u32 %v699_v59, %v698_v7  ;;  %v703_v23 = vrot.slane %v698_v7, 4 }
  0x2b   : > { %v583_v26 = vsel %vm7831_vm14, %v575_v11, %v582_v12  ;;  %v893_v27 = vsel %vm7839_vm15, %v574_v10, %v892_v2  ;;  %v900_v28 = vsel %vm7845_vm3, %v584_v13, %v899_v3  ;;  %v705_v29 = vshrl.u32 %v6938_v8, 16  ;;  %v7028_v11 = vld [vmem:[%s7766_s13 + $0x50] sm:$0xff]  }
  0x2c   : > { %894 = vst [vmem:[#allocation2 + $0xc] sm:$0xf] %v893_v27  ;;  %896 = vst.msk [vmem:[#allocation2 + $0x10] sm:$0xf] %vm889_vm1, %v583_v26  ;;  %v702_v31 = vsel %vm7831_vm14, %v694_v21, %v701_v22  ;;  %v945_v32 = vsel %vm7839_vm15, %v693_v20, %v944_v14  ;;  %v949_v33 = vsel %vm7845_vm3, %v703_v23, %v948_v16  ;;  %v708_v34 = vshll.u32 %v6938_v8, 16 }
  0x2d   : > { %901 = vst [vmem:[#allocation2 + $0x14] sm:$0x1] %v900_v28  ;;  %946 = vst [vmem:[#allocation2 + $0x60] sm:$0xf] %v945_v32  ;;  %v707_v35 = vrot.slane %v705_v29, 7  ;;  %v713_v38 = vshrl.u32 %v6939_v9, 16  ;;  %v336_v40 = vadd.f32 %v7790_v15, %v7818_v36  ;;  %v337_v42 = vadd.f32 %v7790_v15, %v7821_v37 }
  0x2e   : > { %947 = vst.msk [vmem:[#allocation2 + $0x64] sm:$0xf] %vm889_vm1, %v702_v31  ;;  %950 = vst [vmem:[#allocation2 + $0x68] sm:$0x1] %v949_v33  ;;  %v716_v39 = vshll.u32 %v6939_v9, 16  ;;  %v6965_v43 = vunpack.c.l.bf16 %v7020_v24  ;;  %v6966_v44 = vunpack.c.h.bf16 %v7020_v24  ;;  %v6993_v45 = vunpack.c.l.bf16 %v7857_v30 }
  0x2f   : > { %v710_v46 = vor.u32 %v708_v34, %v707_v35  ;;  %v711_v47 = vrot.slane %v707_v35, 4  ;;  %v7872_v48 = vrot.slane %v713_v38, 7  ;;  %vm368_vm2 = vcmp.ge.f32.partialorder %v336_v40, 0.0  ;;  %v902_v23 = vld [vmem:[#allocation2 + $0x18] sm:$0xf] }
  0x30   : > { %vm369_vm6 = vcmp.ge.f32.partialorder %v337_v42, 0.0  ;;  %v407_v49 = vmul.f32 %v7807_v25, %v336_v40  ;;  %v408_v50 = vmul.f32 %v7807_v25, %v337_v42  ;;  %v299_v36 = vmul.f32 %v6965_v43, %v7771_v4 }
  0x31   : > { %v718_v51 = vor.u32 %v716_v39, %v7872_v48  ;;  %v720_v37 = vrot.slane %v7872_v48, 4  ;;  %v952_v52 = vsel %vm7839_vm15, %v710_v46, %v951_v41  ;;  %v300_v53 = vmul.f32 %v6966_v44, %v7771_v4  ;;  %v7910_v44 = vld [vmem:[%s7766_s13 + $0x18] sm:$0xff]  }
  0x32   : > { %953 = vst [vmem:[#allocation2 + $0x6c] sm:$0xf] %v952_v52  ;;  %v439_v54 = vsel %vm368_vm2, %v336_v40, %v407_v49  ;;  %v440_v55 = vsel %vm369_vm6, %v337_v42, %v408_v50  ;;  %v338_v56 = vadd.f32 %v7790_v15, %v299_v36  ;;  %v6994_v57 = vunpack.c.h.bf16 %v7857_v30  ;;  %v909_v42 = vld [vmem:[#allocation2 + $0x24] sm:$0xf] }
  0x33   : > { %v1015_v58 = vld [vmem:[#allocation2 + $0xc] sm:$0x1]  ;;  %v719_v59 = vsel %vm7831_vm14, %v711_v47, %v718_v51  ;;  %v6924_v61 = vpack.c.bf16 %v439_v54, %v439_v54  ;;  %v6925_v62 = vpack.c.bf16 %v440_v55, %v440_v55  ;;  %v339_v63 = vadd.f32 %v7790_v15, %v300_v53  ;;  %v7920_v54 = vld [vmem:[%s10108_s1 + $0x8] sm:$0x3] }
  0x34   : > { %v1016_v0 = vsel %vm7845_vm3, 0, %v1015_v58  ;;  %v1036_v2 = vld [vmem:[#allocation2 + $0x60] sm:$0x1]  ;;  %954 = vst.msk [vmem:[#allocation2 + $0x70] sm:$0xf] %vm889_vm1, %v719_v59  ;;  %vm370_vm7 = vcmp.ge.f32.partialorder %v338_v56, 0.0  ;;  %v409_v3 = vmul.f32 %v7807_v25, %v338_v56  ;;  %v313_v6 = vmul.f32 %v6993_v45, %v7771_v4 }
  0x35   : > { %1017 = vst [vmem:[#allocation2 + $0xc] sm:$0x1] %v1016_v0  ;;  %v1037_v7 = vsel %vm7845_vm3, 0, %v1036_v2  ;;  %v586_v8 = vshrl.u32 %v6924_v61, 16  ;;  %v589_v9 = vshll.u32 %v6924_v61, 16  ;;  %v594_v10 = vshrl.u32 %v6925_v62, 16 }
  0x36   : > { %1038 = vst [vmem:[#allocation2 + $0x60] sm:$0x1] %v1037_v7  ;;  %v597_v12 = vshll.u32 %v6925_v62, 16  ;;  %vm371_vm8 = vcmp.ge.f32.partialorder %v339_v63, 0.0  ;;  %v410_v13 = vmul.f32 %v7807_v25, %v339_v63  ;;  %v441_v14 = vsel %vm370_vm7, %v338_v56, %v409_v3 }
  0x37   : > { %v588_v16 = vrot.slane %v586_v8, 7  ;;  %v7896_v20 = vrot.slane %v594_v10, 7  ;;  %v6926_v21 = vpack.c.bf16 %v441_v14, %v441_v14  ;;  %v314_v22 = vmul.f32 %v6994_v57, %v7771_v4 }
  0x38   : > { %v442_v24 = vsel %vm371_vm8, %v339_v63, %v410_v13  ;;  %v352_v26 = vadd.f32 %v7790_v15, %v313_v6  ;;  %v6997_v27 = vunpack.c.l.bf16 %v7028_v11  ;;  %v6998_v28 = vunpack.c.h.bf16 %v7028_v11 }
  0x39   : > { %v1039_v29 = vld [vmem:[#allocation2 + $0x6c] sm:$0x1]  ;;  %v591_v30 = vor.u32 %v589_v9, %v588_v16  ;;  %v592_v31 = vrot.slane %v588_v16, 4  ;;  %v599_v32 = vor.u32 %v597_v12, %v7896_v20  ;;  %v601_v33 = vrot.slane %v7896_v20, 4  ;;  %v7940_v9 = vld [vmem:[%s10108_s1 + $0x6] sm:$0x3] }
  0x3a   : > { %v1040_v34 = vsel %vm7845_vm3, 0, %v1039_v29  ;;  %v6927_v35 = vpack.c.bf16 %v442_v24, %v442_v24  ;;  %v603_v38 = vshrl.u32 %v6926_v21, 16  ;;  %v606_v39 = vshll.u32 %v6926_v21, 16 }
  0x3b   : > { %1041 = vst [vmem:[#allocation2 + $0x6c] sm:$0x1] %v1040_v34  ;;  %v600_v40 = vsel %vm7831_vm14, %v592_v31, %v599_v32  ;;  %v903_v41 = vsel %vm7839_vm15, %v591_v30, %v902_v23  ;;  %v353_v43 = vadd.f32 %v7790_v15, %v314_v22  ;;  %vm384_vm9 = vcmp.ge.f32.partialorder %v352_v26, 0.0 }
  0x3c   : > { %v7548_v45 = vld [vmem:[#allocation2 + $0xc] sm:$0xff]   ;;  %904 = vst [vmem:[#allocation2 + $0x18] sm:$0xf] %v903_v41  ;;  %905 = vst.msk [vmem:[#allocation2 + $0x1c] sm:$0xf] %vm889_vm1, %v600_v40  ;;  %v605_v46 = vrot.slane %v603_v38, 7  ;;  %v423_v50 = vmul.f32 %v7807_v25, %v352_v26  ;;  %v315_v52 = vmul.f32 %v6997_v27, %v7771_v4  ;;  %v316_v53 = vmul.f32 %v6998_v28, %v7771_v4 }
  0x3d   : > { %v611_v47 = vshrl.u32 %v6927_v35, 16  ;;  %v614_v49 = vshll.u32 %v6927_v35, 16  ;;  %v7549_v36 = vld [vmem:[#allocation2 + $0x60] sm:$0xff]   ;;  %vm385_vm10 = vcmp.ge.f32.partialorder %v353_v43, 0.0  ;;  %v424_v51 = vmul.f32 %v7807_v25, %v353_v43  ;;  %7190 = vmatmul.mubr.msk.bf16.vlgmr.msra.gmra.mxu0 %vm1225_vm5, %v7548_v45  ;;  %v958_v27 = vld [vmem:[#allocation2 + $0x78] sm:$0xf] }
  0x3e   : > { %v608_v55 = vor.u32 %v606_v39, %v605_v46  ;;  %v609_v56 = vrot.slane %v605_v46, 4  ;;  %v455_v58 = vsel %vm384_vm9, %v352_v26, %v423_v50  ;;  %7205 = vmatprep.mubr.msk.bf16.mxu1 %vm1225_vm5, %v7549_v36  ;;  %7256 = vmatpush3.bf16.msra.mxu0 %v7796_v19  ;;  %v354_v62 = vadd.f32 %v7790_v15, %v315_v52  ;;  %v7022_v41 = vld [vmem:[%s7766_s13 + $0x20] sm:$0xff]  }
  0x3f   : > { %v7923_v57 = vrot.slane %v611_v47, 7  ;;  %v456_v59 = vsel %vm385_vm10, %v353_v43, %v424_v51  ;;  %v6940_v61 = vpack.c.bf16 %v455_v58, %v455_v58  ;;  %v6969_v63 = vunpack.c.l.bf16 %v7910_v44  ;;  %7500 = vmatprep.subr.msk.bf16.mxu0 %vm1274_vm0, %v7920_v54 }
  0x40   : > { %v910_v3 = vsel %vm7839_vm15, %v608_v55, %v909_v42  ;;  %v6941_v6 = vpack.c.bf16 %v456_v59, %v456_v59  ;;  %v355_v8 = vadd.f32 %v7790_v15, %v316_v53  ;;  %vm386_vm11 = vcmp.ge.f32.partialorder %v354_v62, 0.0  ;;  %v965_v55 = vld [vmem:[#allocation2 + $0x84] sm:$0xf] }
  0x41   : > { %v616_v0 = vor.u32 %v614_v49, %v7923_v57  ;;  %v618_v2 = vrot.slane %v7923_v57, 4  ;;  %911 = vst [vmem:[#allocation2 + $0x24] sm:$0xf] %v910_v3  ;;  %v722_v7 = vshrl.u32 %v6940_v61, 16  ;;  %v725_v19 = vshll.u32 %v6940_v61, 16 }
  0x42   : > { %v7550_v10 = vld [vmem:[#allocation2 + $0x6c] sm:$0xff]   ;;  %v730_v12 = vshrl.u32 %v6941_v6, 16  ;;  %v733_v13 = vshll.u32 %v6941_v6, 16  ;;  %v425_v14 = vmul.f32 %v7807_v25, %v354_v62  ;;  %vm387_vm12 = vcmp.ge.f32.partialorder %v355_v8, 0.0 }
  0x43   : > { %v617_v11 = vsel %vm7831_vm14, %v609_v56, %v616_v0  ;;  %v1018_v16 = vld [vmem:[#allocation2 + $0x18] sm:$0x1]  ;;  %v724_v21 = vrot.slane %v722_v7, 7  ;;  %v426_v22 = vmul.f32 %v7807_v25, %v355_v8  ;;  %v6970_v23 = vunpack.c.h.bf16 %v7910_v44  ;;  %7206 = vmatmul.mubr.msk.bf16.vlgmr.msra.gmra.mxu1 %vm1225_vm5, %v7550_v10 }
  0x44   : > { %912 = vst.msk [vmem:[#allocation2 + $0x28] sm:$0xf] %vm889_vm1, %v617_v11  ;;  %v1019_v24 = vsel %vm7845_vm3, 0, %v1018_v16  ;;  %v7951_v26 = vrot.slane %v730_v12, 7  ;;  %v457_v28 = vsel %vm386_vm11, %v354_v62, %v425_v14  ;;  %v301_v29 = vmul.f32 %v6969_v63, %v7771_v4  ;;  %7222 = vmatpush3.bf16.msra.mxu1 %v7793_v18  ;;  %v7029_v0 = vld [vmem:[%s7766_s13 + $0x58] sm:$0xff]  }
  0x45   : > { %1020 = vst [vmem:[#allocation2 + $0x18] sm:$0x1] %v1019_v24  ;;  %v727_v30 = vor.u32 %v725_v19, %v724_v21  ;;  %v728_v31 = vrot.slane %v724_v21, 4  ;;  %v458_v32 = vsel %vm387_vm12, %v355_v8, %v426_v22  ;;  %v6942_v34 = vpack.c.bf16 %v457_v28, %v457_v28  ;;  %7499 = vmatprep.subr.msk.bf16.mxu1 %vm1274_vm0, %v7940_v9 }
  0x46   : > { %v735_v35 = vor.u32 %v733_v13, %v7951_v26  ;;  %v737_v38 = vrot.slane %v7951_v26, 4  ;;  %v6943_v39 = vpack.c.bf16 %v458_v32, %v458_v32  ;;  %v302_v40 = vmul.f32 %v6970_v23, %v7771_v4  ;;  %v916_v32 = vld [vmem:[#allocation2 + $0x30] sm:$0xf] }
  0x47   : > { %v959_v42 = vsel %vm7839_vm15, %v727_v30, %v958_v27  ;;  %v739_v18 = vshrl.u32 %v6942_v34, 16  ;;  %v742_v43 = vshll.u32 %v6942_v34, 16  ;;  %v340_v44 = vadd.f32 %v7790_v15, %v301_v29 }
  0x48   : > { %v1021_v45 = vld [vmem:[#allocation2 + $0x24] sm:$0x1]  ;;  %v736_v46 = vsel %vm7831_vm14, %v728_v31, %v735_v35  ;;  %960 = vst [vmem:[#allocation2 + $0x78] sm:$0xf] %v959_v42  ;;  %v747_v47 = vshrl.u32 %v6943_v39, 16  ;;  %v750_v49 = vshll.u32 %v6943_v39, 16  ;;  %v341_v50 = vadd.f32 %v7790_v15, %v302_v40 }
  0x49   : > { %v1022_v36 = vsel %vm7845_vm3, 0, %v1021_v45  ;;  %961 = vst.msk [vmem:[#allocation2 + $0x7c] sm:$0xf] %vm889_vm1, %v736_v46  ;;  %v741_v51 = vrot.slane %v739_v18, 7  ;;  %vm372_vm13 = vcmp.ge.f32.partialorder %v340_v44, 0.0  ;;  %v411_v52 = vmul.f32 %v7807_v25, %v340_v44 }
  0x4a   : > { %1023 = vst [vmem:[#allocation2 + $0x24] sm:$0x1] %v1022_v36  ;;  %v7972_v53 = vrot.slane %v747_v47, 7  ;;  %vm373_vm2 = vcmp.ge.f32.partialorder %v341_v50, 0.0  ;;  %v412_v56 = vmul.f32 %v7807_v25, %v341_v50  ;;  %v6973_v58 = vunpack.c.l.bf16 %v7022_v41 }
  0x4b   : > { %v744_v59 = vor.u32 %v742_v43, %v741_v51  ;;  %v745_v61 = vrot.slane %v741_v51, 4  ;;  %v443_v62 = vsel %vm372_vm13, %v340_v44, %v411_v52  ;;  %v6974_v63 = vunpack.c.h.bf16 %v7022_v41 }
  0x4c   : > { %v7551_v3 = vld [vmem:[#allocation2 + $0x18] sm:$0xff]   ;;  %v752_v6 = vor.u32 %v750_v49, %v7972_v53  ;;  %v754_v7 = vrot.slane %v7972_v53, 4  ;;  %v444_v19 = vsel %vm373_vm2, %v341_v50, %v412_v56  ;;  %v6928_v8 = vpack.c.bf16 %v443_v62, %v443_v62  ;;  %v7023_v62 = vld [vmem:[%s7766_s13 + $0x28] sm:$0xff]  }
  0x4d   : > { %v966_v10 = vsel %vm7839_vm15, %v744_v59, %v965_v55  ;;  %v6929_v11 = vpack.c.bf16 %v444_v19, %v444_v19  ;;  %v303_v12 = vmul.f32 %v6973_v58, %v7771_v4  ;;  %v304_v13 = vmul.f32 %v6974_v63, %v7771_v4  ;;  %7193 = vmatprep.mubr.msk.bf16.mxu0 %vm1225_vm5, %v7551_v3 }
  0x4e   : > { %v753_v14 = vsel %vm7831_vm14, %v745_v61, %v752_v6  ;;  %967 = vst [vmem:[#allocation2 + $0x84] sm:$0xf] %v966_v10  ;;  %v620_v16 = vshrl.u32 %v6928_v8, 16  ;;  %v623_v21 = vshll.u32 %v6928_v8, 16  ;;  %v7001_v22 = vunpack.c.l.bf16 %v7029_v0  ;;  %v7030_v61 = vld [vmem:[%s7766_s13 + $0x60] sm:$0xff]  }
  0x4f   : > { %v1042_v23 = vld [vmem:[#allocation2 + $0x78] sm:$0x1]  ;;  %968 = vst.msk [vmem:[#allocation2 + $0x88] sm:$0xf] %vm889_vm1, %v753_v14  ;;  %v628_v24 = vshrl.u32 %v6929_v11, 16  ;;  %v631_v27 = vshll.u32 %v6929_v11, 16  ;;  %v342_v28 = vadd.f32 %v7790_v15, %v303_v12  ;;  %v343_v29 = vadd.f32 %v7790_v15, %v304_v13 }
  0x50   : > { %v1043_v30 = vsel %vm7845_vm3, 0, %v1042_v23  ;;  %v622_v31 = vrot.slane %v620_v16, 7  ;;  %v7002_v34 = vunpack.c.h.bf16 %v7029_v0  ;;  %v317_v35 = vmul.f32 %v7001_v22, %v7771_v4  ;;  %v923_v13 = vld [vmem:[#allocation2 + $0x3c] sm:$0xf] }
  0x51   : > { %v7552_v39 = vld [vmem:[#allocation2 + $0x24] sm:$0xff]   ;;  %1044 = vst [vmem:[#allocation2 + $0x78] sm:$0x1] %v1043_v30  ;;  %v7991_v40 = vrot.slane %v628_v24, 7  ;;  %vm374_vm6 = vcmp.ge.f32.partialorder %v342_v28, 0.0  ;;  %vm375_vm7 = vcmp.ge.f32.partialorder %v343_v29, 0.0  ;;  %v413_v41 = vmul.f32 %v7807_v25, %v342_v28 }
  0x52   : > { %v625_v42 = vor.u32 %v623_v21, %v622_v31  ;;  %v626_v18 = vrot.slane %v622_v31, 4  ;;  %v414_v43 = vmul.f32 %v7807_v25, %v343_v29  ;;  %v318_v44 = vmul.f32 %v7002_v34, %v7771_v4  ;;  %7194 = vmatmul.mubr.msk.bf16.gmra.mxu0 %vm1225_vm5, %v7552_v39 }
  0x53   : > { %v633_v45 = vor.u32 %v631_v27, %v7991_v40  ;;  %v635_v46 = vrot.slane %v7991_v40, 4  ;;  %v445_v47 = vsel %vm374_vm6, %v342_v28, %v413_v41  ;;  %v356_v49 = vadd.f32 %v7790_v15, %v317_v35 }
  0x54   : > { %v917_v50 = vsel %vm7839_vm15, %v625_v42, %v916_v32  ;;  %v446_v36 = vsel %vm375_vm7, %v343_v29, %v414_v43  ;;  %v6930_v51 = vpack.c.bf16 %v445_v47, %v445_v47  ;;  %v357_v52 = vadd.f32 %v7790_v15, %v318_v44 }
  0x55   : > { %v1045_v55 = vld [vmem:[#allocation2 + $0x84] sm:$0x1]  ;;  %v634_v56 = vsel %vm7831_vm14, %v626_v18, %v633_v45  ;;  %918 = vst [vmem:[#allocation2 + $0x30] sm:$0xf] %v917_v50  ;;  %v6931_v58 = vpack.c.bf16 %v446_v36, %v446_v36  ;;  %vm388_vm8 = vcmp.ge.f32.partialorder %v356_v49, 0.0  ;;  %v427_v59 = vmul.f32 %v7807_v25, %v356_v49 }
  0x56   : > { %v1046_v63 = vsel %vm7845_vm3, 0, %v1045_v55  ;;  %919 = vst.msk [vmem:[#allocation2 + $0x34] sm:$0xf] %vm889_vm1, %v634_v56  ;;  %v637_v0 = vshrl.u32 %v6930_v51, 16  ;;  %v640_v3 = vshll.u32 %v6930_v51, 16  ;;  %vm389_vm9 = vcmp.ge.f32.partialorder %v357_v52, 0.0 }
  0x57   : > { %1047 = vst [vmem:[#allocation2 + $0x84] sm:$0x1] %v1046_v63  ;;  %v645_v6 = vshrl.u32 %v6931_v58, 16  ;;  %v648_v19 = vshll.u32 %v6931_v58, 16  ;;  %v428_v8 = vmul.f32 %v7807_v25, %v357_v52  ;;  %v459_v10 = vsel %vm388_vm8, %v356_v49, %v427_v59  ;;  %v972_v49 = vld [vmem:[#allocation2 + $0x90] sm:$0xf] }
  0x58   : > { %v7553_v11 = vld [vmem:[#allocation2 + $0x78] sm:$0xff]   ;;  %v639_v12 = vrot.slane %v637_v0, 7  ;;  %v6944_v14 = vpack.c.bf16 %v459_v10, %v459_v10  ;;  %v7005_v16 = vunpack.c.l.bf16 %v7030_v61  ;;  %v7006_v21 = vunpack.c.h.bf16 %v7030_v61 }
  0x59   : > { %v8012_v22 = vrot.slane %v645_v6, 7  ;;  %v460_v23 = vsel %vm389_vm9, %v357_v52, %v428_v8  ;;  %v6977_v24 = vunpack.c.l.bf16 %v7023_v62  ;;  %v6978_v27 = vunpack.c.h.bf16 %v7023_v62  ;;  %7209 = vmatprep.mubr.msk.bf16.mxu1 %vm1225_vm5, %v7553_v11 }
  0x5a   : > { %v642_v28 = vor.u32 %v640_v3, %v639_v12  ;;  %v643_v29 = vrot.slane %v639_v12, 4  ;;  %v6945_v30 = vpack.c.bf16 %v460_v23, %v460_v23  ;;  %v756_v31 = vshrl.u32 %v6944_v14, 16 }
  0x5b   : > { %v650_v32 = vor.u32 %v648_v19, %v8012_v22  ;;  %v652_v34 = vrot.slane %v8012_v22, 4  ;;  %v759_v35 = vshll.u32 %v6944_v14, 16  ;;  %v319_v39 = vmul.f32 %v7005_v16, %v7771_v4  ;;  %v7024_v19 = vld [vmem:[%s7766_s13 + $0x30] sm:$0xff]  }
  0x5c   : > { %v1024_v41 = vld [vmem:[#allocation2 + $0x30] sm:$0x1]  ;;  %v924_v42 = vsel %vm7839_vm15, %v642_v28, %v923_v13  ;;  %v758_v18 = vrot.slane %v756_v31, 7  ;;  %v764_v43 = vshrl.u32 %v6945_v30, 16  ;;  %v767_v44 = vshll.u32 %v6945_v30, 16 }
  0x5d   : > { %v1025_v45 = vsel %vm7845_vm3, 0, %v1024_v41  ;;  %v651_v47 = vsel %vm7831_vm14, %v643_v29, %v650_v32  ;;  %925 = vst [vmem:[#allocation2 + $0x3c] sm:$0xf] %v924_v42  ;;  %v320_v50 = vmul.f32 %v7006_v21, %v7771_v4  ;;  %v358_v36 = vadd.f32 %v7790_v15, %v319_v39 }
  0x5e   : > { %v7554_v51 = vld [vmem:[#allocation2 + $0x84] sm:$0xff]   ;;  %1026 = vst [vmem:[#allocation2 + $0x30] sm:$0x1] %v1025_v45  ;;  %926 = vst.msk [vmem:[#allocation2 + $0x40] sm:$0xf] %vm889_vm1, %v651_v47  ;;  %v761_v52 = vor.u32 %v759_v35, %v758_v18  ;;  %v762_v55 = vrot.slane %v758_v18, 4  ;;  %v305_v58 = vmul.f32 %v6977_v24, %v7771_v4  ;;  %v306_v62 = vmul.f32 %v6978_v27, %v7771_v4 }
  0x5f   : > { %v8027_v56 = vrot.slane %v764_v43, 7  ;;  %v359_v59 = vadd.f32 %v7790_v15, %v320_v50  ;;  %vm390_vm10 = vcmp.ge.f32.partialorder %v358_v36, 0.0  ;;  %v429_v61 = vmul.f32 %v7807_v25, %v358_v36  ;;  %7210 = vmatmul.mubr.msk.bf16.gmra.mxu1 %vm1225_vm5, %v7554_v51  ;;  %v979_v45 = vld [vmem:[#allocation2 + $0x9c] sm:$0xf] }
  0x60   : > { %v973_v3 = vsel %vm7839_vm15, %v761_v52, %v972_v49  ;;  %v344_v6 = vadd.f32 %v7790_v15, %v305_v58  ;;  %v345_v11 = vadd.f32 %v7790_v15, %v306_v62  ;;  %v6981_v23 = vunpack.c.l.bf16 %v7024_v19 }
  0x61   : > { %v769_v63 = vor.u32 %v767_v44, %v8027_v56  ;;  %v771_v0 = vrot.slane %v8027_v56, 4  ;;  %974 = vst [vmem:[#allocation2 + $0x90] sm:$0xf] %v973_v3  ;;  %vm391_vm11 = vcmp.ge.f32.partialorder %v359_v59, 0.0  ;;  %v430_v8 = vmul.f32 %v7807_v25, %v359_v59  ;;  %v930_v3 = vld [vmem:[#allocation2 + $0x48] sm:$0xf] }
  0x62   : > { %v461_v10 = vsel %vm390_vm10, %v358_v36, %v429_v61  ;;  %vm376_vm12 = vcmp.ge.f32.partialorder %v344_v6, 0.0  ;;  %v415_v14 = vmul.f32 %v7807_v25, %v344_v6  ;;  %vm377_vm13 = vcmp.ge.f32.partialorder %v345_v11, 0.0 }
  0x63   : > { %v770_v12 = vsel %vm7831_vm14, %v762_v55, %v769_v63  ;;  %v6946_v13 = vpack.c.bf16 %v461_v10, %v461_v10  ;;  %v462_v16 = vsel %vm391_vm11, %v359_v59, %v430_v8  ;;  %v416_v21 = vmul.f32 %v7807_v25, %v345_v11 }
  0x64   : > { %975 = vst.msk [vmem:[#allocation2 + $0x94] sm:$0xf] %vm889_vm1, %v770_v12  ;;  %v1027_v24 = vld [vmem:[#allocation2 + $0x3c] sm:$0x1]  ;;  %v6947_v27 = vpack.c.bf16 %v462_v16, %v462_v16  ;;  %v447_v30 = vsel %vm376_vm12, %v344_v6, %v415_v14  ;;  %v6982_v41 = vunpack.c.h.bf16 %v7024_v19  ;;  %v307_v50 = vmul.f32 %v6981_v23, %v7771_v4  ;;  %v7032_v16 = vld [vmem:[%s7766_s13 + $0x70] sm:$0xff]  }
  0x65   : > { %v773_v28 = vshrl.u32 %v6946_v13, 16  ;;  %v776_v29 = vshll.u32 %v6946_v13, 16  ;;  %v7555_v31 = vld [vmem:[#allocation2 + $0x30] sm:$0xff]   ;;  %v1028_v32 = vsel %vm7845_vm3, 0, %v1027_v24  ;;  %v448_v35 = vsel %vm377_vm13, %v345_v11, %v416_v21  ;;  %v7031_v11 = vld [vmem:[%s7766_s13 + $0x68] sm:$0xff]  }
  0x66   : > { %v6932_v39 = vpack.c.bf16 %v447_v30, %v447_v30  ;;  %1029 = vst [vmem:[#allocation2 + $0x3c] sm:$0x1] %v1028_v32  ;;  %v781_v18 = vshrl.u32 %v6947_v27, 16  ;;  %v784_v43 = vshll.u32 %v6947_v27, 16  ;;  %v6933_v44 = vpack.c.bf16 %v448_v35, %v448_v35  ;;  %7197 = vmatprep.mubr.msk.bf16.mxu0 %vm1225_vm5, %v7555_v31  ;;  %v8075_v32 = vld [vmem:[#allocation2] sm:$0xe] }
  0x67   : > { %v775_v42 = vrot.slane %v773_v28, 7  ;;  %v308_v36 = vmul.f32 %v6982_v41, %v7771_v4  ;;  %v346_v6 = vadd.f32 %v7790_v15, %v307_v50  ;;  %vm2360_vm6 = vcmask 1042432   ;;  %v8634_v1 = vld [vmem:[#allocation2 + $0x3c] sm:$0xe] }
  0x68   : > { %v654_v47 = vshrl.u32 %v6932_v39, 16  ;;  %v657_v49 = vshll.u32 %v6932_v39, 16  ;;  %v1048_v51 = vld [vmem:[#allocation2 + $0x90] sm:$0x1]  ;;  %v8052_v58 = vrot.slane %v781_v18, 7  ;;  %v662_v59 = vshrl.u32 %v6933_v44, 16 }
  0x69   : > { %v778_v52 = vor.u32 %v776_v29, %v775_v42  ;;  %v779_v55 = vrot.slane %v775_v42, 4  ;;  %v1049_v61 = vsel %vm7845_vm3, 0, %v1048_v51  ;;  %v665_v63 = vshll.u32 %v6933_v44, 16  ;;  %v7595_v44 = vld [vmem:[%s10109_s2] ss:$0 sm:$0xff] }
  0x6a   : > { %v656_v62 = vrot.slane %v654_v47, 7  ;;  %1050 = vst [vmem:[#allocation2 + $0x90] sm:$0x1] %v1049_v61  ;;  %v786_v19 = vor.u32 %v784_v43, %v8052_v58  ;;  %v788_v4 = vrot.slane %v8052_v58, 4  ;;  %v8061_v10 = vrot.slane %v662_v59, 7 }
  0x6b   : > { %v980_v8 = vsel %vm7839_vm15, %v778_v52, %v979_v45  ;;  %v347_v14 = vadd.f32 %v7790_v15, %v308_v36  ;;  %vm378_vm2 = vcmp.ge.f32.partialorder %v346_v6, 0.0  ;;  %v417_v27 = vmul.f32 %v7807_v25, %v346_v6 }
  0x6c   : > { %981 = vst [vmem:[#allocation2 + $0x9c] sm:$0xf] %v980_v8  ;;  %v659_v12 = vor.u32 %v657_v49, %v656_v62  ;;  %v660_v13 = vrot.slane %v656_v62, 4  ;;  %v787_v21 = vsel %vm7831_vm14, %v779_v55, %v786_v19  ;;  %v667_v23 = vor.u32 %v665_v63, %v8061_v10  ;;  %v7596_v19 = vld [vmem:[%s10110_s3] ss:$0 sm:$0xff] }
  0x6d   : > { %v669_v24 = vrot.slane %v8061_v10, 4  ;;  %vm2361_vm7 = vcmask 1046532   ;;  %v7556_v28 = vld [vmem:[#allocation2 + $0x3c] sm:$0xff]   ;;  %982 = vst.msk [vmem:[#allocation2 + $0xa0] sm:$0xf] %vm889_vm1, %v787_v21  ;;  %vm379_vm8 = vcmp.ge.f32.partialorder %v347_v14, 0.0  ;;  %v418_v30 = vmul.f32 %v7807_v25, %v347_v14 }
  0x6e   : > { %v931_v29 = vsel %vm7839_vm15, %v659_v12, %v930_v3  ;;  %v7009_v31 = vunpack.c.l.bf16 %v7031_v11  ;;  %v668_v35 = vsel %vm7831_vm14, %v660_v13, %v667_v23  ;;  %v449_v39 = vsel %vm378_vm2, %v346_v6, %v417_v27  ;;  %7198 = vmatmul.mubr.msk.bf16.gmra.mxu0 %vm1225_vm5, %v7556_v28  ;;  %v7597_v21 = vld [vmem:[%s10111_s4] ss:$0 sm:$0xff]  ;;  %vm8107_vm13 = vmor %vm2360_vm6, %vm2361_vm7  ;;  %v2276_v10 = vld [vmem:[#allocation2 + $0x30] sm:$0xe] }
  0x6f   : > { %932 = vst [vmem:[#allocation2 + $0x48] sm:$0xf] %v931_v29  ;;  %v7010_v41 = vunpack.c.h.bf16 %v7031_v11  ;;  %v7013_v42 = vunpack.c.l.bf16 %v7032_v16  ;;  %933 = vst.msk [vmem:[#allocation2 + $0x4c] sm:$0xf] %vm889_vm1, %v668_v35  ;;  %v450_v18 = vsel %vm379_vm8, %v347_v14, %v418_v30  ;;  %v6934_v43 = vpack.c.bf16 %v449_v39, %v449_v39 }
  0x70   : > { %v321_v45 = vmul.f32 %v7595_v44, %v7009_v31  ;;  %v7014_v47 = vunpack.c.h.bf16 %v7032_v16  ;;  %v6935_v49 = vpack.c.bf16 %v450_v18, %v450_v18  ;;  %v6637_v51 = vrot.slane %v8075_v32, 9  ;;  %v937_v16 = vld [vmem:[#allocation2 + $0x54] sm:$0xf]  ;;  %v2265_v32 = vld [vmem:[#allocation2 + $0x4] sm:$0xf] }
  0x71   : > { %v322_v50 = vmul.f32 %v7595_v44, %v7010_v41  ;;  %v323_v36 = vmul.f32 %v7595_v44, %v7013_v42  ;;  %v7557_v52 = vld [vmem:[#allocation2 + $0x90] sm:$0xff]   ;;  %v671_v55 = vshrl.u32 %v6934_v43, 16  ;;  %v674_v59 = vshll.u32 %v6934_v43, 16 }
  0x72   : > { %v360_v61 = vadd.f32 %v7790_v15, %v321_v45  ;;  %v324_v62 = vmul.f32 %v7595_v44, %v7014_v47  ;;  %v679_v3 = vshrl.u32 %v6935_v49, 16  ;;  %v682_v6 = vshll.u32 %v6935_v49, 16  ;;  %7213 = vmatprep.mubr.msk.bf16.mxu1 %vm1225_vm5, %v7557_v52  ;;  %v1471_v52 = vld [vmem:[#allocation2] sm:$0xf] }
  0x73   : > { %v1051_v63 = vld [vmem:[#allocation2 + $0x9c] sm:$0x1]  ;;  %v361_v8 = vadd.f32 %v7596_v19, %v322_v50  ;;  %v362_v11 = vadd.f32 %v7596_v19, %v323_v36  ;;  %v673_v13 = vrot.slane %v671_v55, 7  ;;  %v2266_v50 = vld [vmem:[#allocation2 + $0x8] sm:$0x1]  ;;  %v2365_v36 = vrot.slane %v2265_v32, 5 }
  0x74   : > { %v1052_v12 = vsel %vm7845_vm3, 0, %v1051_v63  ;;  %vm392_vm9 = vcmp.ge.f32.partialorder %v360_v61, 0.0  ;;  %v431_v14 = vmul.f32 %v7807_v25, %v360_v61  ;;  %v8094_v15 = vrot.slane %v679_v3, 7  ;;  %v1472_v63 = vld [vmem:[#allocation2 + $0x4] sm:$0xf] }
  0x75   : > { %1053 = vst [vmem:[#allocation2 + $0x9c] sm:$0x1] %v1052_v12  ;;  %vm393_vm10 = vcmp.ge.f32.partialorder %v361_v8, 0.0  ;;  %v432_v23 = vmul.f32 %v7597_v21, %v361_v8  ;;  %v363_v27 = vadd.f32 %v7596_v19, %v324_v62  ;;  %v676_v29 = vor.u32 %v674_v59, %v673_v13 }
  0x76   : > { %v1030_v28 = vld [vmem:[#allocation2 + $0x48] sm:$0x1]  ;;  %v677_v30 = vrot.slane %v673_v13, 4  ;;  %v463_v31 = vsel %vm392_vm9, %v360_v61, %v431_v14  ;;  %vm394_vm11 = vcmp.ge.f32.partialorder %v362_v11, 0.0  ;;  %v684_v35 = vor.u32 %v682_v6, %v8094_v15 }
  0x77   : > { %v1031_v25 = vsel %vm7845_vm3, 0, %v1030_v28  ;;  %v686_v39 = vrot.slane %v8094_v15, 4  ;;  %v464_v41 = vsel %vm393_vm10, %v361_v8, %v432_v23  ;;  %v938_v42 = vsel %vm7839_vm15, %v676_v29, %v937_v16  ;;  %v986_v23 = vld [vmem:[#allocation2 + $0xa8] sm:$0xf] }
  0x78   : > { %1032 = vst [vmem:[#allocation2 + $0x48] sm:$0x1] %v1031_v25  ;;  %v6948_v18 = vpack.c.bf16 %v463_v31, %v463_v31  ;;  %v6949_v43 = vpack.c.bf16 %v464_v41, %v464_v41  ;;  %vm395_vm12 = vcmp.ge.f32.partialorder %v363_v27, 0.0  ;;  %v685_v45 = vsel %vm7831_vm14, %v677_v30, %v684_v35  ;;  %939 = vst [vmem:[#allocation2 + $0x54] sm:$0xf] %v938_v42 }
  0x79   : > { %v433_v47 = vmul.f32 %v7597_v21, %v362_v11  ;;  %v434_v49 = vmul.f32 %v7597_v21, %v363_v27  ;;  %940 = vst.msk [vmem:[#allocation2 + $0x58] sm:$0xf] %vm889_vm1, %v685_v45  ;;  %vm1519_vm2 = vsmask.f32 3328  ;;  %vm1520_vm6 = vsmask.f32 7440 }
  0x7a   : > { %v790_v55 = vshrl.u32 %v6948_v18, 16  ;;  %v793_v59 = vshll.u32 %v6948_v18, 16  ;;  %v798_v61 = vshrl.u32 %v6949_v43, 16  ;;  %v801_v62 = vshll.u32 %v6949_v43, 16  ;;  %v1473_v25 = vld [vmem:[#allocation2 + $0x8] sm:$0x1]  ;;  %vm8151_vm7 = vmor %vm1519_vm2, %vm1520_vm6 }
  0x7b   : > { %v465_v3 = vsel %vm394_vm11, %v362_v11, %v433_v47  ;;  %v466_v6 = vsel %vm395_vm12, %v363_v27, %v434_v49  ;;  %v8118_v19 = vsel %vm8107_vm13, %v6637_v51, %v2365_v36  ;;  %v2367_v8 = vrot.slane %v2365_v36, 4  ;;  %v1064_v45 = vld [vmem:[#allocation2 + $0x14] sm:$0x1] }
  0x7c   : > { %v7558_v12 = vld [vmem:[#allocation2 + $0x9c] sm:$0xff]   ;;  %v792_v13 = vrot.slane %v790_v55, 7  ;;  %v8120_v14 = vrot.slane %v798_v61, 7  ;;  %v6950_v16 = vpack.c.bf16 %v465_v3, %v465_v3  ;;  %v6951_v21 = vpack.c.bf16 %v466_v6, %v466_v6 }
  0x7d   : > { %v2368_v28 = vrot.slane %v2266_v50, 5  ;;  %v1523_v29 = vshrl.u32 %v1471_v52, 16  ;;  %v1526_v30 = vshll.u32 %v1471_v52, 16  ;;  %v1532_v31 = vshll.u32 %v1472_v63, 16  ;;  %7214 = vmatmul.mubr.msk.bf16.gmra.mxu1 %vm1225_vm5, %v7558_v12  ;;  %v993_v52 = vld [vmem:[#allocation2 + $0xb4] sm:$0xf] }
  0x7e   : > { %v795_v11 = vor.u32 %v793_v59, %v792_v13  ;;  %v796_v27 = vrot.slane %v792_v13, 4  ;;  %v803_v32 = vor.u32 %v801_v62, %v8120_v14  ;;  %v805_v51 = vrot.slane %v8120_v14, 4  ;;  %v2267_v59 = vld [vmem:[#allocation2 + $0xc] sm:$0xe] }
  0x7f   : > { %v7559_v35 = vld [vmem:[#allocation2 + $0x48] sm:$0xff]   ;;  %v807_v41 = vshrl.u32 %v6950_v16, 16  ;;  %v810_v42 = vshll.u32 %v6950_v16, 16  ;;  %v815_v18 = vshrl.u32 %v6951_v21, 16  ;;  %v8127_v43 = vsel %vm8107_vm13, %v2367_v8, %v2368_v28  ;;  %v1033_v47 = vld [vmem:[#allocation2 + $0x54] sm:$0x1] }
  0x80   : > { %v804_v49 = vsel %vm7831_vm14, %v796_v27, %v803_v32  ;;  %v987_v50 = vsel %vm7839_vm15, %v795_v11, %v986_v23  ;;  %v818_v36 = vshll.u32 %v6951_v21, 16  ;;  %v6654_v55 = vcombine.low %v8118_v19, %v8127_v43  ;;  %7201 = vmatprep.mubr.msk.bf16.mxu0 %vm1225_vm5, %v7559_v35  ;;  %v2268_v21 = vld [vmem:[#allocation2 + $0x10] sm:$0xf]  ;;  %v1474_v32 = vld [vmem:[#allocation2 + $0xc] sm:$0xf] }
  0x81   : > { %v1034_v61 = vsel %vm7845_vm3, 0, %v1033_v47  ;;  %988 = vst [vmem:[#allocation2 + $0xa8] sm:$0xf] %v987_v50  ;;  %989 = vst.msk [vmem:[#allocation2 + $0xac] sm:$0xf] %vm889_vm1, %v804_v49  ;;  %v809_v62 = vrot.slane %v807_v41, 7 }
  0x82   : > { %v8139_v3 = vrot.slane %v815_v18, 7  ;;  %v1525_v6 = vrot.slane %v1523_v29, 4  ;;  %1035 = vst [vmem:[#allocation2 + $0x54] sm:$0x1] %v1034_v61  ;;  %v1528_v8 = vrot.slane %v1526_v30, 5  ;;  %v1534_v12 = vrot.slane %v1532_v31, 5 }
  0x83   : > { %v1536_v13 = vshrl.u32 %v1472_v63, 16  ;;  %v1542_v16 = vshll.u32 %v1473_v25, 16  ;;  %v812_v23 = vor.u32 %v810_v42, %v809_v62  ;;  %v813_v28 = vrot.slane %v809_v62, 4  ;;  %v1475_v29 = vld [vmem:[#allocation2 + $0x10] sm:$0xf] }
  0x84   : > { %v820_v11 = vor.u32 %v818_v36, %v8139_v3  ;;  %v822_v27 = vrot.slane %v8139_v3, 4  ;;  %v1529_v35 = vor.u32 %v1528_v8, %v1525_v6  ;;  %v1065_v41 = vsel %vm7775_vm4, 0, %v1064_v45  ;;  %v906_v18 = vld [vmem:[#allocation2 + $0x20] sm:$0x1]  ;;  %v913_v50 = vld [vmem:[#allocation2 + $0x2c] sm:$0x1] }
  0x85   : > { %v1538_v47 = vrot.slane %v1536_v13, 4  ;;  %v1544_v49 = vrot.slane %v1542_v16, 5  ;;  %v994_v63 = vsel %vm7839_vm15, %v812_v23, %v993_v52  ;;  %1066 = vst [vmem:[#allocation2 + $0x14] sm:$0x1] %v1065_v41  ;;  %v6638_v25 = vrot.slane %v2267_v59, 9 }
  0x86   : > { %v821_v30 = vsel %vm7831_vm14, %v813_v28, %v820_v11  ;;  %v2372_v42 = vrot.slane %v2268_v21, 5  ;;  %995 = vst [vmem:[#allocation2 + $0xb4] sm:$0xf] %v994_v63  ;;  %v1530_v45 = vrot.slane %v1529_v35, 4  ;;  %v1547_v61 = vshrl.u32 %v1474_v32, 16 }
  0x87   : > { %996 = vst.msk [vmem:[#allocation2 + $0xb8] sm:$0xf] %vm889_vm1, %v821_v30  ;;  %v1539_v36 = vor.u32 %v1538_v47, %v1534_v12  ;;  %v1550_v62 = vshll.u32 %v1474_v32, 16  ;;  %v2270_v6 = vld [vmem:[#allocation2 + $0x18] sm:$0xe]  ;;  %v1556_v16 = vshll.u32 %v1475_v29, 16  ;;  %v907_v32 = vsel %vm7845_vm3, %v601_v33, %v906_v18 }
  0x88   : > { %v2271_v52 = vld [vmem:[#allocation2 + $0x1c] sm:$0xf]  ;;  %v8158_v8 = vsel %vm8107_vm13, %v6638_v25, %v2372_v42  ;;  %v2374_v13 = vrot.slane %v2372_v42, 4  ;;  %v1560_v23 = vshrl.u32 %v1475_v29, 16  ;;  %v1477_v59 = vld [vmem:[#allocation2 + $0x18] sm:$0xf]  ;;  %v1535_v11 = vsel %vm8151_vm7, %v1530_v45, %v1534_v12 }
  0x89   : > { %v920_v21 = vld [vmem:[#allocation2 + $0x38] sm:$0x1]  ;;  %v1054_v28 = vld [vmem:[#allocation2 + $0xa8] sm:$0x1]  ;;  %v1540_v41 = vrot.slane %v1539_v36, 4  ;;  %v1549_v35 = vrot.slane %v1547_v61, 4  ;;  %v914_v12 = vsel %vm7845_vm3, %v618_v2, %v913_v50 }
  0x8a   : > { %v7560_v47 = vld [vmem:[#allocation2 + $0x54] sm:$0xff]   ;;  %v1055_v30 = vsel %vm7845_vm3, 0, %v1054_v28  ;;  %v1552_v63 = vrot.slane %v1550_v62, 5  ;;  %v8168_v25 = vrot.slane %v1556_v16, 5  ;;  %908 = vst [vmem:[#allocation2 + $0x20] sm:$0x1] %v907_v32  ;;  %v921_v16 = vsel %vm7845_vm3, %v635_v46, %v920_v21 }
  0x8b   : > { %1056 = vst [vmem:[#allocation2 + $0xa8] sm:$0x1] %v1055_v30  ;;  %v1545_v20 = vsel %vm8151_vm7, %v1540_v41, %v1544_v49  ;;  %v1562_v29 = vrot.slane %v1560_v23, 4  ;;  %v8178_v33 = vsel %vm1274_vm0, %v7940_v9, 0  ;;  %v8182_v42 = vsel %vm1274_vm0, %v7920_v54, 0  ;;  %7202 = vmatmul.mubr.msk.bf16.gmra.mxu0 %vm1225_vm5, %v7560_v47 }
  0x8c   : > { %915 = vst [vmem:[#allocation2 + $0x2c] sm:$0x1] %v914_v12  ;;  %v927_v18 = vld [vmem:[#allocation2 + $0x44] sm:$0x1]  ;;  %v8185_v57 = vcombine.low %v1535_v11, %v1545_v20  ;;  %v1553_v2 = vor.u32 %v1552_v63, %v1549_v35  ;;  %v6639_v50 = vrot.slane %v2270_v6, 9  ;;  %v2379_v45 = vrot.slane %v2271_v52, 5  ;;  %7257 = vmatprep.mubr.msk.bf16.mxu0 %vm1225_vm5, %v6654_v55 }
  0x8d   : > { %v1478_v36 = vld [vmem:[#allocation2 + $0x1c] sm:$0xf]  ;;  %v2269_v9 = vld [vmem:[#allocation2 + $0x14] sm:$0x1]  ;;  %v1563_v54 = vor.u32 %v1562_v29, %v8168_v25  ;;  %v1571_v61 = vshrl.u32 %v1477_v59, 16  ;;  %v1574_v62 = vshll.u32 %v1477_v59, 16  ;;  %v928_v43 = vsel %vm7845_vm3, %v652_v34, %v927_v18 }
  0x8e   : > { %v1476_v49 = vld [vmem:[#allocation2 + $0x14] sm:$0x1]  ;;  %v934_v23 = vld [vmem:[#allocation2 + $0x50] sm:$0x1]  ;;  %v941_v6 = vld [vmem:[#allocation2 + $0x5c] sm:$0x1]  ;;  %v8198_v19 = vsel %vm8107_vm13, %v6639_v50, %v2379_v45 }
  0x8f   : > { %v1057_v52 = vld [vmem:[#allocation2 + $0xb4] sm:$0x1]  ;;  %v2375_v28 = vrot.slane %v2269_v9, 5  ;;  %v1554_v11 = vrot.slane %v1553_v2, 4  ;;  %922 = vst [vmem:[#allocation2 + $0x38] sm:$0x1] %v921_v16 }
  0x90   : > { %v1058_v40 = vsel %vm7845_vm3, 0, %v1057_v52  ;;  %v1564_v55 = vrot.slane %v1563_v54, 4  ;;  %v1566_v46 = vshll.u32 %v1476_v49, 16  ;;  %v8206_v59 = vrot.slane %v2379_v45, 4  ;;  %v2273_v21 = vld [vmem:[#allocation2 + $0x24] sm:$0xe] }
  0x91   : > { %v2274_v41 = vld [vmem:[#allocation2 + $0x28] sm:$0xf]  ;;  %929 = vst [vmem:[#allocation2 + $0x44] sm:$0x1] %v928_v43  ;;  %1059 = vst [vmem:[#allocation2 + $0xb4] sm:$0x1] %v1058_v40  ;;  %v2376_v35 = vsel %vm8107_vm13, %v2374_v13, %v2375_v28  ;;  %v1559_v22 = vsel %vm8151_vm7, %v1554_v11, %v8168_v25  ;;  %v935_v25 = vsel %vm7845_vm3, %v669_v24, %v934_v23 }
  0x92   : > { %v1573_v32 = vrot.slane %v1571_v61, 4  ;;  %v1576_v34 = vrot.slane %v1574_v62, 5  ;;  %v1480_v47 = vld [vmem:[#allocation2 + $0x24] sm:$0xf]  ;;  %v1481_v30 = vld [vmem:[#allocation2 + $0x28] sm:$0xf]  ;;  %v6655_v63 = vcombine.low %v8158_v8, %v2376_v35  ;;  %v942_v8 = vsel %vm7845_vm3, %v686_v39, %v941_v6 }
  0x93   : > { %v1568_v12 = vrot.slane %v1566_v46, 5  ;;  %v1067_v20 = vld [vmem:[#allocation2 + $0x20] sm:$0x1]  ;;  %v1580_v29 = vshll.u32 %v1478_v36, 16  ;;  %v1584_v18 = vshrl.u32 %v1478_v36, 16  ;;  %v7561_v2 = vld [vmem:[#allocation2 + $0xa8] sm:$0xff]  }
  0x94   : > { %v1068_v50 = vsel %vm7775_vm4, 0, %v1067_v20  ;;  %v1577_v45 = vor.u32 %v1576_v34, %v1573_v32  ;;  %v1070_v13 = vld [vmem:[#allocation2 + $0x2c] sm:$0x1]  ;;  %v955_v9 = vld [vmem:[#allocation2 + $0x74] sm:$0x1]  ;;  %7217 = vmatprep.mubr.msk.bf16.mxu1 %vm1225_vm5, %v7561_v2  ;;  %7258 = vmatmul.mubr.msk.bf16.vlgmr.msra.gmra.mxu0 %vm1225_vm5, %v6655_v63  ;;  %v6640_v62 = vrot.slane %v2273_v21, 9 }
  0x95   : > { %v1569_v36 = vsel %vm8151_vm7, %v1564_v55, %v1568_v12  ;;  %1069 = vst [vmem:[#allocation2 + $0x20] sm:$0x1] %v1068_v50  ;;  %v8226_v49 = vrot.slane %v1580_v29, 5  ;;  %v1586_v54 = vrot.slane %v1584_v18, 4  ;;  %v1071_v61 = vsel %vm7775_vm4, 0, %v1070_v13  ;;  %7324 = vmatpush3.bf16.msra.mxu0 %v8182_v42 }
  0x96   : > { %936 = vst [vmem:[#allocation2 + $0x50] sm:$0x1] %v935_v25  ;;  %943 = vst [vmem:[#allocation2 + $0x5c] sm:$0x1] %v942_v8  ;;  %v6801_v24 = vld [vmem:[%s10108_s1 + $0xc] sm:$0x3]  ;;  %v8235_v15 = vcombine.low %v1559_v22, %v1569_v36  ;;  %v956_v63 = vsel %vm7845_vm3, %v720_v37, %v955_v9 }
  0x97   : > { %v8237_v39 = vrot.slane %v1577_v45, 4  ;;  %1072 = vst [vmem:[#allocation2 + $0x2c] sm:$0x1] %v1071_v61  ;;  %v2386_v16 = vrot.slane %v2274_v41, 5  ;;  %v2277_v23 = vld [vmem:[#allocation2 + $0x34] sm:$0xf]  ;;  %v1587_v6 = vor.u32 %v1586_v54, %v8226_v49  ;;  %7502 = vmatprep.subr.msk.bf16.mxu0 %vm1274_vm0, %v6801_v24 }
  0x98   : > { %v1595_v52 = vshrl.u32 %v1480_v47, 16  ;;  %v1598_v28 = vshll.u32 %v1480_v47, 16  ;;  %v1604_v11 = vshll.u32 %v1481_v30, 16  ;;  %v1073_v43 = vld [vmem:[#allocation2 + $0x38] sm:$0x1]  ;;  %v1608_v41 = vshrl.u32 %v1481_v30, 16 }
  0x99   : > { %v962_v40 = vld [vmem:[#allocation2 + $0x80] sm:$0x1]  ;;  %v1583_v55 = vsel %vm8151_vm7, %v8237_v39, %v8226_v49  ;;  %v8247_v46 = vsel %vm8107_vm13, %v6640_v62, %v2386_v16  ;;  %v2388_v21 = vrot.slane %v2386_v16, 4  ;;  %v1483_v35 = vld [vmem:[#allocation2 + $0x30] sm:$0xf]  ;;  %v7562_v22 = vld [vmem:[#allocation2 + $0xb4] sm:$0xff]  }
  0x9a   : > { %v1484_v42 = vld [vmem:[#allocation2 + $0x34] sm:$0xf]  ;;  %v1588_v32 = vrot.slane %v1587_v6, 4  ;;  %v1597_v34 = vrot.slane %v1595_v52, 4  ;;  %v1600_v47 = vrot.slane %v1598_v28, 5  ;;  %v1606_v12 = vrot.slane %v1604_v11, 5  ;;  %7218 = vmatmul.mubr.msk.bf16.gmra.mxu1 %vm1225_vm5, %v7562_v22 }
  0x9b   : > { %v1610_v20 = vrot.slane %v1608_v41, 4  ;;  %v1074_v29 = vsel %vm7775_vm4, 0, %v1073_v43  ;;  %v6641_v18 = vrot.slane %v2276_v10, 9  ;;  %957 = vst [vmem:[#allocation2 + $0x74] sm:$0x1] %v956_v63  ;;  %v2393_v50 = vrot.slane %v2277_v23, 5  ;;  %7223 = vmatprep.mubr.msk.bf16.mxu1 %vm1225_vm5, %v8185_v57 }
  0x9c   : > { %v969_v30 = vld [vmem:[#allocation2 + $0x8c] sm:$0x1]  ;;  %v1601_v2 = vor.u32 %v1600_v47, %v1597_v34  ;;  %1075 = vst [vmem:[#allocation2 + $0x38] sm:$0x1] %v1074_v29  ;;  %v1619_v45 = vshrl.u32 %v1483_v35, 16  ;;  %v1622_v13 = vshll.u32 %v1483_v35, 16  ;;  %v963_v36 = vsel %vm7845_vm3, %v737_v38, %v962_v40 }
  0x9d   : > { %v2272_v48 = vld [vmem:[#allocation2 + $0x20] sm:$0x1]  ;;  %v1611_v25 = vor.u32 %v1610_v20, %v1606_v12  ;;  %v1628_v8 = vshll.u32 %v1484_v42, 16  ;;  %v1632_v9 = vshrl.u32 %v1484_v42, 16  ;;  %v8265_v24 = vsel %vm8107_vm13, %v6641_v18, %v2393_v50  ;;  %964 = vst [vmem:[#allocation2 + $0x80] sm:$0x1] %v963_v36 }
  0x9e   : > { %v1479_v37 = vld [vmem:[#allocation2 + $0x20] sm:$0x1]  ;;  %v2382_v49 = vrot.slane %v2272_v48, 5  ;;  %v2275_v61 = vld [vmem:[#allocation2 + $0x2c] sm:$0x1]  ;;  %v970_v57 = vsel %vm7845_vm3, %v754_v7, %v969_v30  ;;  %v1602_v62 = vrot.slane %v1601_v2, 4 }
  0x9f   : > { %v1590_v54 = vshll.u32 %v1479_v37, 16  ;;  %v1482_v10 = vld [vmem:[#allocation2 + $0x2c] sm:$0x1]  ;;  %v2389_v39 = vrot.slane %v2275_v61, 5  ;;  %v1612_v26 = vrot.slane %v1611_v25, 4  ;;  %v2395_v6 = vrot.slane %v2393_v50, 4 }
  0xa0   : > { %v1614_v16 = vshll.u32 %v1482_v10, 16  ;;  %971 = vst [vmem:[#allocation2 + $0x8c] sm:$0x1] %v970_v57  ;;  %v2383_v38 = vsel %vm8107_vm13, %v8206_v59, %v2382_v49  ;;  %v1621_v52 = vrot.slane %v1619_v45, 4  ;;  %v1076_v28 = vld [vmem:[#allocation2 + $0x44] sm:$0x1]  ;;  %v1607_v7 = vsel %vm8151_vm7, %v1602_v62, %v1606_v12 }
  0xa1   : > { %v1592_v23 = vrot.slane %v1590_v54, 5  ;;  %v6656_v11 = vcombine.low %v8198_v19, %v2383_v38  ;;  %v2390_v53 = vsel %vm8107_vm13, %v2388_v21, %v2389_v39  ;;  %v2279_v40 = vld [vmem:[#allocation2 + $0x3c] sm:$0xe]  ;;  %v2280_v41 = vld [vmem:[#allocation2 + $0x40] sm:$0xf]  ;;  %v1624_v42 = vrot.slane %v1622_v13, 5 }
  0xa2   : > { %v1616_v43 = vrot.slane %v1614_v16, 5  ;;  %v6657_v59 = vcombine.low %v8247_v46, %v2390_v53  ;;  %v1630_v22 = vrot.slane %v1628_v8, 5  ;;  %v1486_v34 = vld [vmem:[#allocation2 + $0x3c] sm:$0xf]  ;;  %v8285_v19 = vld [vmem:[%s10108_s1 + $0xa] sm:$0x3]  ;;  %7224 = vmatmul.mubr.msk.bf16.vlgmr.msra.gmra.mxu1 %vm1225_vm5, %v8235_v15 }
  0xa3   : > { %v1593_v35 = vsel %vm8151_vm7, %v1588_v32, %v1592_v23  ;;  %7261 = vmatprep.mubr.msk.bf16.mxu0 %vm1225_vm5, %v6656_v11  ;;  %v2278_v63 = vld [vmem:[#allocation2 + $0x38] sm:$0x1]  ;;  %v1634_v20 = vrot.slane %v1632_v9, 4  ;;  %v1077_v46 = vsel %vm7775_vm4, 0, %v1076_v28  ;;  %v1625_v18 = vor.u32 %v1624_v42, %v1621_v52  ;;  %7290 = vmatpush3.bf16.msra.mxu1 %v8178_v33  ;;  %v2282_v48 = vld [vmem:[#allocation2 + $0x48] sm:$0xe] }
  0xa4   : > { %v6607_v21 = vcombine.low %v1583_v55, %v1593_v35  ;;  %v1617_v47 = vsel %vm8151_vm7, %v1612_v26, %v1616_v43  ;;  %v1485_v12 = vld [vmem:[#allocation2 + $0x38] sm:$0x1]  ;;  %7262 = vmatmul.mubr.msk.bf16.gmra.mxu0 %vm1225_vm5, %v6657_v59  ;;  %v2396_v29 = vrot.slane %v2278_v63, 5  ;;  %1078 = vst [vmem:[#allocation2 + $0x44] sm:$0x1] %v1077_v46  ;;  %v6642_v50 = vrot.slane %v2279_v40, 9  ;;  %7501 = vmatprep.subr.msk.bf16.mxu1 %vm1274_vm0, %v8285_v19 }
  0xa5   : > { %v6608_v32 = vcombine.low %v1607_v7, %v1617_v47  ;;  %v1638_v30 = vshll.u32 %v1485_v12, 16  ;;  %v1487_v55 = vld [vmem:[#allocation2 + $0x40] sm:$0xf]  ;;  %v1635_v2 = vor.u32 %v1634_v20, %v1630_v22  ;;  %v2400_v45 = vrot.slane %v2280_v41, 5  ;;  %v1079_v9 = vld [vmem:[#allocation2 + $0x50] sm:$0x1] }
  0xa6   : > { %7227 = vmatprep.mubr.msk.bf16.mxu1 %vm1225_vm5, %v6607_v21  ;;  %v1643_v13 = vshrl.u32 %v1486_v34, 16  ;;  %v2397_v15 = vsel %vm8107_vm13, %v2395_v6, %v2396_v29  ;;  %v1626_v37 = vrot.slane %v1625_v18, 4  ;;  %v1646_v8 = vshll.u32 %v1486_v34, 16  ;;  %v976_v36 = vld [vmem:[#allocation2 + $0x98] sm:$0x1] }
  0xa7   : > { %v1640_v25 = vrot.slane %v1638_v30, 5  ;;  %v983_v49 = vld [vmem:[#allocation2 + $0xa4] sm:$0x1]  ;;  %v6658_v33 = vcombine.low %v8265_v24, %v2397_v15  ;;  %v1636_v54 = vrot.slane %v1635_v2, 4  ;;  %v2401_v61 = vsel %vm8107_vm13, %v6642_v50, %v2400_v45  ;;  %v2283_v57 = vld [vmem:[#allocation2 + $0x4c] sm:$0xf] }
  0xa8   : > { %v2402_v10 = vrot.slane %v2400_v45, 4  ;;  %v1631_v39 = vsel %vm8151_vm7, %v1626_v37, %v1630_v22  ;;  %v1645_v62 = vrot.slane %v1643_v13, 4  ;;  %v1648_v26 = vrot.slane %v1646_v8, 5  ;;  %v1489_v38 = vld [vmem:[#allocation2 + $0x48] sm:$0xf] }
  0xa9   : > { %v1652_v16 = vshll.u32 %v1487_v55, 16  ;;  %7265 = vmatprep.mubr.msk.bf16.mxu0 %vm1225_vm5, %v6658_v33  ;;  %v1641_v23 = vsel %vm8151_vm7, %v1636_v54, %v1640_v25  ;;  %v1656_v6 = vshrl.u32 %v1487_v55, 16  ;;  %v1080_v24 = vsel %vm7775_vm4, 0, %v1079_v9  ;;  %v1490_v43 = vld [vmem:[#allocation2 + $0x4c] sm:$0xf] }
  0xaa   : > { %v6643_v52 = vrot.slane %v2282_v48, 9  ;;  %v6609_v28 = vcombine.low %v1631_v39, %v1641_v23  ;;  %v1649_v11 = vor.u32 %v1648_v26, %v1645_v62  ;;  %1081 = vst [vmem:[#allocation2 + $0x50] sm:$0x1] %v1080_v24  ;;  %v2407_v7 = vrot.slane %v2283_v57, 5  ;;  %v2285_v42 = vld [vmem:[#allocation2 + $0x54] sm:$0xe]  ;;  %7228 = vmatmul.mubr.msk.bf16.gmra.mxu1 %vm1225_vm5, %v6608_v32 }
  0xab   : > { %v1654_v53 = vrot.slane %v1652_v16, 5  ;;  %v2281_v40 = vld [vmem:[#allocation2 + $0x44] sm:$0x1]  ;;  %v1658_v35 = vrot.slane %v1656_v6, 4  ;;  %v1667_v59 = vshrl.u32 %v1489_v38, 16  ;;  %v977_v22 = vsel %vm7845_vm3, %v771_v0, %v976_v36 }
  0xac   : > { %v1488_v41 = vld [vmem:[#allocation2 + $0x44] sm:$0x1]  ;;  %v984_v34 = vsel %vm7845_vm3, %v788_v4, %v983_v49  ;;  %v2403_v21 = vrot.slane %v2281_v40, 5  ;;  %v1650_v47 = vrot.slane %v1649_v11, 4  ;;  %v2408_v12 = vsel %vm8107_vm13, %v6643_v52, %v2407_v7  ;;  %v2286_v20 = vld [vmem:[#allocation2 + $0x58] sm:$0xf]  ;;  %7231 = vmatprep.mubr.msk.bf16.mxu1 %vm1225_vm5, %v6609_v28 }
  0xad   : > { %v1662_v63 = vshll.u32 %v1488_v41, 16  ;;  %978 = vst [vmem:[#allocation2 + $0x98] sm:$0x1] %v977_v22  ;;  %985 = vst [vmem:[#allocation2 + $0xa4] sm:$0x1] %v984_v34  ;;  %v1659_v56 = vor.u32 %v1658_v35, %v1654_v53  ;;  %v2409_v0 = vrot.slane %v2407_v7, 4 }
  0xae   : > { %v1669_v46 = vrot.slane %v1667_v59, 4  ;;  %v1670_v58 = vshll.u32 %v1489_v38, 16  ;;  %v1082_v29 = vld [vmem:[#allocation2 + $0x5c] sm:$0x1]  ;;  %v2404_v4 = vsel %vm8107_vm13, %v2402_v10, %v2403_v21  ;;  %v1655_v32 = vsel %vm8151_vm7, %v1650_v47, %v1654_v53  ;;  %v1492_v55 = vld [vmem:[#allocation2 + $0x54] sm:$0xf] }
  0xaf   : > { %v1664_v18 = vrot.slane %v1662_v63, 5  ;;  %v1676_v30 = vshll.u32 %v1490_v43, 16  ;;  %v6659_v2 = vcombine.low %v2401_v61, %v2404_v4  ;;  %v1660_v50 = vrot.slane %v1659_v56, 4  ;;  %v1493_v8 = vld [vmem:[#allocation2 + $0x58] sm:$0xf] }
  0xb0   : > { %v1672_v45 = vrot.slane %v1670_v58, 5  ;;  %v1680_v13 = vshrl.u32 %v1490_v43, 16  ;;  %v1083_v15 = vsel %vm7775_vm4, 0, %v1082_v29  ;;  %v6644_v37 = vrot.slane %v2285_v42, 9  ;;  %v1085_v10 = vld [vmem:[#allocation2 + $0x68] sm:$0x1] }
  0xb1   : > { %v1678_v48 = vrot.slane %v1676_v30, 5  ;;  %v2414_v25 = vrot.slane %v2286_v20, 5  ;;  %7266 = vmatmul.mubr.msk.bf16.gmra.mxu0 %vm1225_vm5, %v6659_v2  ;;  %v1665_v9 = vsel %vm8151_vm7, %v1660_v50, %v1664_v18  ;;  %v2284_v36 = vld [vmem:[#allocation2 + $0x50] sm:$0x1]  ;;  %1084 = vst [vmem:[#allocation2 + $0x5c] sm:$0x1] %v1083_v15 }
  0xb2   : > { %v1491_v49 = vld [vmem:[#allocation2 + $0x50] sm:$0x1]  ;;  %v1673_v33 = vor.u32 %v1672_v45, %v1669_v46  ;;  %v1682_v54 = vrot.slane %v1680_v13, 4  ;;  %v1691_v61 = vshrl.u32 %v1492_v55, 16  ;;  %v6610_v57 = vcombine.low %v1655_v32, %v1665_v9  ;;  %v2289_v16 = vld [vmem:[#allocation2 + $0x64] sm:$0xf] }
  0xb3   : > { %v2410_v39 = vrot.slane %v2284_v36, 5  ;;  %v1686_v62 = vshll.u32 %v1491_v49, 16  ;;  %v2415_v26 = vsel %vm8107_vm13, %v6644_v37, %v2414_v25  ;;  %v2416_v6 = vrot.slane %v2414_v25, 4  ;;  %v2288_v52 = vld [vmem:[#allocation2 + $0x60] sm:$0xe] }
  0xb4   : > { %v1674_v38 = vrot.slane %v1673_v33, 4  ;;  %v1683_v23 = vor.u32 %v1682_v54, %v1678_v48  ;;  %v1693_v24 = vrot.slane %v1691_v61, 4  ;;  %7232 = vmatmul.mubr.msk.bf16.gmra.mxu1 %vm1225_vm5, %v6610_v57  ;;  %v1694_v53 = vshll.u32 %v1492_v55, 16  ;;  %v1495_v43 = vld [vmem:[#allocation2 + $0x60] sm:$0xf] }
  0xb5   : > { %v2411_v28 = vsel %vm8107_vm13, %v2409_v0, %v2410_v39  ;;  %v1688_v11 = vrot.slane %v1686_v62, 5  ;;  %v1700_v7 = vshll.u32 %v1493_v8, 16  ;;  %v1704_v59 = vshrl.u32 %v1493_v8, 16  ;;  %v1496_v42 = vld [vmem:[#allocation2 + $0x64] sm:$0xf] }
  0xb6   : > { %v6660_v40 = vcombine.low %v2408_v12, %v2411_v28  ;;  %v1679_v41 = vsel %vm8151_vm7, %v1674_v38, %v1678_v48  ;;  %v1684_v35 = vrot.slane %v1683_v23, 4  ;;  %v1696_v22 = vrot.slane %v1694_v53, 5  ;;  %v2292_v18 = vld [vmem:[#allocation2 + $0x70] sm:$0xf]  ;;  %v2291_v45 = vld [vmem:[#allocation2 + $0x6c] sm:$0xe] }
  0xb7   : > { %v1702_v34 = vrot.slane %v1700_v7, 5  ;;  %v1086_v21 = vsel %vm7775_vm4, 0, %v1085_v10  ;;  %v6645_v47 = vrot.slane %v2288_v52, 9  ;;  %v1706_v20 = vrot.slane %v1704_v59, 4  ;;  %v990_v13 = vld [vmem:[#allocation2 + $0xb0] sm:$0x1] }
  0xb8   : > { %7269 = vmatprep.mubr.msk.bf16.mxu0 %vm1225_vm5, %v6660_v40  ;;  %v1689_v63 = vsel %vm8151_vm7, %v1684_v35, %v1688_v11  ;;  %1087 = vst [vmem:[#allocation2 + $0x68] sm:$0x1] %v1086_v21  ;;  %v2421_v12 = vrot.slane %v2289_v16, 5  ;;  %v1715_v56 = vshrl.u32 %v1495_v43, 16  ;;  %v2287_v46 = vld [vmem:[#allocation2 + $0x5c] sm:$0x1]  ;;  %v1697_v29 = vor.u32 %v1696_v22, %v1693_v24 }
  0xb9   : > { %v6611_v0 = vcombine.low %v1679_v41, %v1689_v63  ;;  %v1494_v58 = vld [vmem:[#allocation2 + $0x5c] sm:$0x1]  ;;  %v1718_v4 = vshll.u32 %v1495_v43, 16  ;;  %v1724_v32 = vshll.u32 %v1496_v42, 16  ;;  %v2417_v30 = vrot.slane %v2287_v46, 5 }
  0xba   : > { %v1707_v55 = vor.u32 %v1706_v20, %v1702_v34  ;;  %v1710_v2 = vshll.u32 %v1494_v58, 16  ;;  %v2422_v50 = vsel %vm8107_vm13, %v6645_v47, %v2421_v12  ;;  %v1698_v48 = vrot.slane %v1697_v29, 4  ;;  %v1088_v8 = vld [vmem:[#allocation2 + $0x74] sm:$0x1]  ;;  %v1499_v39 = vld [vmem:[#allocation2 + $0x70] sm:$0xf] }
  0xbb   : > { %7235 = vmatprep.mubr.msk.bf16.mxu1 %vm1225_vm5, %v6611_v0  ;;  %v2423_v15 = vrot.slane %v2421_v12, 4  ;;  %v1717_v37 = vrot.slane %v1715_v56, 4  ;;  %v1720_v25 = vrot.slane %v1718_v4, 5  ;;  %v2418_v9 = vsel %vm8107_vm13, %v2416_v6, %v2417_v30  ;;  %v1498_v24 = vld [vmem:[#allocation2 + $0x6c] sm:$0xf] }
  0xbc   : > { %v1708_v36 = vrot.slane %v1707_v55, 4  ;;  %v1712_v49 = vrot.slane %v1710_v2, 5  ;;  %v1726_v33 = vrot.slane %v1724_v32, 5  ;;  %v6661_v54 = vcombine.low %v2415_v26, %v2418_v9  ;;  %v2294_v53 = vld [vmem:[#allocation2 + $0x78] sm:$0xe] }
  0xbd   : > { %v1703_v61 = vsel %vm8151_vm7, %v1698_v48, %v1702_v34  ;;  %v1721_v10 = vor.u32 %v1720_v25, %v1717_v37  ;;  %v1728_v57 = vshrl.u32 %v1496_v42, 16  ;;  %v1089_v16 = vsel %vm7775_vm4, 0, %v1088_v8  ;;  %v1091_v59 = vld [vmem:[#allocation2 + $0x80] sm:$0x1]  ;;  %v2295_v42 = vld [vmem:[#allocation2 + $0x7c] sm:$0xf] }
  0xbe   : > { %v1713_v62 = vsel %vm8151_vm7, %v1708_v36, %v1712_v49  ;;  %v6646_v38 = vrot.slane %v2291_v45, 9  ;;  %v2428_v23 = vrot.slane %v2292_v18, 5  ;;  %7270 = vmatmul.mubr.msk.bf16.gmra.mxu0 %vm1225_vm5, %v6661_v54  ;;  %1090 = vst [vmem:[#allocation2 + $0x74] sm:$0x1] %v1089_v16  ;;  %v991_v7 = vsel %vm7845_vm3, %v805_v51, %v990_v13  ;;  %v1501_v12 = vld [vmem:[#allocation2 + $0x78] sm:$0xf] }
  0xbf   : > { %v6612_v6 = vcombine.low %v1703_v61, %v1713_v62  ;;  %v2290_v52 = vld [vmem:[#allocation2 + $0x68] sm:$0x1]  ;;  %v1722_v28 = vrot.slane %v1721_v10, 4  ;;  %v1730_v11 = vrot.slane %v1728_v57, 4  ;;  %992 = vst [vmem:[#allocation2 + $0xb0] sm:$0x1] %v991_v7 }
  0xc0   : > { %v1497_v26 = vld [vmem:[#allocation2 + $0x68] sm:$0x1]  ;;  %v2424_v43 = vrot.slane %v2290_v52, 5  ;;  %v8362_v41 = vsel %vm8107_vm13, %v6646_v38, %v2428_v23  ;;  %v2430_v35 = vrot.slane %v2428_v23, 4  ;;  %v1739_v14 = vshrl.u32 %v1498_v24, 16 }
  0xc1   : > { %v1734_v40 = vshll.u32 %v1497_v26, 16  ;;  %7236 = vmatmul.mubr.msk.bf16.gmra.mxu1 %vm1225_vm5, %v6612_v6  ;;  %v1727_v22 = vsel %vm8151_vm7, %v1722_v28, %v1726_v33  ;;  %v1731_v34 = vor.u32 %v1730_v11, %v1726_v33  ;;  %v1742_v21 = vshll.u32 %v1498_v24, 16  ;;  %v1502_v29 = vld [vmem:[#allocation2 + $0x7c] sm:$0xf]  ;;  %v2297_v9 = vld [vmem:[#allocation2 + $0x84] sm:$0xe] }
  0xc2   : > { %v2425_v51 = vsel %vm8107_vm13, %v2423_v15, %v2424_v43  ;;  %v1748_v63 = vshll.u32 %v1499_v39, 16  ;;  %v1752_v20 = vshrl.u32 %v1499_v39, 16  ;;  %v1741_v46 = vrot.slane %v1739_v14, 4  ;;  %v2298_v36 = vld [vmem:[#allocation2 + $0x88] sm:$0xf] }
  0xc3   : > { %v1736_v47 = vrot.slane %v1734_v40, 5  ;;  %v6662_v56 = vcombine.low %v2422_v50, %v2425_v51  ;;  %v1732_v0 = vrot.slane %v1731_v34, 4  ;;  %v1744_v58 = vrot.slane %v1742_v21, 5  ;;  %v1094_v10 = vld [vmem:[#allocation2 + $0x8c] sm:$0x1] }
  0xc4   : > { %v1750_v4 = vrot.slane %v1748_v63, 5  ;;  %v1754_v32 = vrot.slane %v1752_v20, 4  ;;  %v1092_v18 = vsel %vm7775_vm4, 0, %v1091_v59  ;;  %v6647_v30 = vrot.slane %v2294_v53, 9  ;;  %v997_v57 = vld [vmem:[#allocation2 + $0xbc] sm:$0x1] }
  0xc5   : > { %7273 = vmatprep.mubr.msk.bf16.mxu0 %vm1225_vm5, %v6662_v56  ;;  %v1737_v55 = vsel %vm8151_vm7, %v1732_v0, %v1736_v47  ;;  %v1745_v2 = vor.u32 %v1744_v58, %v1741_v46  ;;  %1093 = vst [vmem:[#allocation2 + $0x80] sm:$0x1] %v1092_v18  ;;  %v2435_v45 = vrot.slane %v2295_v42, 5  ;;  %v1763_v13 = vshrl.u32 %v1501_v12, 16  ;;  %v2293_v48 = vld [vmem:[#allocation2 + $0x74] sm:$0x1] }
  0xc6   : > { %v6613_v50 = vcombine.low %v1727_v22, %v1737_v55  ;;  %v1500_v15 = vld [vmem:[#allocation2 + $0x74] sm:$0x1]  ;;  %v1755_v37 = vor.u32 %v1754_v32, %v1750_v4  ;;  %v1766_v25 = vshll.u32 %v1501_v12, 16  ;;  %v1772_v8 = vshll.u32 %v1502_v29, 16  ;;  %v1504_v23 = vld [vmem:[#allocation2 + $0x84] sm:$0xf] }
  0xc7   : > { %v2431_v49 = vrot.slane %v2293_v48, 5  ;;  %v1746_v33 = vrot.slane %v1745_v2, 4  ;;  %v1758_v54 = vshll.u32 %v1500_v15, 16  ;;  %v2436_v61 = vsel %vm8107_vm13, %v6647_v30, %v2435_v45  ;;  %v1505_v43 = vld [vmem:[#allocation2 + $0x88] sm:$0xf] }
  0xc8   : > { %7239 = vmatprep.mubr.msk.bf16.mxu1 %vm1225_vm5, %v6613_v50  ;;  %v1756_v39 = vrot.slane %v1755_v37, 4  ;;  %v2437_v62 = vrot.slane %v2435_v45, 4  ;;  %v1765_v16 = vrot.slane %v1763_v13, 4  ;;  %v1768_v38 = vrot.slane %v1766_v25, 5  ;;  %v2300_v51 = vld [vmem:[#allocation2 + $0x90] sm:$0xe] }
  0xc9   : > { %v2432_v24 = vsel %vm8107_vm13, %v2430_v35, %v2431_v49  ;;  %v1751_v6 = vsel %vm8151_vm7, %v1746_v33, %v1750_v4  ;;  %v1760_v52 = vrot.slane %v1758_v54, 5  ;;  %v1774_v26 = vrot.slane %v1772_v8, 5  ;;  %v2301_v47 = vld [vmem:[#allocation2 + $0x94] sm:$0xf]  ;;  %v1097_v46 = vld [vmem:[#allocation2 + $0x98] sm:$0x1] }
  0xca   : > { %v6663_v28 = vcombine.low %v8362_v41, %v2432_v24  ;;  %v1769_v11 = vor.u32 %v1768_v38, %v1765_v16  ;;  %v1776_v53 = vshrl.u32 %v1502_v29, 16  ;;  %v1095_v7 = vsel %vm7775_vm4, 0, %v1094_v10  ;;  %v1507_v58 = vld [vmem:[#allocation2 + $0x90] sm:$0xf]  ;;  %v2303_v16 = vld [vmem:[#allocation2 + $0x9c] sm:$0xe] }
  0xcb   : > { %v1761_v40 = vsel %vm8151_vm7, %v1756_v39, %v1760_v52  ;;  %1096 = vst [vmem:[#allocation2 + $0x8c] sm:$0x1] %v1095_v7  ;;  %v6648_v59 = vrot.slane %v2297_v9, 9  ;;  %v2442_v42 = vrot.slane %v2298_v36, 5  ;;  %v1787_v35 = vshrl.u32 %v1504_v23, 16  ;;  %v8409_v7 = vld [vmem:[%s7766_s13 + $0x78] sm:$0xff]  }
  0xcc   : > { %7274 = vmatmul.mubr.msk.bf16.gmra.mxu0 %vm1225_vm5, %v6663_v28  ;;  %v6614_v22 = vcombine.low %v1751_v6, %v1761_v40  ;;  %v2296_v34 = vld [vmem:[#allocation2 + $0x80] sm:$0x1]  ;;  %v1770_v21 = vrot.slane %v1769_v11, 4  ;;  %v1778_v41 = vrot.slane %v1776_v53, 4  ;;  %v998_v63 = vsel %vm7845_vm3, %v822_v27, %v997_v57  ;;  %v1100_v52 = vld [vmem:[#allocation2 + $0xa4] sm:$0x1] }
  0xcd   : > { %v1503_v14 = vld [vmem:[#allocation2 + $0x80] sm:$0x1]  ;;  %v2438_v20 = vrot.slane %v2296_v34, 5  ;;  %v2443_v56 = vsel %vm8107_vm13, %v6648_v59, %v2442_v42  ;;  %v2444_v0 = vrot.slane %v2442_v42, 4  ;;  %999 = vst [vmem:[#allocation2 + $0xbc] sm:$0x1] %v998_v63 }
  0xce   : > { %v1782_v12 = vshll.u32 %v1503_v14, 16  ;;  %7240 = vmatmul.mubr.msk.bf16.gmra.mxu1 %vm1225_vm5, %v6614_v22  ;;  %v1775_v29 = vsel %vm8151_vm7, %v1770_v21, %v1774_v26  ;;  %v1779_v4 = vor.u32 %v1778_v41, %v1774_v26  ;;  %v1789_v32 = vrot.slane %v1787_v35, 4  ;;  %v2304_v35 = vld [vmem:[#allocation2 + $0xa0] sm:$0xf]  ;;  %v1510_v41 = vld [vmem:[#allocation2 + $0x9c] sm:$0xf] }
  0xcf   : > { %v1790_v3 = vshll.u32 %v1504_v23, 16  ;;  %v2439_v27 = vsel %vm8107_vm13, %v2437_v62, %v2438_v20  ;;  %v1796_v30 = vshll.u32 %v1505_v43, 16  ;;  %v1800_v55 = vshrl.u32 %v1505_v43, 16  ;;  %v1508_v62 = vld [vmem:[#allocation2 + $0x94] sm:$0xf]  ;;  %s6468_s13 = sshll.u32 %s9944_s25, 4  ;;  %s10061_s13 = int_to_ptr.vmem [resolvable:$true] %s6468_s13 }
  0xd0   : > { %v1784_v18 = vrot.slane %v1782_v12, 5  ;;  %v6664_v2 = vcombine.low %v2436_v61, %v2439_v27  ;;  %v1780_v45 = vrot.slane %v1779_v4, 4  ;;  %v1098_v50 = vsel %vm7775_vm4, 0, %v1097_v46  ;;  %v4059_v60 = vld [vmem:[#allocation2 + $0x44] sm:$0x1]  ;;  %s7602_s8 = scalar_lea.vmem %s10061_s13, 4096  ;;  %p7609_p0 = scmp.lt.s32.totalorder %s10061_s13, %s7607_s10 }
  0xd1   : > { %v1792_v13 = vrot.slane %v1790_v3, 5  ;;  %v1798_v48 = vrot.slane %v1796_v30, 5  ;;  %v1802_v15 = vrot.slane %v1800_v55, 4  ;;  %1099 = vst [vmem:[#allocation2 + $0x98] sm:$0x1] %v1098_v50  ;;  %v6649_v37 = vrot.slane %v2300_v51, 9  ;;  %p7603_p11 = scmp.ne.s32.totalorder %s10061_s13, %s7602_s8  ;;  %p7610_p1 = scmp.lt.s32.totalorder %s7608_s11, %s7602_s8 }
  0xd2   : > { %v2449_v25 = vrot.slane %v2301_v47, 5  ;;  %7277 = vmatprep.mubr.msk.bf16.mxu0 %vm1225_vm5, %v6664_v2  ;;  %v1785_v8 = vsel %vm8151_vm7, %v1780_v45, %v1784_v18  ;;  %v2299_v9 = vld [vmem:[#allocation2 + $0x8c] sm:$0x1]  ;;  %v1811_v33 = vshrl.u32 %v1507_v58, 16  ;;  %v1814_v54 = vshll.u32 %v1507_v58, 16 }
  0xd3   : > { %v1506_v36 = vld [vmem:[#allocation2 + $0x8c] sm:$0x1]  ;;  %v1793_v49 = vor.u32 %v1792_v13, %v1789_v32  ;;  %v6615_v61 = vcombine.low %v1775_v29, %v1785_v8  ;;  %v2445_v10 = vrot.slane %v2299_v9, 5  ;;  %v1803_v57 = vor.u32 %v1802_v15, %v1798_v48  ;;  %v1511_v51 = vld [vmem:[#allocation2 + $0xa0] sm:$0xf]  ;;  %p7604_p12 = pnand %p7603_p11, %p7736_p5  ;;  %p7611_p2 = por %p7610_p1, %p7609_p0 }
  0xd4   : > { %v1806_v39 = vshll.u32 %v1506_v36, 16  ;;  %v2450_v23 = vsel %vm8107_vm13, %v6649_v37, %v2449_v25  ;;  %v2451_v24 = vrot.slane %v2449_v25, 4  ;;  %v1813_v6 = vrot.slane %v1811_v33, 4  ;;  %v2306_v32 = vld [vmem:[#allocation2 + $0xa8] sm:$0xe] }
  0xd5   : > { %v1794_v38 = vrot.slane %v1793_v49, 4  ;;  %7243 = vmatprep.mubr.msk.bf16.mxu1 %vm1225_vm5, %v6615_v61  ;;  %v2446_v26 = vsel %vm8107_vm13, %v2444_v0, %v2445_v10  ;;  %v1804_v28 = vrot.slane %v1803_v57, 4  ;;  %v1816_v53 = vrot.slane %v1814_v54, 5  ;;  %v1103_v55 = vld [vmem:[#allocation2 + $0xb0] sm:$0x1]  ;;  %p7605_p13 = pneg %p7604_p12 }
  0xd6   : > { %v1808_v11 = vrot.slane %v1806_v39, 5  ;;  %v6665_v43 = vcombine.low %v2443_v56, %v2446_v26  ;;  %v1820_v59 = vshll.u32 %v1508_v62, 16  ;;  %v1824_v42 = vshrl.u32 %v1508_v62, 16  ;;  %v1513_v15 = vld [vmem:[#allocation2 + $0xa8] sm:$0xf] }
  0xd7   : > { %v1799_v40 = vsel %vm8151_vm7, %v1794_v38, %v1798_v48  ;;  %v1817_v34 = vor.u32 %v1816_v53, %v1813_v6  ;;  %v1101_v14 = vsel %vm7775_vm4, 0, %v1100_v52  ;;  %v6650_v21 = vrot.slane %v2303_v16, 9  ;;  %v2307_v48 = vld [vmem:[#allocation2 + $0xac] sm:$0xf]  ;;  %p7612_p3 = pnand %p7611_p2, %p7605_p13 }
  0xd8   : > { %v1809_v22 = vsel %vm8151_vm7, %v1804_v28, %v1808_v11  ;;  %7278 = vmatmul.mubr.msk.bf16.gmra.mxu0 %vm1225_vm5, %v6665_v43  ;;  %v2302_v63 = vld [vmem:[#allocation2 + $0x98] sm:$0x1]  ;;  %v1822_v12 = vrot.slane %v1820_v59, 5  ;;  %v1826_v56 = vrot.slane %v1824_v42, 4  ;;  %1102 = vst [vmem:[#allocation2 + $0xa4] sm:$0x1] %v1101_v14  ;;  %v7017_v0 = vunpack.c.l.bf16 %v8409_v7 }
  0xd9   : > { %v6616_v47 = vcombine.low %v1799_v40, %v1809_v22  ;;  %v1509_v20 = vld [vmem:[#allocation2 + $0x98] sm:$0x1]  ;;  %v2452_v46 = vrot.slane %v2302_v63, 5  ;;  %v1818_v58 = vrot.slane %v1817_v34, 4  ;;  %v2456_v4 = vrot.slane %v2304_v35, 5 }
  0xda   : > { %v1830_v29 = vshll.u32 %v1509_v20, 16  ;;  %v1827_v3 = vor.u32 %v1826_v56, %v1822_v12  ;;  %v1835_v27 = vshrl.u32 %v1510_v41, 16  ;;  %v1838_v18 = vshll.u32 %v1510_v41, 16  ;;  %v1514_v39 = vld [vmem:[#allocation2 + $0xac] sm:$0xf] }
  0xdb   : > { %7244 = vmatmul.mubr.msk.bf16.gmra.mxu1 %vm1225_vm5, %v6616_v47  ;;  %v1844_v30 = vshll.u32 %v1511_v51, 16  ;;  %v2453_v2 = vsel %vm8107_vm13, %v2451_v24, %v2452_v46  ;;  %v1823_v45 = vsel %vm8151_vm7, %v1818_v58, %v1822_v12  ;;  %v2457_v50 = vsel %vm8107_vm13, %v6650_v21, %v2456_v4  ;;  %v2309_v43 = vld [vmem:[#allocation2 + $0xb4] sm:$0xe]  ;;  %v1106_v22 = vld [vmem:[#allocation2 + $0xbc] sm:$0x1] }
  0xdc   : > { %v1832_v13 = vrot.slane %v1830_v29, 5  ;;  %v6666_v37 = vcombine.low %v2450_v23, %v2453_v2  ;;  %v1828_v25 = vrot.slane %v1827_v3, 4  ;;  %v2458_v8 = vrot.slane %v2456_v4, 4  ;;  %v1516_v4 = vld [vmem:[#allocation2 + $0xb4] sm:$0xf] }
  0xdd   : > { %v1837_v9 = vrot.slane %v1835_v27, 4  ;;  %v1840_v36 = vrot.slane %v1838_v18, 5  ;;  %v1846_v49 = vrot.slane %v1844_v30, 5  ;;  %v1848_v33 = vshrl.u32 %v1511_v51, 16  ;;  %v2310_v51 = vld [vmem:[#allocation2 + $0xb8] sm:$0xf] }
  0xde   : > { %v1104_v54 = vsel %vm7775_vm4, 0, %v1103_v55  ;;  %7281 = vmatprep.mubr.msk.bf16.mxu0 %vm1225_vm5, %v6666_v37  ;;  %v1833_v61 = vsel %vm8151_vm7, %v1828_v25, %v1832_v13  ;;  %v6651_v10 = vrot.slane %v2306_v32, 9  ;;  %v2463_v57 = vrot.slane %v2307_v48, 5  ;;  %v1517_v48 = vld [vmem:[#allocation2 + $0xb8] sm:$0xf] }
  0xdf   : > { %1105 = vst [vmem:[#allocation2 + $0xb0] sm:$0x1] %v1104_v54  ;;  %v1859_v62 = vshrl.u32 %v1513_v15, 16  ;;  %v6617_v16 = vcombine.low %v1823_v45, %v1833_v61  ;;  %v2305_v38 = vld [vmem:[#allocation2 + $0xa4] sm:$0x1]  ;;  %v1841_v24 = vor.u32 %v1840_v36, %v1837_v9  ;;  %v1850_v6 = vrot.slane %v1848_v33, 4 }
  0xe0   : > { %v1512_v23 = vld [vmem:[#allocation2 + $0xa4] sm:$0x1]  ;;  %v1862_v52 = vshll.u32 %v1513_v15, 16  ;;  %v2459_v26 = vrot.slane %v2305_v38, 5  ;;  %v2464_v11 = vsel %vm8107_vm13, %v6651_v10, %v2463_v57  ;;  %v2465_v53 = vrot.slane %v2463_v57, 4 }
  0xe1   : > { %v1854_v28 = vshll.u32 %v1512_v23, 16  ;;  %7247 = vmatprep.mubr.msk.bf16.mxu1 %vm1225_vm5, %v6617_v16  ;;  %v1842_v40 = vrot.slane %v1841_v24, 4  ;;  %v1851_v59 = vor.u32 %v1850_v6, %v1846_v49  ;;  %v1861_v42 = vrot.slane %v1859_v62, 4  ;;  %v3255_v9 = vld [vmem:[#allocation2 + $0xc] sm:$0xf] }
  0xe2   : > { %v1864_v35 = vrot.slane %v1862_v52, 5  ;;  %v2460_v34 = vsel %vm8107_vm13, %v2458_v8, %v2459_v26  ;;  %v1868_v21 = vshll.u32 %v1514_v39, 16  ;;  %v1872_v41 = vshrl.u32 %v1514_v39, 16  ;;  %v3256_v61 = vld [vmem:[#allocation2 + $0x10] sm:$0xf] }
  0xe3   : > { %v1856_v14 = vrot.slane %v1854_v28, 5  ;;  %v6667_v47 = vcombine.low %v2457_v50, %v2460_v34  ;;  %v1847_v63 = vsel %vm8151_vm7, %v1842_v40, %v1846_v49  ;;  %v1852_v20 = vrot.slane %v1851_v59, 4  ;;  %v3258_v6 = vld [vmem:[#allocation2 + $0x18] sm:$0xf] }
  0xe4   : > { %v1865_v12 = vor.u32 %v1864_v35, %v1861_v42  ;;  %v1870_v56 = vrot.slane %v1868_v21, 5  ;;  %v1874_v46 = vrot.slane %v1872_v41, 4  ;;  %v1107_v58 = vsel %vm7775_vm4, 0, %v1106_v22  ;;  %v8457_v22 = vld [vmem:[%s10109_s2] ss:$0 sm:$0xff] }
  0xe5   : > { %v6652_v29 = vrot.slane %v2309_v43, 9  ;;  %7282 = vmatmul.mubr.msk.bf16.gmra.mxu0 %vm1225_vm5, %v6667_v47  ;;  %v1857_v32 = vsel %vm8151_vm7, %v1852_v20, %v1856_v14  ;;  %1108 = vst [vmem:[#allocation2 + $0xbc] sm:$0x1] %v1107_v58  ;;  %v2470_v30 = vrot.slane %v2310_v51, 5  ;;  %v7018_v55 = vunpack.c.h.bf16 %v8409_v7 }
  0xe6   : > { %v2308_v3 = vld [vmem:[#allocation2 + $0xb0] sm:$0x1]  ;;  %v1866_v18 = vrot.slane %v1865_v12, 4  ;;  %v6618_v2 = vcombine.low %v1847_v63, %v1857_v32  ;;  %v1875_v13 = vor.u32 %v1874_v46, %v1870_v56  ;;  %v1883_v8 = vshrl.u32 %v1516_v4, 16 }
  0xe7   : > { %v1515_v27 = vld [vmem:[#allocation2 + $0xb0] sm:$0x1]  ;;  %v2466_v45 = vrot.slane %v2308_v3, 5  ;;  %v2471_v37 = vsel %vm8107_vm13, %v6652_v29, %v2470_v30  ;;  %v2472_v25 = vrot.slane %v2470_v30, 4  ;;  %v1886_v54 = vshll.u32 %v1516_v4, 16 }
  0xe8   : > { %v1878_v50 = vshll.u32 %v1515_v27, 16  ;;  %v1871_v15 = vsel %vm8151_vm7, %v1866_v18, %v1870_v56  ;;  %7248 = vmatmul.mubr.msk.bf16.gmra.mxu1 %vm1225_vm5, %v6618_v2  ;;  %v1876_v49 = vrot.slane %v1875_v13, 4  ;;  %v1885_v57 = vrot.slane %v1883_v8, 4  ;;  %v3259_v29 = vld [vmem:[#allocation2 + $0x1c] sm:$0xf] }
  0xe9   : > { %v2467_v36 = vsel %vm8107_vm13, %v2465_v53, %v2466_v45  ;;  %v1892_v39 = vshll.u32 %v1517_v48, 16  ;;  %v1896_v62 = vshrl.u32 %v1517_v48, 16  ;;  %v1888_v38 = vrot.slane %v1886_v54, 5  ;;  %v3257_v53 = vld [vmem:[#allocation2 + $0x14] sm:$0x1]  ;;  %v7563_v45 = vld [vmem:[#allocation2 + $0xc] sm:$0xff]  }
  0xea   : > { %v1880_v33 = vrot.slane %v1878_v50, 5  ;;  %v6668_v10 = vcombine.low %v2464_v11, %v2467_v36  ;;  %v3304_v23 = vshrl.u32 %v3255_v9, 16  ;;  %v3307_v24 = vshll.u32 %v3255_v9, 16  ;;  %v3260_v18 = vld [vmem:[#allocation2 + $0x20] sm:$0x1] }
  0xeb   : > { %v1894_v26 = vrot.slane %v1892_v39, 5  ;;  %v1898_v28 = vrot.slane %v1896_v62, 4  ;;  %v3313_v43 = vshll.u32 %v3256_v61, 16  ;;  %v1889_v11 = vor.u32 %v1888_v38, %v1885_v57  ;;  %v3261_v48 = vld [vmem:[#allocation2 + $0x24] sm:$0xf] }
  0xec   : > { %v1881_v16 = vsel %vm8151_vm7, %v1876_v49, %v1880_v33  ;;  %7285 = vmatprep.mubr.msk.bf16.mxu0 %vm1225_vm5, %v6668_v10  ;;  %v2311_v40 = vld [vmem:[#allocation2 + $0xbc] sm:$0x1]  ;;  %v3306_v42 = vrot.slane %v3304_v23, 4  ;;  %v3309_v35 = vrot.slane %v3307_v24, 5  ;;  %v8462_v34 = vmul.f32 %v8457_v22, %v7017_v0  ;;  %v3262_v54 = vld [vmem:[#allocation2 + $0x28] sm:$0xf] }
  0xed   : > { %v6619_v52 = vcombine.low %v1871_v15, %v1881_v16  ;;  %v1518_v59 = vld [vmem:[#allocation2 + $0xbc] sm:$0x1]  ;;  %v2473_v14 = vrot.slane %v2311_v40, 5  ;;  %v1899_v21 = vor.u32 %v1898_v28, %v1894_v26  ;;  %v3315_v51 = vrot.slane %v3313_v43, 5  ;;  %v7599_v57 = vld [vmem:[%s10108_s1 + $0xc] sm:$0x3] }
  0xee   : > { %v1902_v41 = vshll.u32 %v1518_v59, 16  ;;  %v1890_v47 = vrot.slane %v1889_v11, 4  ;;  %v3310_v63 = vor.u32 %v3309_v35, %v3306_v42  ;;  %v3317_v20 = vshrl.u32 %v3256_v61, 16  ;;  %v3264_v16 = vld [vmem:[#allocation2 + $0x30] sm:$0xf]  ;;  %v7564_v35 = vld [vmem:[#allocation2 + $0x18] sm:$0xff]  }
  0xef   : > { %7251 = vmatprep.mubr.msk.bf16.mxu1 %vm1225_vm5, %v6619_v52  ;;  %v3323_v12 = vshll.u32 %v3257_v53, 16  ;;  %v2474_v56 = vsel %vm8107_vm13, %v2472_v25, %v2473_v14  ;;  %v1900_v46 = vrot.slane %v1899_v21, 4  ;;  %v3328_v4 = vshrl.u32 %v3258_v6, 16  ;;  %v3265_v42 = vld [vmem:[#allocation2 + $0x34] sm:$0xf] }
  0xf0   : > { %v1904_v58 = vrot.slane %v1902_v41, 5  ;;  %v6669_v32 = vcombine.low %v2471_v37, %v2474_v56  ;;  %v1895_v0 = vsel %vm8151_vm7, %v1890_v47, %v1894_v26  ;;  %v3311_v3 = vrot.slane %v3310_v63, 4  ;;  %v3266_v56 = vld [vmem:[#allocation2 + $0x38] sm:$0x1] }
  0xf1   : > { %v3319_v27 = vrot.slane %v3317_v20, 4  ;;  %v3325_v2 = vrot.slane %v3323_v12, 5  ;;  %v3330_v13 = vrot.slane %v3328_v4, 4  ;;  %v3331_v50 = vshll.u32 %v3258_v6, 16  ;;  %v3263_v6 = vld [vmem:[#allocation2 + $0x2c] sm:$0x1] }
  0xf2   : > { %v1905_v30 = vsel %vm8151_vm7, %v1900_v46, %v1904_v58  ;;  %7286 = vmatmul.mubr.msk.bf16.gmra.mxu0 %vm1225_vm5, %v6669_v32  ;;  %v3316_v37 = vsel %vm8151_vm7, %v3311_v3, %v3315_v51  ;;  %v3337_v8 = vshll.u32 %v3259_v29, 16  ;;  %v3341_v36 = vshrl.u32 %v3259_v29, 16  ;;  %v3267_v58 = vld [vmem:[#allocation2 + $0x3c] sm:$0xf]  ;;  %v3268_v3 = vld [vmem:[#allocation2 + $0x40] sm:$0xf] }
  0xf3   : > { %v6620_v15 = vcombine.low %v1895_v0, %v1905_v30  ;;  %v3320_v25 = vor.u32 %v3319_v27, %v3315_v51  ;;  %v3333_v9 = vrot.slane %v3331_v50, 5  ;;  %v3347_v49 = vshll.u32 %v3260_v18, 16  ;;  %v7565_v51 = vld [vmem:[#allocation2 + $0x24] sm:$0xff]  }
  0xf4   : > { %v4352_v33 = vsel %vm1274_vm0, %v8285_v19, 0  ;;  %v3339_v10 = vrot.slane %v3337_v8, 5  ;;  %v4775_v39 = vsel %vm1274_vm0, %v7599_v57, 0  ;;  %v3352_v62 = vshrl.u32 %v3261_v48, 16  ;;  %v3270_v57 = vld [vmem:[#allocation2 + $0x48] sm:$0xf] }
  0xf5   : > { %7252 = vmatmul.mubr.msk.bf16.gmra.mxu1 %vm1225_vm5, %v6620_v15  ;;  %v3321_v61 = vrot.slane %v3320_v25, 4  ;;  %v3334_v38 = vor.u32 %v3333_v9, %v3330_v13  ;;  %v3343_v23 = vrot.slane %v3341_v36, 4  ;;  %v3349_v24 = vrot.slane %v3347_v49, 5  ;;  %v3269_v9 = vld [vmem:[#allocation2 + $0x44] sm:$0x1] }
  0xf6   : > { %7291 = vmatprep.mubr.msk.bf16.mxu1 %vm1225_vm5, %v7563_v45  ;;  %v3355_v19 = vshll.u32 %v3261_v48, 16  ;;  %v3354_v26 = vrot.slane %v3352_v62, 4  ;;  %v3361_v28 = vshll.u32 %v3262_v54, 16  ;;  %v3365_v53 = vshrl.u32 %v3262_v54, 16  ;;  %v8492_v45 = vld [vmem:[%s10108_s1 + $0xe] sm:$0x3] }
  0xf7   : > { %v3326_v52 = vsel %vm8151_vm7, %v3321_v61, %v3325_v2  ;;  %v3335_v40 = vrot.slane %v3334_v38, 4  ;;  %v3344_v59 = vor.u32 %v3343_v23, %v3339_v10  ;;  %v3371_v41 = vshll.u32 %v3263_v6, 16  ;;  %v8501_v49 = vld [vmem:[%s10108_s1 + $0x10] sm:$0x3] }
  0xf8   : > { %v6720_v43 = vcombine.low %v3316_v37, %v3326_v52  ;;  %v3357_v11 = vrot.slane %v3355_v19, 5  ;;  %v3363_v14 = vrot.slane %v3361_v28, 5  ;;  %v3367_v21 = vrot.slane %v3365_v53, 4  ;;  %v7566_v6 = vld [vmem:[#allocation2 + $0x30] sm:$0xff]  }
  0xf9   : > { %v3376_v47 = vshrl.u32 %v3264_v16, 16  ;;  %v3340_v63 = vsel %vm8151_vm7, %v3335_v40, %v3339_v10  ;;  %v3345_v20 = vrot.slane %v3344_v59, 4  ;;  %v3379_v46 = vshll.u32 %v3264_v16, 16 }
  0xfa   : > { %7325 = vmatprep.mubr.msk.bf16.mxu0 %vm1225_vm5, %v6720_v43  ;;  %v3358_v12 = vor.u32 %v3357_v11, %v3354_v26  ;;  %v3368_v29 = vor.u32 %v3367_v21, %v3363_v14  ;;  %v3373_v4 = vrot.slane %v3371_v41, 5  ;;  %v3385_v0 = vshll.u32 %v3265_v42, 16  ;;  %v3273_v11 = vld [vmem:[#allocation2 + $0x54] sm:$0xf]  ;;  %v3272_v21 = vld [vmem:[#allocation2 + $0x50] sm:$0x1] }
  0xfb   : > { %v3378_v32 = vrot.slane %v3376_v47, 4  ;;  %v3350_v27 = vsel %vm8151_vm7, %v3345_v20, %v3349_v24  ;;  %v3381_v30 = vrot.slane %v3379_v46, 5  ;;  %v3389_v2 = vshrl.u32 %v3265_v42, 16  ;;  %v3271_v24 = vld [vmem:[#allocation2 + $0x4c] sm:$0xf] }
  0xfc   : > { %v3359_v18 = vrot.slane %v3358_v12, 4  ;;  %v6721_v13 = vcombine.low %v3340_v63, %v3350_v27  ;;  %v3369_v50 = vrot.slane %v3368_v29, 4  ;;  %v3387_v48 = vrot.slane %v3385_v0, 5  ;;  %v3274_v12 = vld [vmem:[#allocation2 + $0x58] sm:$0xf] }
  0xfd   : > { %7292 = vmatmul.mubr.msk.bf16.vlgmr.msra.gmra.mxu1 %vm1225_vm5, %v7564_v35  ;;  %v3395_v15 = vshll.u32 %v3266_v56, 16  ;;  %v3382_v25 = vor.u32 %v3381_v30, %v3378_v32  ;;  %v3391_v8 = vrot.slane %v3389_v2, 4  ;;  %v3400_v36 = vshrl.u32 %v3267_v58, 16  ;;  %v3275_v30 = vld [vmem:[#allocation2 + $0x5c] sm:$0x1] }
  0xfe   : > { %7358 = vmatpush3.bf16.msra.mxu1 %v4352_v33  ;;  %v3364_v37 = vsel %vm8151_vm7, %v3359_v18, %v3363_v14  ;;  %7295 = vmatprep.mubr.msk.bf16.mxu1 %vm1225_vm5, %v7565_v51  ;;  %v3374_v54 = vsel %vm8151_vm7, %v3369_v50, %v3373_v4  ;;  %v3403_v61 = vshll.u32 %v3267_v58, 16  ;;  %v3409_v10 = vshll.u32 %v3268_v3, 16 }
  0xff   : > { %7326 = vmatmul.mubr.msk.bf16.vlgmr.msra.gmra.mxu0 %vm1225_vm5, %v6721_v13  ;;  %v3397_v33 = vrot.slane %v3395_v15, 5  ;;  %7503 = vmatprep.subr.msk.bf16.mxu1 %vm1274_vm0, %v8492_v45  ;;  %v6722_v62 = vcombine.low %v3364_v37, %v3374_v54  ;;  %v3383_v16 = vrot.slane %v3382_v25, 4  ;;  %v3392_v38 = vor.u32 %v3391_v8, %v3387_v48  ;;  %v3276_v25 = vld [vmem:[#allocation2 + $0x60] sm:$0xf] }
 0x100   : > { %7392 = vmatpush3.bf16.msra.mxu0 %v4775_v39  ;;  %v3402_v23 = vrot.slane %v3400_v36, 4  ;;  %v3405_v19 = vrot.slane %v3403_v61, 5  ;;  %v3411_v52 = vrot.slane %v3409_v10, 5  ;;  %v3413_v26 = vshrl.u32 %v3268_v3, 16  ;;  %v7567_v39 = vld [vmem:[#allocation2 + $0x3c] sm:$0xff]  }
 0x101   : > { %v3419_v28 = vshll.u32 %v3269_v9, 16  ;;  %7504 = vmatprep.subr.msk.bf16.mxu0 %vm1274_vm0, %v8501_v49  ;;  %7329 = vmatprep.mubr.msk.bf16.mxu0 %vm1225_vm5, %v6722_v62  ;;  %v3388_v53 = vsel %vm8151_vm7, %v3383_v16, %v3387_v48  ;;  %v3393_v43 = vrot.slane %v3392_v38, 4  ;;  %v3424_v40 = vshrl.u32 %v3270_v57, 16  ;;  %v7568_v9 = vld [vmem:[#allocation2 + $0x48] sm:$0xff]   ;;  %v3277_v61 = vld [vmem:[#allocation2 + $0x64] sm:$0xf] }
 0x102   : > { %v3427_v59 = vshll.u32 %v3270_v57, 16  ;;  %v3406_v42 = vor.u32 %v3405_v19, %v3402_v23  ;;  %v3415_v35 = vrot.slane %v3413_v26, 4  ;;  %v3433_v41 = vshll.u32 %v3271_v24, 16  ;;  %v7569_v38 = vld [vmem:[#allocation2 + $0x54] sm:$0xff]  }
 0x103   : > { %v3421_v14 = vrot.slane %v3419_v28, 5  ;;  %v3398_v51 = vsel %vm8151_vm7, %v3393_v43, %v3397_v33  ;;  %v3426_v47 = vrot.slane %v3424_v40, 4  ;;  %v3437_v20 = vshrl.u32 %v3271_v24, 16 }
 0x104   : > { %v3429_v63 = vrot.slane %v3427_v59, 5  ;;  %v6723_v56 = vcombine.low %v3388_v53, %v3398_v51  ;;  %v3407_v46 = vrot.slane %v3406_v42, 4  ;;  %v3416_v58 = vor.u32 %v3415_v35, %v3411_v52  ;;  %v3280_v35 = vld [vmem:[#allocation2 + $0x70] sm:$0xf] }
 0x105   : > { %7296 = vmatmul.mubr.msk.bf16.gmra.mxu1 %vm1225_vm5, %v7566_v6  ;;  %v3435_v29 = vrot.slane %v3433_v41, 5  ;;  %v3439_v32 = vrot.slane %v3437_v20, 4  ;;  %v3443_v0 = vshll.u32 %v3272_v21, 16  ;;  %v3448_v3 = vshrl.u32 %v3273_v11, 16  ;;  %v3278_v6 = vld [vmem:[#allocation2 + $0x68] sm:$0x1] }
 0x106   : > { %7299 = vmatprep.mubr.msk.bf16.mxu1 %vm1225_vm5, %v7567_v39  ;;  %v3430_v4 = vor.u32 %v3429_v63, %v3426_v47  ;;  %v3412_v27 = vsel %vm8151_vm7, %v3407_v46, %v3411_v52  ;;  %v3417_v18 = vrot.slane %v3416_v58, 4  ;;  %v3451_v2 = vshll.u32 %v3273_v11, 16  ;;  %v3279_v39 = vld [vmem:[#allocation2 + $0x6c] sm:$0xf] }
 0x107   : > { %7330 = vmatmul.mubr.msk.bf16.gmra.mxu0 %vm1225_vm5, %v6723_v56  ;;  %v3457_v13 = vshll.u32 %v3274_v12, 16  ;;  %v3440_v48 = vor.u32 %v3439_v32, %v3435_v29  ;;  %v3445_v15 = vrot.slane %v3443_v0, 5  ;;  %v3450_v37 = vrot.slane %v3448_v3, 4  ;;  %v3282_v32 = vld [vmem:[#allocation2 + $0x78] sm:$0xf]  ;;  %v7570_v3 = vld [vmem:[#allocation2 + $0x60] sm:$0xff]  }
 0x108   : > { %v3431_v50 = vrot.slane %v3430_v4, 4  ;;  %v3422_v8 = vsel %vm8151_vm7, %v3417_v18, %v3421_v14  ;;  %v3453_v36 = vrot.slane %v3451_v2, 5  ;;  %v3461_v33 = vshrl.u32 %v3274_v12, 16  ;;  %v3283_v2 = vld [vmem:[#allocation2 + $0x7c] sm:$0xf] }
 0x109   : > { %v3459_v54 = vrot.slane %v3457_v13, 5  ;;  %v6724_v10 = vcombine.low %v3412_v27, %v3422_v8  ;;  %v3441_v62 = vrot.slane %v3440_v48, 4  ;;  %v3467_v16 = vshll.u32 %v3275_v30, 16 }
 0x10a   : > { %v3436_v57 = vsel %vm8151_vm7, %v3431_v50, %v3435_v29  ;;  %v3454_v23 = vor.u32 %v3453_v36, %v3450_v37  ;;  %v3463_v24 = vrot.slane %v3461_v33, 4  ;;  %v3472_v19 = vshrl.u32 %v3276_v25, 16  ;;  %v3281_v29 = vld [vmem:[#allocation2 + $0x74] sm:$0x1]  ;;  %v7571_v37 = vld [vmem:[#allocation2 + $0x6c] sm:$0xff]  }
 0x10b   : > { %v3475_v52 = vshll.u32 %v3276_v25, 16  ;;  %7333 = vmatprep.mubr.msk.bf16.mxu0 %vm1225_vm5, %v6724_v10  ;;  %v3446_v26 = vsel %vm8151_vm7, %v3441_v62, %v3445_v15  ;;  %v3469_v28 = vrot.slane %v3467_v16, 5  ;;  %v3481_v53 = vshll.u32 %v3277_v61, 16  ;;  %v3285_v62 = vld [vmem:[#allocation2 + $0x84] sm:$0xf] }
 0x10c   : > { %v3485_v43 = vshrl.u32 %v3277_v61, 16  ;;  %v6725_v40 = vcombine.low %v3436_v57, %v3446_v26  ;;  %v3455_v59 = vrot.slane %v3454_v23, 4  ;;  %v3464_v11 = vor.u32 %v3463_v24, %v3459_v54  ;;  %v3284_v61 = vld [vmem:[#allocation2 + $0x80] sm:$0x1] }
 0x10d   : > { %7300 = vmatmul.mubr.msk.bf16.gmra.mxu1 %vm1225_vm5, %v7568_v9  ;;  %v3474_v42 = vrot.slane %v3472_v19, 4  ;;  %v3477_v14 = vrot.slane %v3475_v52, 5  ;;  %v3483_v21 = vrot.slane %v3481_v53, 5  ;;  %v3491_v51 = vshll.u32 %v3278_v6, 16  ;;  %v3286_v6 = vld [vmem:[#allocation2 + $0x88] sm:$0xf] }
 0x10e   : > { %7303 = vmatprep.mubr.msk.bf16.mxu1 %vm1225_vm5, %v7569_v38  ;;  %v3487_v41 = vrot.slane %v3485_v43, 4  ;;  %v3460_v47 = vsel %vm8151_vm7, %v3455_v59, %v3459_v54  ;;  %v3465_v63 = vrot.slane %v3464_v11, 4  ;;  %v3496_v20 = vshrl.u32 %v3279_v39, 16  ;;  %v3288_v59 = vld [vmem:[#allocation2 + $0x90] sm:$0xf] }
 0x10f   : > { %7334 = vmatmul.mubr.msk.bf16.gmra.mxu0 %vm1225_vm5, %v6725_v40  ;;  %v3499_v12 = vshll.u32 %v3279_v39, 16  ;;  %v3478_v56 = vor.u32 %v3477_v14, %v3474_v42  ;;  %v3493_v58 = vrot.slane %v3491_v51, 5  ;;  %v3505_v4 = vshll.u32 %v3280_v35, 16 }
 0x110   : > { %v3488_v46 = vor.u32 %v3487_v41, %v3483_v21  ;;  %v3470_v0 = vsel %vm8151_vm7, %v3465_v63, %v3469_v28  ;;  %v3498_v27 = vrot.slane %v3496_v20, 4  ;;  %v3509_v30 = vshrl.u32 %v3280_v35, 16  ;;  %v3287_v35 = vld [vmem:[#allocation2 + $0x8c] sm:$0x1] }
 0x111   : > { %v3501_v18 = vrot.slane %v3499_v12, 5  ;;  %v6726_v13 = vcombine.low %v3460_v47, %v3470_v0  ;;  %v3479_v50 = vrot.slane %v3478_v56, 4  ;;  %v3507_v15 = vrot.slane %v3505_v4, 5  ;;  %v7572_v47 = vld [vmem:[#allocation2 + $0x78] sm:$0xff]   ;;  %v3289_v4 = vld [vmem:[#allocation2 + $0x94] sm:$0xf] }
 0x112   : > { %v3489_v48 = vrot.slane %v3488_v46, 4  ;;  %v3511_v8 = vrot.slane %v3509_v30, 4  ;;  %v3515_v9 = vshll.u32 %v3281_v29, 16  ;;  %v3520_v36 = vshrl.u32 %v3282_v32, 16  ;;  %v7573_v29 = vld [vmem:[#allocation2 + $0x84] sm:$0xff]  }
 0x113   : > { %v3502_v25 = vor.u32 %v3501_v18, %v3498_v27  ;;  %7337 = vmatprep.mubr.msk.bf16.mxu0 %vm1225_vm5, %v6726_v13  ;;  %v3484_v54 = vsel %vm8151_vm7, %v3479_v50, %v3483_v21  ;;  %v3523_v10 = vshll.u32 %v3282_v32, 16  ;;  %v3529_v57 = vshll.u32 %v3283_v2, 16  ;;  %v3290_v13 = vld [vmem:[#allocation2 + $0x98] sm:$0x1] }
 0x114   : > { %v3494_v33 = vsel %vm8151_vm7, %v3489_v48, %v3493_v58  ;;  %v3512_v23 = vor.u32 %v3511_v8, %v3507_v15  ;;  %v3517_v24 = vrot.slane %v3515_v9, 5  ;;  %v3522_v19 = vrot.slane %v3520_v36, 4  ;;  %v3291_v8 = vld [vmem:[#allocation2 + $0x9c] sm:$0xf] }
 0x115   : > { %v6727_v16 = vcombine.low %v3484_v54, %v3494_v33  ;;  %7304 = vmatmul.mubr.msk.bf16.gmra.mxu1 %vm1225_vm5, %v7570_v3  ;;  %v3503_v38 = vrot.slane %v3502_v25, 4  ;;  %v3525_v52 = vrot.slane %v3523_v10, 5  ;;  %v3531_v26 = vrot.slane %v3529_v57, 5 }
 0x116   : > { %7307 = vmatprep.mubr.msk.bf16.mxu1 %vm1225_vm5, %v7571_v37  ;;  %v3533_v28 = vshrl.u32 %v3283_v2, 16  ;;  %v3513_v43 = vrot.slane %v3512_v23, 4  ;;  %v3539_v39 = vshll.u32 %v3284_v61, 16  ;;  %v3544_v40 = vshrl.u32 %v3285_v62, 16  ;;  %v3292_v61 = vld [vmem:[#allocation2 + $0xa0] sm:$0xf] }
 0x117   : > { %7338 = vmatmul.mubr.msk.bf16.gmra.mxu0 %vm1225_vm5, %v6727_v16  ;;  %v3508_v53 = vsel %vm8151_vm7, %v3503_v38, %v3507_v15  ;;  %v3526_v11 = vor.u32 %v3525_v52, %v3522_v19  ;;  %v3547_v14 = vshll.u32 %v3285_v62, 16  ;;  %v3553_v21 = vshll.u32 %v3286_v6, 16 }
 0x118   : > { %v3535_v42 = vrot.slane %v3533_v28, 4  ;;  %v3518_v41 = vsel %vm8151_vm7, %v3513_v43, %v3517_v24  ;;  %v3541_v51 = vrot.slane %v3539_v39, 5  ;;  %v3546_v63 = vrot.slane %v3544_v40, 4  ;;  %v7574_v28 = vld [vmem:[#allocation2 + $0x90] sm:$0xff]   ;;  %v3294_v39 = vld [vmem:[#allocation2 + $0xa8] sm:$0xf]  ;;  %v8558_v40 = vpop.f32.mrf.mxu0 }
 0x119   : > { %v3557_v20 = vshrl.u32 %v3286_v6, 16  ;;  %v6728_v12 = vcombine.low %v3508_v53, %v3518_v41  ;;  %v3527_v56 = vrot.slane %v3526_v11, 4  ;;  %v3549_v58 = vrot.slane %v3547_v14, 5  ;;  %v3293_v6 = vld [vmem:[#allocation2 + $0xa4] sm:$0x1]  ;;  %v7575_v14 = vld [vmem:[#allocation2 + $0x9c] sm:$0xff]  }
 0x11a   : > { %v3536_v46 = vor.u32 %v3535_v42, %v3531_v26  ;;  %v3555_v32 = vrot.slane %v3553_v21, 5  ;;  %v3563_v3 = vshll.u32 %v3287_v35, 16  ;;  %v3568_v27 = vshrl.u32 %v3288_v59, 16  ;;  %v3295_v21 = vld [vmem:[#allocation2 + $0xac] sm:$0xf] }
 0x11b   : > { %v3559_v0 = vrot.slane %v3557_v20, 4  ;;  %7341 = vmatprep.mubr.msk.bf16.mxu0 %vm1225_vm5, %v6728_v12  ;;  %v3532_v18 = vsel %vm8151_vm7, %v3527_v56, %v3531_v26  ;;  %v3550_v2 = vor.u32 %v3549_v58, %v3546_v63  ;;  %v3571_v50 = vshll.u32 %v3288_v59, 16  ;;  %v3297_v58 = vld [vmem:[#allocation2 + $0xb4] sm:$0xf] }
 0x11c   : > { %v3537_v30 = vrot.slane %v3536_v46, 4  ;;  %v3565_v15 = vrot.slane %v3563_v3, 5  ;;  %v3570_v37 = vrot.slane %v3568_v27, 4  ;;  %v3577_v25 = vshll.u32 %v3289_v4, 16  ;;  %v8564_v27 = vpop.f32.mrf.mxu0 }
 0x11d   : > { %7308 = vmatmul.mubr.msk.bf16.gmra.mxu1 %vm1225_vm5, %v7572_v47  ;;  %v3560_v48 = vor.u32 %v3559_v0, %v3555_v32  ;;  %v3551_v36 = vrot.slane %v3550_v2, 4  ;;  %v3573_v54 = vrot.slane %v3571_v50, 5  ;;  %v3581_v33 = vshrl.u32 %v3289_v4, 16  ;;  %v3296_v0 = vld [vmem:[#allocation2 + $0xb0] sm:$0x1] }
 0x11e   : > { %v3542_v9 = vsel %vm8151_vm7, %v3537_v30, %v3541_v51  ;;  %7311 = vmatprep.mubr.msk.bf16.mxu1 %vm1225_vm5, %v7573_v29  ;;  %v3579_v62 = vrot.slane %v3577_v25, 5  ;;  %v3587_v16 = vshll.u32 %v3290_v13, 16  ;;  %v3592_v19 = vshrl.u32 %v3291_v8, 16  ;;  %v3298_v50 = vld [vmem:[#allocation2 + $0xb8] sm:$0xf] }
 0x11f   : > { %v6729_v10 = vcombine.low %v3532_v18, %v3542_v9  ;;  %v3561_v57 = vrot.slane %v3560_v48, 4  ;;  %v3556_v38 = vsel %vm8151_vm7, %v3551_v36, %v3555_v32  ;;  %v3574_v23 = vor.u32 %v3573_v54, %v3570_v37 }
 0x120   : > { %v3583_v24 = vrot.slane %v3581_v33, 4  ;;  %v3589_v26 = vrot.slane %v3587_v16, 5  ;;  %v3595_v53 = vshll.u32 %v3291_v8, 16  ;;  %v3601_v43 = vshll.u32 %v3292_v61, 16 }
 0x121   : > { %7342 = vmatmul.mubr.msk.bf16.gmra.mxu0 %vm1225_vm5, %v6729_v10  ;;  %v3566_v52 = vsel %vm8151_vm7, %v3561_v57, %v3565_v15  ;;  %v3575_v11 = vrot.slane %v3574_v23, 4  ;;  %v3594_v35 = vrot.slane %v3592_v19, 4  ;;  %v3605_v47 = vshrl.u32 %v3292_v61, 16  ;;  %v7576_v10 = vld [vmem:[#allocation2 + $0xa8] sm:$0xff]   ;;  %v3299_v57 = vld [vmem:[#allocation2 + $0xbc] sm:$0x1] }
 0x122   : > { %v6730_v59 = vcombine.low %v3556_v38, %v3566_v52  ;;  %v3584_v42 = vor.u32 %v3583_v24, %v3579_v62  ;;  %v3597_v41 = vrot.slane %v3595_v53, 5  ;;  %v3603_v51 = vrot.slane %v3601_v43, 5  ;;  %v8572_v38 = vpop.f32.mrf.mxu0  ;;  %v7577_v52 = vld [vmem:[#allocation2 + $0xb4] sm:$0xff]  }
 0x123   : > { %v3611_v63 = vshll.u32 %v3293_v6, 16  ;;  %v3580_v20 = vsel %vm8151_vm7, %v3575_v11, %v3579_v62  ;;  %v3616_v56 = vshrl.u32 %v3294_v39, 16  ;;  %v3619_v46 = vshll.u32 %v3294_v39, 16 }
 0x124   : > { %7345 = vmatprep.mubr.msk.bf16.mxu0 %vm1225_vm5, %v6730_v59  ;;  %v3585_v12 = vrot.slane %v3584_v42, 4  ;;  %v3598_v29 = vor.u32 %v3597_v41, %v3594_v35  ;;  %v3607_v4 = vrot.slane %v3605_v47, 4  ;;  %v3625_v3 = vshll.u32 %v3295_v21, 16  ;;  %v7600_v41 = vld [vmem:[%s10110_s3] ss:$0 sm:$0xff]  ;;  %v8586_v47 = vpop.f32.mrf.mxu0 }
 0x125   : > { %7312 = vmatmul.mubr.msk.bf16.gmra.mxu1 %vm1225_vm5, %v7574_v28  ;;  %v3613_v32 = vrot.slane %v3611_v63, 5  ;;  %v3618_v30 = vrot.slane %v3616_v56, 4  ;;  %v3621_v2 = vrot.slane %v3619_v46, 5  ;;  %v3629_v13 = vshrl.u32 %v3295_v21, 16 }
 0x126   : > { %v3590_v18 = vsel %vm8151_vm7, %v3585_v12, %v3589_v26  ;;  %7315 = vmatprep.mubr.msk.bf16.mxu1 %vm1225_vm5, %v7575_v14  ;;  %v3599_v15 = vrot.slane %v3598_v29, 4  ;;  %v3608_v37 = vor.u32 %v3607_v4, %v3603_v51  ;;  %v3627_v25 = vrot.slane %v3625_v3, 5  ;;  %v8592_v12 = vpop.f32.mrf.mxu1 }
 0x127   : > { %v6731_v48 = vcombine.low %v3580_v20, %v3590_v18  ;;  %v3622_v8 = vor.u32 %v3621_v2, %v3618_v30  ;;  %v3631_v9 = vrot.slane %v3629_v13, 4  ;;  %v3635_v36 = vshll.u32 %v3296_v0, 16  ;;  %10136 = vst [vmem:[#allocation7_spill] sm:$0xff] %v8592_v12  ;;  %v8600_v0 = vpop.f32.mrf.mxu0  ;;  %v4086_v12 = vld [vmem:[#allocation2 + $0xb0] sm:$0x1] }
 0x128   : > { %v3640_v54 = vshrl.u32 %v3297_v58, 16  ;;  %v3604_v33 = vsel %vm8151_vm7, %v3599_v15, %v3603_v51  ;;  %v3609_v61 = vrot.slane %v3608_v37, 4  ;;  %v3643_v62 = vshll.u32 %v3297_v58, 16  ;;  %v4046_v58 = vld [vmem:[#allocation2 + $0x10] sm:$0xf]  ;;  %v8602_v18 = vpop.f32.mrf.mxu1 }
 0x129   : > { %7346 = vmatmul.mubr.msk.bf16.gmra.mxu0 %vm1225_vm5, %v6731_v48  ;;  %v3649_v16 = vshll.u32 %v3298_v50, 16  ;;  %v3623_v23 = vrot.slane %v3622_v8, 4  ;;  %v3632_v24 = vor.u32 %v3631_v9, %v3627_v25  ;;  %v3637_v6 = vrot.slane %v3635_v36, 5  ;;  %10137 = vst [vmem:[#allocation8_spill] sm:$0xff] %v8602_v18  ;;  %v4049_v8 = vld [vmem:[#allocation2 + $0x1c] sm:$0xf] }
 0x12a   : > { %v3642_v19 = vrot.slane %v3640_v54, 4  ;;  %v3614_v26 = vsel %vm8151_vm7, %v3609_v61, %v3613_v32  ;;  %v3645_v28 = vrot.slane %v3643_v62, 5  ;;  %v3653_v43 = vshrl.u32 %v3298_v50, 16  ;;  %v4045_v50 = vld [vmem:[#allocation2 + $0xc] sm:$0xe]  ;;  %v8606_v54 = vpop.f32.mrf.mxu0 }
 0x12b   : > { %v3651_v53 = vrot.slane %v3649_v16, 5  ;;  %v6732_v39 = vcombine.low %v3604_v33, %v3614_v26  ;;  %v3628_v59 = vsel %vm8151_vm7, %v3623_v23, %v3627_v25  ;;  %v3633_v11 = vrot.slane %v3632_v24, 4  ;;  %v4047_v25 = vld [vmem:[#allocation2 + $0x14] sm:$0x1]  ;;  %v4052_v62 = vld [vmem:[#allocation2 + $0x28] sm:$0xf]  ;;  %v8609_v16 = vpop.f32.mrf.mxu1 }
 0x12c   : > { %v3659_v42 = vshll.u32 %v3299_v57, 16  ;;  %v3646_v35 = vor.u32 %v3645_v28, %v3642_v19  ;;  %v3655_v14 = vrot.slane %v3653_v43, 4  ;;  %v326_v21 = vmul.f32 %v8457_v22, %v7018_v55  ;;  %10138 = vst [vmem:[#allocation9_spill] sm:$0xff] %v8609_v16  ;;  %v4048_v19 = vld [vmem:[#allocation2 + $0x18] sm:$0xe] }
 0x12d   : > { %7316 = vmatmul.mubr.msk.bf16.gmra.mxu1 %vm1225_vm5, %v7576_v10  ;;  %v364_v51 = vadd.f32 %v7600_v41, %v8462_v34  ;;  %7349 = vmatprep.mubr.msk.bf16.mxu0 %vm1225_vm5, %v6732_v39  ;;  %v3638_v63 = vsel %vm8151_vm7, %v3633_v11, %v3637_v6  ;;  %v7601_v34 = vld [vmem:[%s10111_s4] ss:$0 sm:$0xff]  ;;  %v4143_v48 = vrot.slane %v4046_v58, 5  ;;  %v6752_v57 = vrot.slane %v4045_v50, 9  ;;  %v1004_v28 = vld [vmem:[#allocation2 + $0xc8] sm:$0x1] }
 0x12e   : > { %v3661_v20 = vrot.slane %v3659_v42, 5  ;;  %7319 = vmatprep.mubr.msk.bf16.mxu1 %vm1225_vm5, %v7577_v52  ;;  %v6733_v7 = vcombine.low %v3628_v59, %v3638_v63  ;;  %v3647_v55 = vrot.slane %v3646_v35, 4  ;;  %v3656_v22 = vor.u32 %v3655_v14, %v3651_v53  ;;  %v1000_v10 = vld [vmem:[#allocation2 + $0xc0] sm:$0xf]  ;;  %v4051_v59 = vld [vmem:[#allocation2 + $0x24] sm:$0xe]  ;;  %v8613_v35 = vpop.f32.mrf.mxu0 }
 0x12f   : > { %v365_v56 = vadd.f32 %v7600_v41, %v326_v21  ;;  %vm396_vm8 = vcmp.ge.f32.partialorder %v364_v51, 0.0  ;;  %v435_v46 = vmul.f32 %v7601_v34, %v364_v51  ;;  %v4145_v24 = vrot.slane %v4143_v48, 4  ;;  %v8611_v42 = vld [vmem:[#allocation2 + $0x34] sm:$0xf]  ;;  %v4053_v63 = vld [vmem:[#allocation2 + $0x2c] sm:$0x1] }
 0x130   : > { %v3652_v29 = vsel %vm8151_vm7, %v3647_v55, %v3651_v53  ;;  %v3657_v4 = vrot.slane %v3656_v22, 4  ;;  %v4146_v6 = vrot.slane %v4047_v25, 5  ;;  %v4150_v52 = vrot.slane %v4049_v8, 5  ;;  %v4050_v53 = vld [vmem:[#allocation2 + $0x20] sm:$0x1] }
 0x131   : > { %7350 = vmatmul.mubr.msk.bf16.gmra.mxu0 %vm1225_vm5, %v6733_v7  ;;  %vm397_vm9 = vcmp.ge.f32.partialorder %v365_v56, 0.0  ;;  %v436_v32 = vmul.f32 %v7601_v34, %v365_v56  ;;  %v467_v3 = vsel %vm396_vm8, %v364_v51, %v435_v46  ;;  %v4157_v11 = vrot.slane %v4052_v62, 5  ;;  %v8621_v7 = vpop.f32.mrf.mxu1  ;;  %v4054_v46 = vld [vmem:[#allocation2 + $0x30] sm:$0xe]  ;;  %v4056_v58 = vld [vmem:[#allocation2 + $0x38] sm:$0x1] }
 0x132   : > { %v3662_v30 = vsel %vm8151_vm7, %v3657_v4, %v3661_v20  ;;  %v6952_v13 = vpack.c.bf16 %v467_v3, %v467_v3  ;;  %v8617_v41 = vsel %vm8107_vm13, %v6752_v57, %v4143_v48  ;;  %v6753_v51 = vrot.slane %v4048_v19, 9  ;;  %v8619_v20 = vld [vmem:[#allocation2 + $0x40] sm:$0xf]  ;;  %10139 = vst [vmem:[#allocation10_spill] sm:$0xff] %v8621_v7  ;;  %v8805_v18 = vld [vmem:[#allocation2 + $0xb8] sm:$0xf] }
 0x133   : > { %v468_v2 = vsel %vm397_vm9, %v365_v56, %v436_v32  ;;  %v6734_v15 = vcombine.low %v3652_v29, %v3662_v30  ;;  %v8627_v22 = vsel %vm8107_vm13, %v4145_v24, %v4146_v6  ;;  %v4152_v56 = vrot.slane %v4150_v52, 4  ;;  %v8636_v30 = vld [vmem:[#allocation2 + $0x4c] sm:$0xf] }
 0x134   : > { %v6953_v37 = vpack.c.bf16 %v468_v2, %v468_v2  ;;  %v824_v9 = vshrl.u32 %v6952_v13, 16  ;;  %v827_v36 = vshll.u32 %v6952_v13, 16  ;;  %v4153_v34 = vrot.slane %v4050_v53, 5  ;;  %v8638_v2 = vld [vmem:[#allocation2 + $0x58] sm:$0xf] }
 0x135   : > { %7353 = vmatprep.mubr.msk.bf16.mxu0 %vm1225_vm5, %v6734_v15  ;;  %v6754_v32 = vrot.slane %v4051_v59, 9  ;;  %v4164_v3 = vrot.slane %v8611_v42, 5  ;;  %v4159_v13 = vrot.slane %v4157_v11, 4  ;;  %v4160_v50 = vrot.slane %v4053_v63, 5  ;;  %v8642_v15 = vld [vmem:[#allocation2 + $0x48] sm:$0xe] }
 0x136   : > { %v832_v33 = vshrl.u32 %v6953_v37, 16  ;;  %v835_v61 = vshll.u32 %v6953_v37, 16  ;;  %v826_v23 = vrot.slane %v824_v9, 7  ;;  %v4171_v48 = vrot.slane %v8619_v20, 5  ;;  %v8644_v37 = vpop.f32.mrf.mxu0  ;;  %v4062_v9 = vld [vmem:[#allocation2 + $0x50] sm:$0x1] }
 0x137   : > { %10140 = vst [vmem:[#allocation11_spill] sm:$0xff] %v8644_v37  ;;  %v8650_v8 = vsel %vm8107_vm13, %v6753_v51, %v4150_v52  ;;  %v8664_v57 = vsel %vm1274_vm0, %v8492_v45, 0  ;;  %v4178_v62 = vrot.slane %v8636_v30, 5  ;;  %v4185_v24 = vrot.slane %v8638_v2, 5  ;;  %v8682_v63 = vld [vmem:[#allocation2 + $0x70] sm:$0xf] }
 0x138   : > { %v834_v26 = vrot.slane %v832_v33, 7  ;;  %v829_v43 = vor.u32 %v827_v36, %v826_v23  ;;  %v830_v39 = vrot.slane %v826_v23, 4  ;;  %v8652_v36 = vld [vmem:[#allocation2 + $0x54] sm:$0xe]  ;;  %v8654_v33 = vld [vmem:[#allocation2 + $0x64] sm:$0xf]  ;;  %v8670_v6 = vsel %vm8107_vm13, %v6754_v32, %v4157_v11  ;;  %v8678_v42 = vpop.f32.mrf.mxu0 }
 0x139   : > { %v4065_v23 = vld [vmem:[#allocation2 + $0x5c] sm:$0x1]  ;;  %v6755_v19 = vrot.slane %v4054_v46, 9  ;;  %v4166_v52 = vrot.slane %v4164_v3, 4  ;;  %v8674_v53 = vsel %vm8107_vm13, %v4159_v13, %v4160_v50  ;;  %v6756_v45 = vrot.slane %v8634_v1, 9 }
 0x13a   : > { %v837_v14 = vor.u32 %v835_v61, %v834_v26  ;;  %v839_v21 = vrot.slane %v834_v26, 4  ;;  %v1001_v55 = vsel %vm7839_vm15, %v829_v43, %v1000_v10  ;;  %v8656_v61 = vpop.f32.mrf.mxu1  ;;  %v8660_v10 = vsel %vm8107_vm13, %v4152_v56, %v4153_v34  ;;  %v8698_v17 = vpop.f32.mrf.mxu0 }
 0x13b   : > { %1002 = vst [vmem:[#allocation2 + $0xc0] sm:$0xf] %v1001_v55  ;;  %10141 = vst [vmem:[#allocation12_spill] sm:$0xff] %v8656_v61  ;;  %v4167_v26 = vrot.slane %v4056_v58, 5  ;;  %v4173_v43 = vrot.slane %v4171_v48, 4  ;;  %v4192_v59 = vrot.slane %v8654_v33, 5  ;;  %v8690_v30 = vsel %vm8107_vm13, %v6755_v19, %v4164_v3 }
 0x13c   : > { %v838_v29 = vsel %vm7831_vm14, %v830_v39, %v837_v14  ;;  %v1005_v4 = vsel %vm7845_vm3, %v839_v21, %v1004_v28  ;;  %v4066_v28 = vld [vmem:[#allocation2 + $0x60] sm:$0xe]  ;;  %v4068_v39 = vld [vmem:[#allocation2 + $0x68] sm:$0x1]  ;;  %v4174_v14 = vrot.slane %v4059_v60, 5  ;;  %v6757_v11 = vrot.slane %v8642_v15, 9  ;;  %v8684_v20 = vpop.f32.mrf.mxu1 }
 0x13d   : > { %1003 = vst.msk [vmem:[#allocation2 + $0xc4] sm:$0xf] %vm889_vm1, %v838_v29  ;;  %1006 = vst [vmem:[#allocation2 + $0xc8] sm:$0x1] %v1005_v4  ;;  %v4181_v21 = vrot.slane %v4062_v9, 5  ;;  %v6758_v51 = vrot.slane %v8652_v36, 9  ;;  %v8694_v2 = vsel %vm8107_vm13, %v4166_v52, %v4167_v26 }
 0x13e   : > { %10142 = vst [vmem:[#allocation13_spill] sm:$0xff] %v8684_v20  ;;  %v4180_v56 = vrot.slane %v4178_v62, 4  ;;  %v4187_v34 = vrot.slane %v4185_v24, 4  ;;  %v4188_v46 = vrot.slane %v4065_v23, 5  ;;  %v6759_v58 = vrot.slane %v4066_v28, 9  ;;  %v8709_v19 = vpop.f32.mrf.mxu1 }
 0x13f   : > { %v4069_v29 = vld [vmem:[#allocation2 + $0x6c] sm:$0xe]  ;;  %v4195_v13 = vrot.slane %v4068_v39, 5  ;;  %v4194_v9 = vrot.slane %v4192_v59, 4  ;;  %v8704_v3 = vsel %vm1274_vm0, %v8501_v49, 0  ;;  %v4199_v5 = vrot.slane %v8682_v63, 5 }
 0x140   : > { %v4071_v23 = vld [vmem:[#allocation2 + $0x74] sm:$0x1]  ;;  %10143 = vst [vmem:[#allocation14_spill] sm:$0xff] %v8709_v19  ;;  %v8715_v28 = vsel %vm8107_vm13, %v6756_v45, %v4171_v48  ;;  %v8719_v39 = vsel %vm8107_vm13, %v4173_v43, %v4174_v14  ;;  %v4072_v49 = vld [vmem:[#allocation2 + $0x78] sm:$0xe]  ;;  %v8725_v63 = vsel %vm8107_vm13, %v6757_v11, %v4178_v62  ;;  %v8735_v45 = vsel %vm8107_vm13, %v6758_v51, %v4185_v24 }
 0x141   : > { %v8731_v48 = vld [vmem:[#allocation2 + $0x80] sm:$0x1]  ;;  %v8739_v43 = vsel %vm8107_vm13, %v4187_v34, %v4188_v46  ;;  %v8743_v14 = vsel %vm8107_vm13, %v6759_v58, %v4192_v59  ;;  %v8747_v62 = vsel %vm8107_vm13, %v4194_v9, %v4195_v13  ;;  %v8749_v11 = vld [vmem:[#allocation2 + $0x84] sm:$0xe]  ;;  %v4201_v24 = vrot.slane %v4199_v5, 4  ;;  %v8757_v46 = vpop.f32.mrf.mxu1 }
 0x142   : > { %v1060_v55 = vld [vmem:[#allocation2 + $0xc0] sm:$0x1]  ;;  %v4202_v51 = vrot.slane %v4071_v23, 5  ;;  %v8755_v34 = vld [vmem:[#allocation2 + $0x94] sm:$0xf]  ;;  %10145 = vst [vmem:[#allocation16_spill] sm:$0xff] %v8757_v46 }
 0x143   : > { %v1061_v4 = vsel %vm7845_vm3, 0, %v1060_v55  ;;  %v4073_v55 = vld [vmem:[#allocation2 + $0x7c] sm:$0xf]  ;;  %v8767_v9 = vld [vmem:[#allocation2 + $0x90] sm:$0xe]  ;;  %v4220_v20 = vrot.slane %v8755_v34, 5  ;;  %v8795_v58 = vpop.f32.mrf.mxu1 }
 0x144   : > { %v1109_v32 = vld [vmem:[#allocation2 + $0xc8] sm:$0x1]  ;;  %v3301_v1 = vld [vmem:[#allocation2 + $0xc4] sm:$0xf]  ;;  %1062 = vst [vmem:[#allocation2 + $0xc0] sm:$0x1] %v1061_v4 }
 0x145   : > { %v1110_v50 = vsel %vm7775_vm4, 0, %v1109_v32  ;;  %v3673_v60 = vshll.u32 %v3301_v1, 16  ;;  %v3677_v15 = vshrl.u32 %v3301_v1, 16  ;;  %v8729_v32 = vsel %vm8107_vm13, %v4180_v56, %v4181_v21  ;;  %v8751_v21 = vld [vmem:[#allocation2 + $0x88] sm:$0xf]  ;;  %v8753_v56 = vpop.f32.mrf.mxu0  ;;  %10147 = vst [vmem:[#allocation18_spill] sm:$0xff] %v8795_v58 }
 0x146   : > { %1111 = vst [vmem:[#allocation2 + $0xc8] sm:$0x1] %v1110_v50  ;;  %v6760_v1 = vrot.slane %v4069_v29, 9  ;;  %10144 = vst [vmem:[#allocation15_spill] sm:$0xff] %v8753_v56  ;;  %v6761_v29 = vrot.slane %v4072_v49, 9  ;;  %v4206_v50 = vrot.slane %v4073_v55, 5 }
 0x147   : > { %v8711_v52 = vrot.slane %v3673_v60, 5  ;;  %v3679_v26 = vrot.slane %v3677_v15, 4  ;;  %v4209_v60 = vrot.slane %v8731_v48, 5  ;;  %v8765_v15 = vld [vmem:[#allocation2 + $0x8c] sm:$0x1]  ;;  %v6762_v48 = vrot.slane %v8749_v11, 9  ;;  %v8784_v7 = vpop.f32.mrf.mxu0 }
 0x148   : > { %v8769_v23 = vld [vmem:[#allocation2 + $0xa0] sm:$0xf]  ;;  %v8771_v49 = vld [vmem:[#allocation2 + $0xac] sm:$0xf]  ;;  %v8779_v13 = vsel %vm8107_vm13, %v6760_v1, %v4199_v5  ;;  %v4080_v33 = vld [vmem:[#allocation2 + $0x98] sm:$0x1]  ;;  %v8789_v5 = vsel %vm8107_vm13, %v4201_v24, %v4202_v51  ;;  %v8793_v1 = vsel %vm8107_vm13, %v6761_v29, %v4206_v50 }
 0x149   : > { %v3680_v59 = vor.u32 %v3679_v26, %v8711_v52  ;;  %v4213_v19 = vrot.slane %v8751_v21, 5  ;;  %v4081_v61 = vld [vmem:[#allocation2 + $0x9c] sm:$0xe]  ;;  %10146 = vst [vmem:[#allocation17_spill] sm:$0xff] %v8784_v7  ;;  %v4208_v11 = vrot.slane %v4206_v50, 4  ;;  %v4216_v7 = vrot.slane %v8765_v15, 5  ;;  %v8811_v15 = vpop.f32.mrf.mxu1 }
 0x14a   : > { %v4084_v24 = vld [vmem:[#allocation2 + $0xa8] sm:$0xe]  ;;  %v6763_v29 = vrot.slane %v8767_v9, 9  ;;  %v4234_v50 = vrot.slane %v8771_v49, 5  ;;  %v4223_v58 = vrot.slane %v4080_v33, 5  ;;  %10150 = vst [vmem:[#allocation20_spill] sm:$0xff] %v8811_v15 }
 0x14b   : > { %v3300_v55 = vld [vmem:[#allocation2 + $0xc0] sm:$0xf]  ;;  %v3681_v16 = vrot.slane %v3680_v59, 4  ;;  %v4222_v59 = vrot.slane %v4220_v20, 4  ;;  %v4087_v9 = vld [vmem:[#allocation2 + $0xb4] sm:$0xe] }
 0x14c   : > { %v7578_v4 = vld [vmem:[#allocation2 + $0xc0] sm:$0xff]   ;;  %v3664_v25 = vshrl.u32 %v3300_v55, 16  ;;  %v3667_v46 = vshll.u32 %v3300_v55, 16  ;;  %v4241_v33 = vrot.slane %v8805_v18, 5 }
 0x14d   : > { %v3302_v36 = vld [vmem:[#allocation2 + $0xc8] sm:$0x1]  ;;  %7320 = vmatmul.mubr.msk.bf16.gmra.mxu1 %vm1225_vm5, %v7578_v4  ;;  %v4083_v55 = vld [vmem:[#allocation2 + $0xa4] sm:$0x1]  ;;  %v4227_v4 = vrot.slane %v8769_v23, 5  ;;  %v6764_v23 = vrot.slane %v4081_v61, 9  ;;  %v8824_v61 = vsel %vm8107_vm13, %v6762_v48, %v4213_v19 }
 0x14e   : > { %v3683_v26 = vshll.u32 %v3302_v36, 16  ;;  %v3666_v21 = vrot.slane %v3664_v25, 4  ;;  %v3669_v34 = vrot.slane %v3667_v46, 5  ;;  %v10148_v36 = vcombine.low %v8617_v41, %v8627_v22  ;;  %v8807_v41 = vpop.f32.mrf.mxu0 }
 0x14f   : > { %v4215_v46 = vrot.slane %v4213_v19, 4  ;;  %10149 = vst [vmem:[#allocation19_spill] sm:$0xff] %v8807_v41  ;;  %v8820_v41 = vsel %vm8107_vm13, %v4208_v11, %v4209_v60  ;;  %v8835_v60 = vsel %vm8107_vm13, %v6763_v29, %v4220_v20  ;;  %v8839_v19 = vsel %vm8107_vm13, %v4222_v59, %v4223_v58  ;;  %v4090_v59 = vld [vmem:[#allocation2 + $0xc0] sm:$0xe] }
 0x150   : > { %7359 = vmatprep.mubr.msk.bf16.mxu1 %vm1225_vm5, %v10148_v36  ;;  %v3685_v51 = vrot.slane %v3683_v26, 5  ;;  %v3670_v25 = vor.u32 %v3669_v34, %v3666_v21  ;;  %v4230_v26 = vrot.slane %v4083_v55, 5  ;;  %v6765_v36 = vrot.slane %v4084_v24, 9  ;;  %v4089_v34 = vld [vmem:[#allocation2 + $0xbc] sm:$0x1]  ;;  %v8816_v56 = vpop.f32.mrf.mxu0 }
 0x151   : > { %v4229_v21 = vrot.slane %v4227_v4, 4  ;;  %10151 = vst [vmem:[#allocation21_spill] sm:$0xff] %v8816_v56  ;;  %v4236_v55 = vrot.slane %v4234_v50, 4  ;;  %v4237_v24 = vrot.slane %v4086_v12, 5  ;;  %v8831_v18 = vsel %vm8107_vm13, %v4215_v46, %v4216_v7  ;;  %v5035_v12 = vld [vmem:[#allocation2 + $0x1c] sm:$0xf] }
 0x152   : > { %v3671_v37 = vrot.slane %v3670_v25, 4  ;;  %v3686_v49 = vsel %vm8151_vm7, %v3681_v16, %v3685_v51  ;;  %v5034_v25 = vld [vmem:[#allocation2 + $0x18] sm:$0xf]  ;;  %v8841_v48 = vpop.f32.mrf.mxu0  ;;  %v8849_v7 = vsel %vm8107_vm13, %v6764_v23, %v4227_v4  ;;  %v6766_v20 = vrot.slane %v4087_v9, 9  ;;  %v4091_v46 = vld [vmem:[#allocation2 + $0xc4] sm:$0xf] }
 0x153   : > { %v7579_v51 = vld [vmem:[#allocation2 + $0x18] sm:$0xff]   ;;  %10152 = vst [vmem:[#allocation22_spill] sm:$0xff] %v8841_v48  ;;  %v4244_v29 = vrot.slane %v4089_v34, 5  ;;  %v10155_v58 = vcombine.low %v8670_v6, %v8674_v53  ;;  %v4243_v4 = vrot.slane %v4241_v33, 4  ;;  %v8866_v23 = vld [vmem:[#allocation2 + $0xc8] sm:$0x1]  ;;  %v8873_v6 = vsel %vm8107_vm13, %v4236_v55, %v4237_v24 }
 0x154   : > { %v3676_v16 = vsel %vm8151_vm7, %v3671_v37, %v8711_v52  ;;  %v10153_v37 = vcombine.low %v8650_v8, %v8660_v10  ;;  %v8851_v52 = vpop.f32.mrf.mxu1  ;;  %v8860_v8 = vsel %vm8107_vm13, %v4229_v21, %v4230_v26  ;;  %v8864_v10 = vsel %vm8107_vm13, %v6765_v36, %v4234_v50  ;;  %v8868_v9 = vpop.f32.mrf.mxu0  ;;  %10158 = vst [vmem:[#allocation26_spill] sm:$0xff] %v8873_v6  ;;  %v8875_v53 = vld [vmem:[#allocation2 + $0x18] sm:$0xe]  ;;  %v5037_v55 = vld [vmem:[#allocation2 + $0x24] sm:$0xf] }
 0x155   : > { %v6735_v11 = vcombine.low %v3676_v16, %v3686_v49  ;;  %10154 = vst [vmem:[#allocation23_spill] sm:$0xff] %v8851_v52  ;;  %10156 = vst [vmem:[#allocation24_spill] sm:$0xff] %v8864_v10  ;;  %v5086_v26 = vshll.u32 %v5034_v25, 16  ;;  %v5092_v49 = vshll.u32 %v5035_v12, 16  ;;  %v5096_v21 = vshrl.u32 %v5035_v12, 16  ;;  %v7580_v24 = vld [vmem:[#allocation2 + $0x24] sm:$0xff]  }
 0x156   : > { %7360 = vmatmul.mubr.msk.bf16.vlgmr.msra.gmra.mxu1 %vm1225_vm5, %v10153_v37  ;;  %10157 = vst [vmem:[#allocation25_spill] sm:$0xff] %v8868_v9  ;;  %v4248_v16 = vrot.slane %v4091_v46, 5  ;;  %v8888_v12 = vpop.f32.mrf.mxu1  ;;  %v6767_v37 = vrot.slane %v4090_v59, 9  ;;  %v8895_v36 = vld [vmem:[#allocation2 + $0x1c] sm:$0xf]  ;;  %v7581_v46 = vld [vmem:[#allocation2 + $0x30] sm:$0xff]   ;;  %v8901_v22 = vsel %vm8107_vm13, %v4243_v4, %v4244_v29 }
 0x157   : > { %7426 = vmatpush3.bf16.msra.mxu1 %v8664_v57  ;;  %7363 = vmatprep.mubr.msk.bf16.mxu1 %vm1225_vm5, %v10155_v58  ;;  %v5083_v57 = vshrl.u32 %v5034_v25, 16  ;;  %10160 = vst [vmem:[#allocation28_spill] sm:$0xff] %v8888_v12  ;;  %v4251_v58 = vrot.slane %v8866_v23, 5  ;;  %v5038_v34 = vld [vmem:[#allocation2 + $0x28] sm:$0xf]  ;;  %v6867_v9 = vrot.slane %v8875_v53, 9  ;;  %v10162_v53 = vcombine.low %v8690_v30, %v8694_v2 }
 0x158   : > { %7354 = vmatmul.mubr.msk.bf16.gmra.mxu0 %vm1225_vm5, %v6735_v11  ;;  %v8884_v11 = vpop.f32.mrf.mxu0  ;;  %v8903_v25 = vld [vmem:[#allocation2 + $0x20] sm:$0x1]  ;;  %v8910_v12 = vrot.slane %v5092_v49, 5  ;;  %v5098_v52 = vrot.slane %v5096_v21, 4  ;;  %v5107_v15 = vshrl.u32 %v5037_v55, 16  ;;  %v4250_v50 = vrot.slane %v4248_v16, 4 }
 0x159   : > { %7393 = vmatprep.mubr.msk.bf16.mxu0 %vm1225_vm5, %v7579_v51  ;;  %10159 = vst [vmem:[#allocation27_spill] sm:$0xff] %v8884_v11  ;;  %v8892_v51 = vsel %vm8107_vm13, %v6766_v20, %v4241_v33  ;;  %v5085_v33 = vrot.slane %v5083_v57, 4  ;;  %v8906_v20 = vld [vmem:[#allocation2 + $0x28] sm:$0xf]  ;;  %v5036_v23 = vld [vmem:[#allocation2 + $0x20] sm:$0x1]  ;;  %v8930_v30 = vsel %vm8107_vm13, %v6767_v37, %v4248_v16 }
 0x15a   : > { %v8908_v59 = vpop.f32.mrf.mxu0  ;;  %v5088_v11 = vrot.slane %v5086_v26, 5  ;;  %v5922_v48 = vrot.slane %v8895_v36, 5  ;;  %v5827_v29 = vld [vmem:[#allocation2 + $0x24] sm:$0xe]  ;;  %v5110_v4 = vshll.u32 %v5037_v55, 16  ;;  %v5116_v56 = vshll.u32 %v5038_v34, 16 }
 0x15b   : > { %10161 = vst [vmem:[#allocation29_spill] sm:$0xff] %v8908_v59  ;;  %v8919_v59 = vpop.f32.mrf.mxu1  ;;  %v5829_v26 = vld [vmem:[#allocation2 + $0x2c] sm:$0x1]  ;;  %v5929_v49 = vrot.slane %v8906_v20, 5  ;;  %v5109_v21 = vrot.slane %v5107_v15, 4  ;;  %v5120_v6 = vshrl.u32 %v5038_v34, 16  ;;  %v10165_v36 = vcombine.low %v8715_v28, %v8719_v39 }
 0x15c   : > { %10163 = vst [vmem:[#allocation30_spill] sm:$0xff] %v8919_v59  ;;  %v8922_v10 = vpop.f32.mrf.mxu0  ;;  %v5925_v2 = vrot.slane %v8903_v25, 5  ;;  %v5039_v55 = vld [vmem:[#allocation2 + $0x2c] sm:$0x1]  ;;  %v8933_v57 = vrot.slane %v5116_v56, 5  ;;  %v5089_v34 = vor.u32 %v5088_v11, %v5085_v33  ;;  %v5099_v20 = vor.u32 %v5098_v52, %v8910_v12 }
 0x15d   : > { %10164 = vst [vmem:[#allocation31_spill] sm:$0xff] %v8922_v10  ;;  %v8936_v15 = vpop.f32.mrf.mxu1  ;;  %v5102_v28 = vshll.u32 %v5036_v23, 16  ;;  %v5122_v39 = vrot.slane %v5120_v6, 4  ;;  %v5041_v10 = vld [vmem:[#allocation2 + $0x34] sm:$0xf]  ;;  %v8943_v16 = vsel %vm8107_vm13, %v4250_v50, %v4251_v58  ;;  %v5924_v56 = vrot.slane %v5922_v48, 4 }
 0x15e   : > { %7364 = vmatmul.mubr.msk.bf16.gmra.mxu1 %vm1225_vm5, %v10162_v53  ;;  %v5112_v53 = vrot.slane %v5110_v4, 5  ;;  %10166 = vst [vmem:[#allocation32_spill] sm:$0xff] %v8936_v15  ;;  %10167 = vst [vmem:[#allocation33_spill] sm:$0xff] %v8943_v16  ;;  %v6868_v25 = vrot.slane %v5827_v29, 9  ;;  %v5931_v11 = vrot.slane %v5929_v49, 4  ;;  %v5126_v6 = vshll.u32 %v5039_v55, 16  ;;  %v8948_v23 = vpop.f32.mrf.mxu0 }
 0x15f   : > { %7367 = vmatprep.mubr.msk.bf16.mxu1 %vm1225_vm5, %v10165_v36  ;;  %v5040_v36 = vld [vmem:[#allocation2 + $0x30] sm:$0xf]  ;;  %v8945_v37 = vpop.f32.mrf.mxu1  ;;  %v5123_v52 = vor.u32 %v5122_v39, %v8933_v57  ;;  %10169 = vst [vmem:[#allocation35_spill] sm:$0xff] %v8948_v23  ;;  %v8950_v4 = vld [vmem:[#allocation2 + $0x34] sm:$0xf]  ;;  %v5140_v15 = vshll.u32 %v5041_v10, 16  ;;  %v8958_v55 = vsel %vm8107_vm13, %v6867_v9, %v5922_v48 }
 0x160   : > { %7394 = vmatmul.mubr.msk.bf16.vlgmr.msra.gmra.mxu0 %vm1225_vm5, %v7580_v24  ;;  %v5932_v24 = vrot.slane %v5829_v26, 5  ;;  %10168 = vst [vmem:[#allocation34_spill] sm:$0xff] %v8945_v37  ;;  %v5113_v33 = vor.u32 %v5112_v53, %v5109_v21  ;;  %v5144_v59 = vshrl.u32 %v5041_v10, 16  ;;  %v7582_v50 = vld [vmem:[#allocation2 + $0x3c] sm:$0xff]   ;;  %v5090_v26 = vrot.slane %v5089_v34, 4  ;;  %v7583_v39 = vld [vmem:[#allocation2 + $0x48] sm:$0xff]  }
 0x161   : > { %7460 = vmatpush3.bf16.msra.mxu0 %v8704_v3  ;;  %7397 = vmatprep.mubr.msk.bf16.mxu0 %vm1225_vm5, %v7581_v46  ;;  %v5131_v3 = vshrl.u32 %v5040_v36, 16  ;;  %v5134_v46 = vshll.u32 %v5040_v36, 16  ;;  %v8954_v29 = vpop.f32.mrf.mxu1  ;;  %v5100_v37 = vrot.slane %v5099_v20, 4  ;;  %v5104_v21 = vrot.slane %v5102_v28, 5  ;;  %v5830_v53 = vld [vmem:[#allocation2 + $0x30] sm:$0xe] }
 0x162   : > { %10170 = vst [vmem:[#allocation36_spill] sm:$0xff] %v8954_v29  ;;  %v8962_v36 = vsel %vm8107_vm13, %v5924_v56, %v5925_v2  ;;  %v8966_v10 = vsel %vm8107_vm13, %v6868_v25, %v5929_v49  ;;  %v5832_v58 = vld [vmem:[#allocation2 + $0x38] sm:$0x1]  ;;  %v5936_v23 = vrot.slane %v8950_v4, 5  ;;  %v10173_v20 = vcombine.low %v8725_v63, %v8729_v32  ;;  %v5043_v49 = vld [vmem:[#allocation2 + $0x3c] sm:$0xf] }
 0x163   : > { %10171 = vst [vmem:[#allocation37_spill] sm:$0xff] %v8962_v36  ;;  %10172 = vst [vmem:[#allocation38_spill] sm:$0xff] %v8966_v10  ;;  %v5042_v34 = vld [vmem:[#allocation2 + $0x38] sm:$0x1]  ;;  %v8975_v48 = vsel %vm8107_vm13, %v5931_v11, %v5932_v24  ;;  %v7225_v9 = vpop.f32.mrf.mxu1  ;;  %v5114_v2 = vrot.slane %v5113_v33, 4  ;;  %v5124_v28 = vrot.slane %v5123_v52, 4  ;;  %v10176_v25 = vcombine.low %v8735_v45, %v8739_v43 }
 0x164   : > { %10174 = vst [vmem:[#allocation39_spill] sm:$0xff] %v8975_v48  ;;  %v5128_v56 = vrot.slane %v5126_v6, 5  ;;  %v8977_v29 = vpop.f32.mrf.mxu0  ;;  %v5133_v4 = vrot.slane %v5131_v3, 4  ;;  %v5136_v63 = vrot.slane %v5134_v46, 5  ;;  %v8983_v32 = vrot.slane %v5140_v15, 5  ;;  %v10304_v44 = vld [vmem:[#allocation25_spill] sm:$0xff] }
 0x165   : > { %10175 = vst [vmem:[#allocation40_spill] sm:$0xff] %v8977_v29  ;;  %v5044_v16 = vld [vmem:[#allocation2 + $0x40] sm:$0xf]  ;;  %v5095_v11 = vsel %vm8151_vm7, %v5090_v26, %v8910_v12  ;;  %v5105_v45 = vsel %vm8151_vm7, %v5100_v37, %v5104_v21  ;;  %v2041_v43 = vpop.f32.mrf.mxu1  ;;  %v6869_v33 = vrot.slane %v5830_v53, 9  ;;  %v5939_v15 = vrot.slane %v5832_v58, 5 }
 0x166   : > { %7368 = vmatmul.mubr.msk.bf16.gmra.mxu1 %vm1225_vm5, %v10173_v20  ;;  %v5146_v20 = vrot.slane %v5144_v59, 4  ;;  %v5834_v52 = vld [vmem:[#allocation2 + $0x40] sm:$0xf]  ;;  %v8993_v6 = vpop.f32.mrf.mxu0  ;;  %v5938_v59 = vrot.slane %v5936_v23, 4  ;;  %v5155_v3 = vshrl.u32 %v5043_v49, 16  ;;  %v5158_v46 = vshll.u32 %v5043_v49, 16 }
 0x167   : > { %7371 = vmatprep.mubr.msk.bf16.mxu1 %vm1225_vm5, %v10176_v25  ;;  %10177 = vst [vmem:[#allocation41_spill] sm:$0xff] %v8993_v6  ;;  %v5119_v12 = vsel %vm8151_vm7, %v5114_v2, %v8933_v57  ;;  %v7226_v26 = vpop.f32.mrf.mxu1  ;;  %v5150_v37 = vshll.u32 %v5042_v34, 16  ;;  %v5833_v21 = vld [vmem:[#allocation2 + $0x3c] sm:$0xe]  ;;  %v5164_v53 = vshll.u32 %v5044_v16, 16  ;;  %v5129_v25 = vsel %vm8151_vm7, %v5124_v28, %v5128_v56  ;;  %v7584_v49 = vld [vmem:[#allocation2 + $0x54] sm:$0xff]  }
 0x168   : > { %7398 = vmatmul.mubr.msk.bf16.gmra.mxu0 %vm1225_vm5, %v7582_v50  ;;  %v5137_v24 = vor.u32 %v5136_v63, %v5133_v4  ;;  %v5943_v58 = vrot.slane %v5834_v52, 5  ;;  %v9004_v6 = vpop.f32.mrf.mxu0  ;;  %v9006_v29 = vcombine.low %v5095_v11, %v5105_v45  ;;  %v5835_v48 = vld [vmem:[#allocation2 + $0x44] sm:$0x1]  ;;  %v5157_v10 = vrot.slane %v5155_v3, 4 }
 0x169   : > { %7401 = vmatprep.mubr.msk.bf16.mxu0 %vm1225_vm5, %v7583_v39  ;;  %v5147_v39 = vor.u32 %v5146_v20, %v8983_v32  ;;  %10178 = vst [vmem:[#allocation42_spill] sm:$0xff] %v9004_v6  ;;  %v2044_v50 = vpop.f32.mrf.mxu1  ;;  %v5160_v57 = vrot.slane %v5158_v46, 5  ;;  %v5168_v2 = vshrl.u32 %v5044_v16, 16  ;;  %v7585_v34 = vld [vmem:[#allocation2 + $0x60] sm:$0xff]   ;;  %v9009_v36 = vadd.f32 %v7225_v9, %v8558_v40  ;;  %v9019_v20 = vld [vmem:[#allocation2 + $0x4c] sm:$0xf] }
 0x16a   : > { %v9013_v28 = vsel %vm8107_vm13, %v6869_v33, %v5936_v23  ;;  %v9017_v56 = vsel %vm8107_vm13, %v5938_v59, %v5939_v15  ;;  %v6870_v4 = vrot.slane %v5833_v21, 9  ;;  %v5045_v63 = vld [vmem:[#allocation2 + $0x44] sm:$0x1]  ;;  %v10179_v11 = vcombine.low %v8743_v14, %v8747_v62  ;;  %v5046_v33 = vld [vmem:[#allocation2 + $0x48] sm:$0xf]  ;;  %v9033_v14 = vpop.f32.mrf.mxu0 }
 0x16b   : > { %v9025_v16 = vcombine.low %v5119_v12, %v5129_v25  ;;  %v5152_v40 = vrot.slane %v5150_v37, 5  ;;  %v7229_v9 = vpop.f32.mrf.mxu1  ;;  %v9027_v45 = vrot.slane %v5164_v53, 5  ;;  %v5170_v23 = vrot.slane %v5168_v2, 4  ;;  %10181 = vst [vmem:[#allocation43_spill] sm:$0xff] %v9033_v14  ;;  %v5047_v62 = vld [vmem:[#allocation2 + $0x4c] sm:$0xf] }
 0x16c   : > { %v10180_v52 = vcombine.low %v8779_v13, %v8789_v5  ;;  %v5138_v59 = vrot.slane %v5137_v24, 4  ;;  %v5148_v15 = vrot.slane %v5147_v39, 4  ;;  %v5945_v3 = vrot.slane %v5943_v58, 4  ;;  %v5836_v24 = vld [vmem:[#allocation2 + $0x48] sm:$0xe] }
 0x16d   : > { %v5946_v46 = vrot.slane %v5835_v48, 5  ;;  %v9037_v12 = vadd.f32 %v2041_v43, %v8564_v27  ;;  %v5161_v21 = vor.u32 %v5160_v57, %v5157_v10  ;;  %v2057_v53 = vpop.f32.mrf.mxu1  ;;  %v5950_v13 = vrot.slane %v9019_v20, 5  ;;  %v5838_v25 = vld [vmem:[#allocation2 + $0x50] sm:$0x1]  ;;  %v9224_v14 = vld [vmem:[#allocation2 + $0x78] sm:$0xe] }
 0x16e   : > { %7372 = vmatmul.mubr.msk.bf16.gmra.mxu1 %vm1225_vm5, %v10179_v11  ;;  %v9044_v5 = vadd.f32 %v7226_v26, %v8572_v38  ;;  %v9048_v48 = vsel %vm8107_vm13, %v6870_v4, %v5943_v58  ;;  %v5179_v27 = vshrl.u32 %v5046_v33, 16  ;;  %v5182_v43 = vshll.u32 %v5046_v33, 16  ;;  %v7586_v20 = vld [vmem:[#allocation2 + $0x6c] sm:$0xff]  }
 0x16f   : > { %7375 = vmatprep.mubr.msk.bf16.mxu1 %vm1225_vm5, %v10180_v52  ;;  %v5171_v39 = vor.u32 %v5170_v23, %v9027_v45  ;;  %v7230_v10 = vpop.f32.mrf.mxu1  ;;  %v5188_v57 = vshll.u32 %v5047_v62, 16  ;;  %v5192_v2 = vshrl.u32 %v5047_v62, 16  ;;  %v5143_v38 = vsel %vm8151_vm7, %v5138_v59, %v8983_v32  ;;  %v5050_v52 = vld [vmem:[#allocation2 + $0x58] sm:$0xf]  ;;  %v5063_v6 = vld [vmem:[#allocation2 + $0x8c] sm:$0x1] }
 0x170   : > { %7402 = vmatmul.mubr.msk.bf16.gmra.mxu0 %vm1225_vm5, %v7584_v49  ;;  %v5174_v49 = vshll.u32 %v5045_v63, 16  ;;  %v5153_v26 = vsel %vm8151_vm7, %v5148_v15, %v5152_v40  ;;  %v9061_v58 = vsel %vm8107_vm13, %v5945_v3, %v5946_v46  ;;  %v5049_v63 = vld [vmem:[#allocation2 + $0x54] sm:$0xf]  ;;  %v9065_v11 = vrot.slane %v5161_v21, 4  ;;  %v7587_v62 = vld [vmem:[#allocation2 + $0x78] sm:$0xff]  }
 0x171   : > { %7405 = vmatprep.mubr.msk.bf16.mxu0 %vm1225_vm5, %v7585_v34  ;;  %v9052_v34 = vadd.f32 %v2044_v50, %v8586_v47  ;;  %v9063_v4 = vpop.f32.mrf.mxu0  ;;  %v9067_v23 = vpop.f32.mrf.mxu1  ;;  %v6871_v47 = vrot.slane %v5836_v24, 9  ;;  %v5952_v50 = vrot.slane %v5950_v13, 4  ;;  %v5953_v33 = vrot.slane %v5838_v25, 5 }
 0x172   : > { %10182 = vst [vmem:[#allocation44_spill] sm:$0xff] %v9063_v4  ;;  %v5181_v32 = vrot.slane %v5179_v27, 4  ;;  %v5184_v59 = vrot.slane %v5182_v43, 5  ;;  %v9069_v37 = vrot.slane %v5188_v57, 5  ;;  %v5194_v40 = vrot.slane %v5192_v2, 4 }
 0x173   : > { %v9071_v15 = vpop.f32.mrf.mxu0  ;;  %v10184_v3 = vcombine.low %v8793_v1, %v8820_v41  ;;  %v9077_v46 = vcombine.low %v5143_v38, %v5153_v26  ;;  %v5172_v24 = vrot.slane %v5171_v39, 4  ;;  %v5176_v25 = vrot.slane %v5174_v49, 5  ;;  %v5048_v4 = vld [vmem:[#allocation2 + $0x50] sm:$0x1]  ;;  %v5839_v26 = vld [vmem:[#allocation2 + $0x54] sm:$0xe] }
 0x174   : > { %10183 = vst [vmem:[#allocation45_spill] sm:$0xff] %v9071_v15  ;;  %v7233_v27 = vpop.f32.mrf.mxu1  ;;  %v10185_v43 = vcombine.low %v8824_v61, %v8831_v18  ;;  %v5203_v1 = vshrl.u32 %v5049_v63, 16  ;;  %v5206_v41 = vshll.u32 %v5049_v63, 16  ;;  %v5212_v2 = vshll.u32 %v5050_v52, 16  ;;  %v5840_v63 = vld [vmem:[#allocation2 + $0x58] sm:$0xf] }
 0x175   : > { %v9086_v57 = vadd.f32 %v7233_v27, %v8678_v42  ;;  %v9090_v38 = vadd.f32 %v7229_v9, %v8600_v0  ;;  %v5167_v39 = vsel %vm8151_vm7, %v9065_v11, %v9027_v45  ;;  %v9098_v61 = vsel %vm8107_vm13, %v6871_v47, %v5950_v13  ;;  %v9104_v49 = vpop.f32.mrf.mxu0  ;;  %v7588_v11 = vld [vmem:[#allocation2 + $0x84] sm:$0xff]  }
 0x176   : > { %7376 = vmatmul.mubr.msk.bf16.gmra.mxu1 %vm1225_vm5, %v10184_v3  ;;  %v9102_v42 = vsel %vm8107_vm13, %v5952_v50, %v5953_v33  ;;  %v2073_v18 = vpop.f32.mrf.mxu1  ;;  %10187 = vst [vmem:[#allocation47_spill] sm:$0xff] %v9104_v49  ;;  %v5185_v0 = vor.u32 %v5184_v59, %v5181_v32  ;;  %v5195_v9 = vor.u32 %v5194_v40, %v9069_v37  ;;  %v5216_v45 = vshrl.u32 %v5050_v52, 16  ;;  %v5051_v33 = vld [vmem:[#allocation2 + $0x5c] sm:$0x1]  ;;  %v5843_v59 = vld [vmem:[#allocation2 + $0x64] sm:$0xf] }
 0x177   : > { %7379 = vmatprep.mubr.msk.bf16.mxu1 %vm1225_vm5, %v10185_v43  ;;  %10186 = vst [vmem:[#allocation46_spill] sm:$0xff] %v9086_v57  ;;  %v5177_v13 = vsel %vm8151_vm7, %v5172_v24, %v5176_v25  ;;  %v9111_v47 = vadd.f32 %v2057_v53, %v8606_v54  ;;  %v9114_v50 = vadd.f32 %v7230_v10, %v8613_v35  ;;  %v5205_v40 = vrot.slane %v5203_v1, 4  ;;  %v5052_v43 = vld [vmem:[#allocation2 + $0x60] sm:$0xf]  ;;  %v5841_v53 = vld [vmem:[#allocation2 + $0x5c] sm:$0x1] }
 0x178   : > { %7406 = vmatmul.mubr.msk.bf16.gmra.mxu0 %vm1225_vm5, %v7586_v20  ;;  %v5198_v20 = vshll.u32 %v5048_v4, 16  ;;  %v7234_v32 = vpop.f32.mrf.mxu1  ;;  %v7589_v4 = vld [vmem:[#allocation2 + $0x90] sm:$0xff]   ;;  %v5208_v3 = vrot.slane %v5206_v41, 5  ;;  %v9119_v52 = vrot.slane %v5212_v2, 5  ;;  %v5218_v27 = vrot.slane %v5216_v45, 4  ;;  %v10191_v10 = vld [vmem:[#allocation15_spill] sm:$0xff] }
 0x179   : > { %7409 = vmatprep.mubr.msk.bf16.mxu0 %vm1225_vm5, %v7587_v62  ;;  %10188 = vst [vmem:[#allocation48_spill] sm:$0xff] %v9111_v47  ;;  %10189 = vst [vmem:[#allocation49_spill] sm:$0xff] %v9114_v50  ;;  %v9117_v62 = vadd.f32 %v2073_v18, %v8698_v17  ;;  %v6872_v24 = vrot.slane %v5839_v26, 9  ;;  %v5957_v35 = vrot.slane %v5840_v63, 5  ;;  %v9124_v25 = vadd.f32 %v7234_v32, %v10191_v10  ;;  %v9126_v17 = vpop.f32.mrf.mxu0  ;;  %v5053_v18 = vld [vmem:[#allocation2 + $0x64] sm:$0xf] }
 0x17a   : > { %10193 = vst [vmem:[#allocation51_spill] sm:$0xff] %v9126_v17  ;;  %v5186_v21 = vrot.slane %v5185_v0, 4  ;;  %v5196_v49 = vrot.slane %v5195_v9, 4  ;;  %v5200_v1 = vrot.slane %v5198_v20, 5  ;;  %v5842_v41 = vld [vmem:[#allocation2 + $0x60] sm:$0xe]  ;;  %v10194_v45 = vcombine.low %v8835_v60, %v8839_v19  ;;  %v9134_v63 = vpop.f32.mrf.mxu1 }
 0x17b   : > { %10190 = vst [vmem:[#allocation50_spill] sm:$0xff] %v9117_v62  ;;  %10192 = vst [vmem:[#allocation15_spill] sm:$0xff] %v9124_v25  ;;  %v5964_v2 = vrot.slane %v5843_v59, 5  ;;  %v9132_v54 = vcombine.low %v5167_v39, %v5177_v13  ;;  %v5222_v26 = vshll.u32 %v5051_v33, 16  ;;  %v5844_v32 = vld [vmem:[#allocation2 + $0x68] sm:$0x1]  ;;  %v10196_v0 = vcombine.low %v8849_v7, %v8860_v8 }
 0x17c   : > { %10195 = vst [vmem:[#allocation52_spill] sm:$0xff] %v9134_v63  ;;  %v5227_v10 = vshrl.u32 %v5052_v43, 16  ;;  %v5230_v25 = vshll.u32 %v5052_v43, 16  ;;  %v5209_v9 = vor.u32 %v5208_v3, %v5205_v40  ;;  %v5219_v20 = vor.u32 %v5218_v27, %v9119_v52  ;;  %v5054_v3 = vld [vmem:[#allocation2 + $0x68] sm:$0x1] }
 0x17d   : > { %v5236_v59 = vshll.u32 %v5053_v18, 16  ;;  %v5240_v60 = vshrl.u32 %v5053_v18, 16  ;;  %v9144_v19 = vsel %vm8107_vm13, %v6872_v24, %v5957_v35  ;;  %v5959_v39 = vrot.slane %v5957_v35, 4  ;;  %v5055_v27 = vld [vmem:[#allocation2 + $0x6c] sm:$0xf] }
 0x17e   : > { %7380 = vmatmul.mubr.msk.bf16.gmra.mxu1 %vm1225_vm5, %v10194_v45  ;;  %v5960_v13 = vrot.slane %v5841_v53, 5  ;;  %v6873_v33 = vrot.slane %v5842_v41, 9  ;;  %v9146_v43 = vpop.f32.mrf.mxu0  ;;  %v5191_v7 = vsel %vm8151_vm7, %v5186_v21, %v9069_v37  ;;  %v5201_v8 = vsel %vm8151_vm7, %v5196_v49, %v5200_v1  ;;  %v5056_v45 = vld [vmem:[#allocation2 + $0x70] sm:$0xf]  ;;  %v10199_v37 = vld [vmem:[#allocation19_spill] sm:$0xff] }
 0x17f   : > { %7383 = vmatprep.mubr.msk.bf16.mxu1 %vm1225_vm5, %v10196_v0  ;;  %10197 = vst [vmem:[#allocation53_spill] sm:$0xff] %v9146_v43  ;;  %v5966_v40 = vrot.slane %v5964_v2, 4  ;;  %v5229_v24 = vrot.slane %v5227_v10, 4  ;;  %v5232_v18 = vrot.slane %v5230_v25, 5  ;;  %v9154_v35 = vrot.slane %v5236_v59, 5  ;;  %v7590_v49 = vld [vmem:[#allocation2 + $0x9c] sm:$0xff]  }
 0x180   : > { %7410 = vmatmul.mubr.msk.bf16.gmra.mxu0 %vm1225_vm5, %v7588_v11  ;;  %v5967_v11 = vrot.slane %v5844_v32, 5  ;;  %v5242_v53 = vrot.slane %v5240_v60, 4  ;;  %v9156_v0 = vpop.f32.mrf.mxu0  ;;  %v5220_v43 = vrot.slane %v5219_v20, 4  ;;  %v5224_v17 = vrot.slane %v5222_v26, 5  ;;  %v9169_v32 = vld [vmem:[#allocation2 + $0x70] sm:$0xf] }
 0x181   : > { %7413 = vmatprep.mubr.msk.bf16.mxu0 %vm1225_vm5, %v7589_v4  ;;  %v7237_v41 = vpop.f32.mrf.mxu1  ;;  %10198 = vst [vmem:[#allocation54_spill] sm:$0xff] %v9156_v0  ;;  %v5210_v4 = vrot.slane %v5209_v9, 4  ;;  %v9163_v1 = vsel %vm8107_vm13, %v5959_v39, %v5960_v13  ;;  %v9167_v25 = vsel %vm8107_vm13, %v6873_v33, %v5964_v2  ;;  %v5251_v10 = vshrl.u32 %v5055_v27, 16  ;;  %v7591_v9 = vld [vmem:[#allocation2 + $0xa8] sm:$0xff]   ;;  %v10202_v39 = vld [vmem:[#allocation24_spill] sm:$0xff]  ;;  %v10203_v13 = vld [vmem:[#allocation26_spill] sm:$0xff] }
 0x182   : > { %v9159_v21 = vadd.f32 %v7237_v41, %v10199_v37  ;;  %v5254_v59 = vshll.u32 %v5055_v27, 16  ;;  %v9173_v26 = vsel %vm8107_vm13, %v5966_v40, %v5967_v11  ;;  %v5246_v20 = vshll.u32 %v5054_v3, 16  ;;  %v10205_v2 = vld [vmem:[#allocation11_spill] sm:$0xff] }
 0x183   : > { %v2089_v60 = vpop.f32.mrf.mxu1  ;;  %v5260_v41 = vshll.u32 %v5056_v45, 16  ;;  %v5264_v37 = vshrl.u32 %v5056_v45, 16  ;;  %v10204_v15 = vcombine.low %v10202_v39, %v10203_v13  ;;  %v9183_v33 = vadd.f32 %v9067_v23, %v10205_v2  ;;  %v5058_v13 = vld [vmem:[#allocation2 + $0x78] sm:$0xf]  ;;  %v5059_v2 = vld [vmem:[#allocation2 + $0x7c] sm:$0xf] }
 0x184   : > { %10200 = vst [vmem:[#allocation19_spill] sm:$0xff] %v9159_v21  ;;  %v9175_v21 = vpop.f32.mrf.mxu0  ;;  %v9185_v27 = vcombine.low %v5191_v7, %v5201_v8  ;;  %v5233_v62 = vor.u32 %v5232_v18, %v5229_v24  ;;  %v5243_v40 = vor.u32 %v5242_v53, %v9154_v35  ;;  %v10207_v3 = vcombine.low %v8892_v51, %v8901_v22  ;;  %v5845_v7 = vld [vmem:[#allocation2 + $0x6c] sm:$0xe]  ;;  %v5847_v8 = vld [vmem:[#allocation2 + $0x74] sm:$0x1] }
 0x185   : > { %10201 = vst [vmem:[#allocation55_spill] sm:$0xff] %v9175_v21  ;;  %10206 = vst [vmem:[#allocation24_spill] sm:$0xff] %v9183_v33  ;;  %v7238_v11 = vpop.f32.mrf.mxu1  ;;  %v5225_v23 = vsel %vm8151_vm7, %v5220_v43, %v5224_v17  ;;  %v5971_v24 = vrot.slane %v9169_v32, 5  ;;  %v5253_v51 = vrot.slane %v5251_v10, 4  ;;  %v5256_v18 = vrot.slane %v5254_v59, 5  ;;  %v10208_v53 = vld [vmem:[#allocation21_spill] sm:$0xff] }
 0x186   : > { %7384 = vmatmul.mubr.msk.bf16.gmra.mxu1 %vm1225_vm5, %v10204_v15  ;;  %v5215_v15 = vsel %vm8151_vm7, %v5210_v4, %v9119_v52  ;;  %v9204_v39 = vadd.f32 %v2089_v60, %v10208_v53  ;;  %v9207_v52 = vrot.slane %v5246_v20, 5  ;;  %v5057_v17 = vld [vmem:[#allocation2 + $0x74] sm:$0x1]  ;;  %v9209_v43 = vrot.slane %v5260_v41, 5 }
 0x187   : > { %7387 = vmatprep.mubr.msk.bf16.mxu1 %vm1225_vm5, %v10207_v3  ;;  %v5266_v4 = vrot.slane %v5264_v37, 4  ;;  %v10210_v32 = vld [vmem:[#allocation22_spill] sm:$0xff]  ;;  %v9214_v3 = vpop.f32.mrf.mxu0  ;;  %v9216_v59 = vrot.slane %v5233_v62, 4  ;;  %v5244_v60 = vrot.slane %v5243_v40, 4  ;;  %v6874_v53 = vrot.slane %v5845_v7, 9  ;;  %v9218_v63 = vpop.f32.mrf.mxu1  ;;  %v7593_v40 = vld [vmem:[#allocation2 + $0xc0] sm:$0xff]  }
 0x188   : > { %7414 = vmatmul.mubr.msk.bf16.gmra.mxu0 %vm1225_vm5, %v7590_v49  ;;  %10209 = vst [vmem:[#allocation26_spill] sm:$0xff] %v9204_v39  ;;  %v9212_v49 = vadd.f32 %v7238_v11, %v10210_v32  ;;  %10212 = vst [vmem:[#allocation21_spill] sm:$0xff] %v9214_v3  ;;  %v7592_v10 = vld [vmem:[#allocation2 + $0xb4] sm:$0xff]   ;;  %v5974_v22 = vrot.slane %v5847_v8, 5  ;;  %v5973_v45 = vrot.slane %v5971_v24, 4  ;;  %v5275_v20 = vshrl.u32 %v5058_v13, 16 }
 0x189   : > { %7417 = vmatprep.mubr.msk.bf16.mxu0 %vm1225_vm5, %v7591_v9  ;;  %10213 = vst [vmem:[#allocation22_spill] sm:$0xff] %v9218_v63  ;;  %v9220_v9 = vld [vmem:[#allocation2 + $0x7c] sm:$0xf]  ;;  %v5278_v41 = vshll.u32 %v5058_v13, 16  ;;  %v5284_v57 = vshll.u32 %v5059_v2, 16  ;;  %v9222_v37 = vcombine.low %v5215_v15, %v5225_v23  ;;  %v5257_v11 = vor.u32 %v5256_v18, %v5253_v51  ;;  %v10215_v15 = vld [vmem:[#allocation33_spill] sm:$0xff] }
 0x18a   : > { %10211 = vst [vmem:[#allocation11_spill] sm:$0xff] %v9212_v49  ;;  %v5270_v32 = vshll.u32 %v5057_v17, 16  ;;  %v5288_v3 = vshrl.u32 %v5059_v2, 16  ;;  %v9226_v62 = vld [vmem:[#allocation2 + $0x88] sm:$0xf]  ;;  %v5267_v7 = vor.u32 %v5266_v4, %v9209_v43  ;;  %v5277_v33 = vrot.slane %v5275_v20, 4 }
 0x18b   : > { %v5060_v63 = vld [vmem:[#allocation2 + $0x80] sm:$0x1]  ;;  %v5280_v21 = vrot.slane %v5278_v41, 5  ;;  %v9231_v49 = vrot.slane %v5284_v57, 5  ;;  %v10216_v23 = vcombine.low %v8930_v30, %v10215_v15  ;;  %v5239_v51 = vsel %vm8151_vm7, %v9216_v59, %v9154_v35  ;;  %v5061_v57 = vld [vmem:[#allocation2 + $0x84] sm:$0xf] }
 0x18c   : > { %v9229_v8 = vpop.f32.mrf.mxu0  ;;  %v9243_v18 = vsel %vm8107_vm13, %v6874_v53, %v5971_v24  ;;  %v5850_v13 = vld [vmem:[#allocation2 + $0x80] sm:$0x1]  ;;  %v5978_v2 = vrot.slane %v9220_v9, 5  ;;  %v5290_v17 = vrot.slane %v5288_v3, 4  ;;  %v5249_v30 = vsel %vm8151_vm7, %v5244_v60, %v9207_v52  ;;  %v5851_v59 = vld [vmem:[#allocation2 + $0x84] sm:$0xe] }
 0x18d   : > { %10214 = vst [vmem:[#allocation56_spill] sm:$0xff] %v9229_v8  ;;  %v9253_v4 = vsel %vm8107_vm13, %v5973_v45, %v5974_v22  ;;  %v5281_v35 = vor.u32 %v5280_v21, %v5277_v33  ;;  %v5985_v24 = vrot.slane %v9226_v62, 5  ;;  %v5062_v9 = vld [vmem:[#allocation2 + $0x88] sm:$0xf]  ;;  %v9263_v20 = vrot.slane %v5270_v32, 5 }
 0x18e   : > { %7388 = vmatmul.mubr.msk.bf16.gmra.mxu1 %vm1225_vm5, %v10216_v23  ;;  %v9256_v53 = vpop.f32.mrf.mxu1  ;;  %v9258_v3 = vpop.f32.mrf.mxu0  ;;  %v5291_v52 = vor.u32 %v5290_v17, %v9231_v49  ;;  %v5294_v60 = vshll.u32 %v5060_v63, 16  ;;  %v5853_v45 = vld [vmem:[#allocation2 + $0x8c] sm:$0x1]  ;;  %v5268_v21 = vrot.slane %v5267_v7, 4  ;;  %v6875_v33 = vrot.slane %v9224_v14, 9 }
 0x18f   : > { %7427 = vmatprep.mubr.msk.bf16.mxu1 %vm1225_vm5, %v9006_v29  ;;  %10217 = vst [vmem:[#allocation33_spill] sm:$0xff] %v9258_v3  ;;  %v9261_v29 = vrot.slane %v5257_v11, 4  ;;  %v5981_v22 = vrot.slane %v5850_v13, 5  ;;  %v5299_v41 = vshrl.u32 %v5061_v57, 16  ;;  %v5302_v11 = vshll.u32 %v5061_v57, 16  ;;  %v7594_v3 = vld [vmem:[#allocation2 + $0xcc] sm:$0xff]  }
 0x190   : > { %7418 = vmatmul.mubr.msk.bf16.gmra.mxu0 %vm1225_vm5, %v7592_v10  ;;  %v9268_v62 = vpop.f32.mrf.mxu1  ;;  %v9270_v15 = vpop.f32.mrf.mxu0  ;;  %v5980_v10 = vrot.slane %v5978_v2, 4  ;;  %v5308_v23 = vshll.u32 %v5062_v9, 16  ;;  %v5312_v32 = vshrl.u32 %v5062_v9, 16  ;;  %v5282_v8 = vrot.slane %v5281_v35, 4 }
 0x191   : > { %7421 = vmatprep.mubr.msk.bf16.mxu0 %vm1225_vm5, %v7593_v40  ;;  %10218 = vst [vmem:[#allocation57_spill] sm:$0xff] %v9270_v15  ;;  %v6876_v17 = vrot.slane %v5851_v59, 9  ;;  %v5987_v63 = vrot.slane %v5985_v24, 4  ;;  %v5988_v0 = vrot.slane %v5853_v45, 5  ;;  %v9274_v40 = vcombine.low %v5239_v51, %v5249_v30  ;;  %v5064_v15 = vld [vmem:[#allocation2 + $0x90] sm:$0xf] }
 0x192   : > { %v9272_v39 = vpop.f32.mrf.mxu1  ;;  %v5292_v7 = vrot.slane %v5291_v52, 4  ;;  %v5296_v13 = vrot.slane %v5294_v60, 5  ;;  %v5301_v50 = vrot.slane %v5299_v41, 4  ;;  %v5304_v57 = vrot.slane %v5302_v11, 5  ;;  %v9280_v35 = vpop.f32.mrf.mxu0  ;;  %v5065_v59 = vld [vmem:[#allocation2 + $0x94] sm:$0xf] }
 0x193   : > { %v9278_v47 = vrot.slane %v5308_v23, 5  ;;  %v5314_v9 = vrot.slane %v5312_v32, 4  ;;  %10219 = vst [vmem:[#allocation58_spill] sm:$0xff] %v9280_v35  ;;  %v5263_v51 = vsel %vm8151_vm7, %v9261_v29, %v9209_v43  ;;  %v5273_v30 = vsel %vm8151_vm7, %v5268_v21, %v9263_v20  ;;  %v9314_v20 = vld [vmem:[#allocation2 + $0x94] sm:$0xf] }
 0x194   : > { %v9293_v52 = vsel %vm8107_vm13, %v6875_v33, %v5978_v2  ;;  %v9297_v60 = vsel %vm8107_vm13, %v5980_v10, %v5981_v22  ;;  %v9306_v43 = vsel %vm8107_vm13, %v6876_v17, %v5985_v24  ;;  %v9310_v29 = vsel %vm8107_vm13, %v5987_v63, %v5988_v0  ;;  %v9312_v2 = vpop.f32.mrf.mxu1  ;;  %v5066_v21 = vld [vmem:[#allocation2 + $0x98] sm:$0x1]  ;;  %v5854_v11 = vld [vmem:[#allocation2 + $0x90] sm:$0xe] }
 0x195   : > { %v5323_v45 = vshrl.u32 %v5064_v15, 16  ;;  %v5326_v33 = vshll.u32 %v5064_v15, 16  ;;  %v5332_v22 = vshll.u32 %v5065_v59, 16  ;;  %v5297_v0 = vsel %vm8151_vm7, %v5292_v7, %v5296_v13  ;;  %v10223_v7 = vld [vmem:[#allocation7_spill] sm:$0xff] }
 0x196   : > { %7428 = vmatmul.mubr.msk.bf16.vlgmr.msra.gmra.mxu1 %vm1225_vm5, %v9025_v16  ;;  %v5287_v16 = vsel %vm8151_vm7, %v5282_v8, %v9231_v49  ;;  %v5336_v49 = vshrl.u32 %v5065_v59, 16  ;;  %v10220_v8 = vld [vmem:[#allocation37_spill] sm:$0xff]  ;;  %v5305_v41 = vor.u32 %v5304_v57, %v5301_v50  ;;  %v5315_v10 = vor.u32 %v5314_v9, %v9278_v47  ;;  %v5067_v9 = vld [vmem:[#allocation2 + $0x9c] sm:$0xf] }
 0x197   : > { %7431 = vmatprep.mubr.msk.bf16.mxu1 %vm1225_vm5, %v9077_v46  ;;  %v5318_v46 = vshll.u32 %v5063_v6, 16  ;;  %v10221_v24 = vcombine.low %v8958_v55, %v10220_v8  ;;  %v5856_v6 = vld [vmem:[#allocation2 + $0x98] sm:$0x1]  ;;  %v5992_v15 = vrot.slane %v9314_v20, 5  ;;  %v5328_v32 = vrot.slane %v5326_v33, 5  ;;  %v10275_v31 = vld [vmem:[#allocation33_spill] sm:$0xff] }
 0x198   : > { %7422 = vmatmul.mubr.msk.bf16.gmra.mxu0 %vm1225_vm5, %v7594_v3  ;;  %v9324_v23 = vpop.f32.mrf.mxu0  ;;  %v5325_v3 = vrot.slane %v5323_v45, 4  ;;  %v9327_v17 = vrot.slane %v5332_v22, 5  ;;  %v5338_v63 = vrot.slane %v5336_v49, 4  ;;  %v9329_v55 = vcombine.low %v5263_v51, %v5273_v30  ;;  %v5858_v22 = vld [vmem:[#allocation2 + $0xa0] sm:$0xf] }
 0x199   : > { %7461 = vmatprep.mubr.msk.bf16.mxu0 %vm1225_vm5, %v10221_v24  ;;  %10222 = vst [vmem:[#allocation37_spill] sm:$0xff] %v9324_v23  ;;  %v9335_v50 = vadd.f32 %v9256_v53, %v10223_v7  ;;  %v5342_v13 = vshll.u32 %v5066_v21, 16  ;;  %v9341_v20 = vcombine.low %v5287_v16, %v5297_v0  ;;  %v5068_v49 = vld [vmem:[#allocation2 + $0xa0] sm:$0xf]  ;;  %v5306_v8 = vrot.slane %v5305_v41, 4 }
 0x19a   : > { %v9339_v45 = vpop.f32.mrf.mxu0  ;;  %v5329_v51 = vor.u32 %v5328_v32, %v5325_v3  ;;  %v5339_v30 = vor.u32 %v5338_v63, %v9327_v17  ;;  %v5320_v24 = vrot.slane %v5318_v46, 5  ;;  %v6877_v53 = vrot.slane %v5854_v11, 9  ;;  %v5857_v32 = vld [vmem:[#allocation2 + $0x9c] sm:$0xe]  ;;  %v5859_v23 = vld [vmem:[#allocation2 + $0xa4] sm:$0x1] }
 0x19b   : > { %v9337_v57 = vpop.f32.mrf.mxu1  ;;  %10224 = vst [vmem:[#allocation7_spill] sm:$0xff] %v9339_v45  ;;  %v5995_v7 = vrot.slane %v5856_v6, 5  ;;  %v5316_v59 = vrot.slane %v5315_v10, 4  ;;  %v5994_v16 = vrot.slane %v5992_v15, 4  ;;  %v5347_v0 = vshrl.u32 %v5067_v9, 16  ;;  %v10226_v6 = vld [vmem:[#allocation38_spill] sm:$0xff] }
 0x19c   : > { %v5350_v14 = vshll.u32 %v5067_v9, 16  ;;  %v9350_v45 = vpop.f32.mrf.mxu0  ;;  %v5344_v3 = vrot.slane %v5342_v13, 5  ;;  %v5999_v41 = vrot.slane %v5858_v22, 5  ;;  %v5356_v46 = vshll.u32 %v5068_v49, 16  ;;  %v10227_v63 = vld [vmem:[#allocation39_spill] sm:$0xff]  ;;  %v10231_v22 = vld [vmem:[#allocation9_spill] sm:$0xff] }
 0x19d   : > { %v9346_v21 = vpop.f32.mrf.mxu1  ;;  %10225 = vst [vmem:[#allocation59_spill] sm:$0xff] %v9350_v45  ;;  %v5360_v11 = vshrl.u32 %v5068_v49, 16  ;;  %v10228_v33 = vcombine.low %v10226_v6, %v10227_v63  ;;  %v5340_v10 = vrot.slane %v5339_v30, 4  ;;  %v5349_v35 = vrot.slane %v5347_v0, 4  ;;  %v5069_v6 = vld [vmem:[#allocation2 + $0xa4] sm:$0x1] }
 0x19e   : > { %7432 = vmatmul.mubr.msk.bf16.gmra.mxu1 %vm1225_vm5, %v9132_v54  ;;  %v5330_v54 = vrot.slane %v5329_v51, 4  ;;  %v5352_v9 = vrot.slane %v5350_v14, 5  ;;  %v10229_v45 = vcombine.low %v9013_v28, %v9017_v56  ;;  %v9368_v49 = vadd.f32 %v9272_v39, %v10231_v22  ;;  %v10232_v28 = vld [vmem:[#allocation10_spill] sm:$0xff]  ;;  %v9383_v39 = vpop.f32.mrf.mxu0  ;;  %v5070_v0 = vld [vmem:[#allocation2 + $0xa8] sm:$0xf] }
 0x19f   : > { %7435 = vmatprep.mubr.msk.bf16.mxu1 %vm1225_vm5, %v9185_v27  ;;  %v10230_v27 = vld [vmem:[#allocation8_spill] sm:$0xff]  ;;  %v5362_v51 = vrot.slane %v5360_v11, 4  ;;  %v7246_v30 = vpop.f32.mrf.mxu1  ;;  %v5311_v14 = vsel %vm8151_vm7, %v5306_v8, %v9278_v47  ;;  %v9377_v56 = vadd.f32 %v9312_v2, %v10232_v28  ;;  %10233 = vst [vmem:[#allocation38_spill] sm:$0xff] %v9383_v39  ;;  %v5321_v11 = vsel %vm8151_vm7, %v5316_v59, %v5320_v24  ;;  %v5861_v28 = vld [vmem:[#allocation2 + $0xac] sm:$0xf] }
 0x1a0   : > { %7462 = vmatmul.mubr.msk.bf16.vlgmr.msra.gmra.mxu0 %vm1225_vm5, %v10228_v33  ;;  %v9364_v13 = vadd.f32 %v9268_v62, %v10230_v27  ;;  %v9370_v33 = vrot.slane %v5356_v46, 5  ;;  %v9381_v62 = vsel %vm8107_vm13, %v6877_v53, %v5992_v15  ;;  %v5071_v46 = vld [vmem:[#allocation2 + $0xac] sm:$0xf]  ;;  %v9389_v63 = vsel %vm8107_vm13, %v5994_v16, %v5995_v7 }
 0x1a1   : > { %7465 = vmatprep.mubr.msk.bf16.mxu0 %vm1225_vm5, %v10229_v45  ;;  %v6878_v45 = vrot.slane %v5857_v32, 9  ;;  %v6001_v47 = vrot.slane %v5999_v41, 4  ;;  %v6002_v8 = vrot.slane %v5859_v23, 5  ;;  %v5335_v2 = vsel %vm8151_vm7, %v5330_v54, %v9327_v17  ;;  %v2124_v22 = vpop.f32.mrf.mxu1 }
 0x1a2   : > { %v5345_v15 = vsel %vm8151_vm7, %v5340_v10, %v5344_v3  ;;  %v5353_v53 = vor.u32 %v5352_v9, %v5349_v35  ;;  %v5366_v32 = vshll.u32 %v5069_v6, 16  ;;  %v5363_v27 = vor.u32 %v5362_v51, %v9370_v33  ;;  %v5860_v35 = vld [vmem:[#allocation2 + $0xa8] sm:$0xe] }
 0x1a3   : > { %v5371_v59 = vshrl.u32 %v5070_v0, 16  ;;  %v5374_v24 = vshll.u32 %v5070_v0, 16  ;;  %v5380_v39 = vshll.u32 %v5071_v46, 16  ;;  %v9399_v23 = vcombine.low %v5311_v14, %v5321_v11  ;;  %v10237_v14 = vld [vmem:[#allocation12_spill] sm:$0xff]  ;;  %v5073_v11 = vld [vmem:[#allocation2 + $0xb4] sm:$0xf] }
 0x1a4   : > { %v9405_v7 = vsel %vm8107_vm13, %v6878_v45, %v5999_v41  ;;  %v5384_v3 = vshrl.u32 %v5071_v46, 16  ;;  %v9413_v54 = vsel %vm8107_vm13, %v6001_v47, %v6002_v8  ;;  %v10236_v41 = vcombine.low %v9048_v48, %v9061_v58 }
 0x1a5   : > { %10234 = vst [vmem:[#allocation39_spill] sm:$0xff] %v9405_v7  ;;  %v9407_v16 = vpop.f32.mrf.mxu0  ;;  %10235 = vst [vmem:[#allocation8_spill] sm:$0xff] %v9413_v54  ;;  %v5373_v10 = vrot.slane %v5371_v59, 4  ;;  %v5376_v9 = vrot.slane %v5374_v24, 5  ;;  %v9415_v6 = vrot.slane %v5380_v39, 5  ;;  %v9421_v51 = vcombine.low %v5335_v2, %v5345_v15  ;;  %v10242_v54 = vld [vmem:[#allocation16_spill] sm:$0xff] }
 0x1a6   : > { %7436 = vmatmul.mubr.msk.bf16.gmra.mxu1 %vm1225_vm5, %v9222_v37  ;;  %v5072_v37 = vld [vmem:[#allocation2 + $0xb0] sm:$0x1]  ;;  %v9425_v45 = vadd.f32 %v9337_v57, %v10237_v14  ;;  %v6006_v0 = vrot.slane %v5861_v28, 5  ;;  %v5386_v46 = vrot.slane %v5384_v3, 4  ;;  %v10238_v39 = vcombine.low %v9098_v61, %v9102_v42  ;;  %v5074_v59 = vld [vmem:[#allocation2 + $0xb8] sm:$0xf] }
 0x1a7   : > { %7439 = vmatprep.mubr.msk.bf16.mxu1 %vm1225_vm5, %v9274_v40  ;;  %v5862_v40 = vld [vmem:[#allocation2 + $0xb0] sm:$0x1]  ;;  %v9427_v47 = vpop.f32.mrf.mxu0  ;;  %v5354_v48 = vrot.slane %v5353_v53, 4  ;;  %v5364_v58 = vrot.slane %v5363_v27, 4  ;;  %v5368_v8 = vrot.slane %v5366_v32, 5  ;;  %v5377_v2 = vor.u32 %v5376_v9, %v5373_v10  ;;  %v10239_v14 = vld [vmem:[#allocation13_spill] sm:$0xff] }
 0x1a8   : > { %7466 = vmatmul.mubr.msk.bf16.gmra.mxu0 %vm1225_vm5, %v10236_v41  ;;  %v7249_v15 = vpop.f32.mrf.mxu1  ;;  %v6879_v24 = vrot.slane %v5860_v35, 9  ;;  %v5387_v28 = vor.u32 %v5386_v46, %v9415_v6  ;;  %v5390_v3 = vshll.u32 %v5072_v37, 16  ;;  %v5864_v41 = vld [vmem:[#allocation2 + $0xb8] sm:$0xf]  ;;  %v9438_v17 = vadd.f32 %v9346_v21, %v10239_v14  ;;  %v10240_v61 = vld [vmem:[#allocation14_spill] sm:$0xff] }
 0x1a9   : > { %7469 = vmatprep.mubr.msk.bf16.mxu0 %vm1225_vm5, %v10238_v39  ;;  %v9441_v42 = vadd.f32 %v7246_v30, %v10240_v61  ;;  %v6009_v53 = vrot.slane %v5862_v40, 5  ;;  %v5395_v32 = vshrl.u32 %v5073_v11, 16  ;;  %v9445_v10 = vpop.f32.mrf.mxu0  ;;  %v6008_v9 = vrot.slane %v6006_v0, 4  ;;  %v5863_v30 = vld [vmem:[#allocation2 + $0xb4] sm:$0xe] }
 0x1aa   : > { %v9443_v27 = vpop.f32.mrf.mxu1  ;;  %10241 = vst [vmem:[#allocation9_spill] sm:$0xff] %v9445_v10  ;;  %v5398_v39 = vshll.u32 %v5073_v11, 16  ;;  %v5404_v35 = vshll.u32 %v5074_v59, 16  ;;  %v5408_v57 = vshrl.u32 %v5074_v59, 16  ;;  %v5359_v37 = vsel %vm8151_vm7, %v5354_v48, %v9370_v33  ;;  %v5865_v14 = vld [vmem:[#allocation2 + $0xbc] sm:$0x1] }
 0x1ab   : > { %v5369_v21 = vsel %vm8151_vm7, %v5364_v58, %v5368_v8  ;;  %v5378_v46 = vrot.slane %v5377_v2, 4  ;;  %v6013_v40 = vrot.slane %v5864_v41, 5  ;;  %v9455_v7 = vadd.f32 %v2124_v22, %v10242_v54  ;;  %v5075_v48 = vld [vmem:[#allocation2 + $0xbc] sm:$0x1]  ;;  %v5076_v10 = vld [vmem:[#allocation2 + $0xc0] sm:$0xf] }
 0x1ac   : > { %v7250_v61 = vpop.f32.mrf.mxu1  ;;  %v9459_v11 = vsel %vm8107_vm13, %v6879_v24, %v6006_v0  ;;  %v5388_v59 = vrot.slane %v5387_v28, 4  ;;  %v5392_v33 = vrot.slane %v5390_v3, 5  ;;  %v5397_v58 = vrot.slane %v5395_v32, 4  ;;  %v5077_v22 = vld [vmem:[#allocation2 + $0xc4] sm:$0xf] }
 0x1ad   : > { %v5400_v8 = vrot.slane %v5398_v39, 5  ;;  %v9463_v2 = vrot.slane %v5404_v35, 5  ;;  %v5410_v41 = vrot.slane %v5408_v57, 4  ;;  %v10244_v54 = vcombine.low %v9144_v19, %v9163_v1 }
 0x1ae   : > { %7440 = vmatmul.mubr.msk.bf16.gmra.mxu1 %vm1225_vm5, %v9329_v55  ;;  %v9465_v55 = vpop.f32.mrf.mxu0  ;;  %v9471_v0 = vcombine.low %v5359_v37, %v5369_v21  ;;  %v9475_v24 = vsel %vm8107_vm13, %v6008_v9, %v6009_v53  ;;  %v6016_v28 = vrot.slane %v5865_v14, 5  ;;  %v10246_v3 = vcombine.low %v9167_v25, %v9173_v26  ;;  %v2140_v32 = vpop.f32.mrf.mxu1  ;;  %v5078_v53 = vld [vmem:[#allocation2 + $0xc8] sm:$0x1]  ;;  %v5867_v14 = vld [vmem:[#allocation2 + $0xc4] sm:$0xf] }
 0x1af   : > { %7443 = vmatprep.mubr.msk.bf16.mxu1 %vm1225_vm5, %v9341_v20  ;;  %10243 = vst [vmem:[#allocation10_spill] sm:$0xff] %v9465_v55  ;;  %10245 = vst [vmem:[#allocation12_spill] sm:$0xff] %v9475_v24  ;;  %v6880_v20 = vrot.slane %v5863_v30, 9  ;;  %v5383_v57 = vsel %vm8151_vm7, %v5378_v46, %v9415_v6  ;;  %v6015_v19 = vrot.slane %v6013_v40, 4  ;;  %v5414_v1 = vshll.u32 %v5075_v48, 16  ;;  %v10247_v46 = vld [vmem:[#allocation18_spill] sm:$0xff] }
 0x1b0   : > { %7470 = vmatmul.mubr.msk.bf16.gmra.mxu0 %vm1225_vm5, %v10244_v54  ;;  %v5419_v39 = vshrl.u32 %v5076_v10, 16  ;;  %v5393_v35 = vsel %vm8151_vm7, %v5388_v59, %v5392_v33  ;;  %v5422_v9 = vshll.u32 %v5076_v10, 16  ;;  %v5428_v37 = vshll.u32 %v5077_v22, 16  ;;  %v5868_v25 = vld [vmem:[#allocation2 + $0xc8] sm:$0x1] }
 0x1b1   : > { %7473 = vmatprep.mubr.msk.bf16.mxu0 %vm1225_vm5, %v10246_v3  ;;  %v5432_v21 = vshrl.u32 %v5077_v22, 16  ;;  %v5401_v26 = vor.u32 %v5400_v8, %v5397_v58  ;;  %v5411_v30 = vor.u32 %v5410_v41, %v9463_v2  ;;  %v9492_v48 = vadd.f32 %v7249_v15, %v10247_v46  ;;  %v5866_v8 = vld [vmem:[#allocation2 + $0xc0] sm:$0xe] }
 0x1b2   : > { %v9489_v54 = vpop.f32.mrf.mxu0  ;;  %v5421_v6 = vrot.slane %v5419_v39, 4  ;;  %v5424_v3 = vrot.slane %v5422_v9, 5  ;;  %v9494_v55 = vrot.slane %v5428_v37, 5  ;;  %v6847_v10 = vcombine.low %v5383_v57, %v5393_v35  ;;  %v5079_v39 = vld [vmem:[#allocation2 + $0xcc] sm:$0xf] }
 0x1b3   : > { %v5434_v59 = vrot.slane %v5432_v21, 4  ;;  %v9498_v33 = vsel %vm8107_vm13, %v6880_v20, %v6013_v40  ;;  %v9502_v58 = vsel %vm8107_vm13, %v6015_v19, %v6016_v28  ;;  %v5438_v41 = vshll.u32 %v5078_v53, 16  ;;  %v5080_v20 = vld [vmem:[#allocation2 + $0xd0] sm:$0xf]  ;;  %v10250_v53 = vld [vmem:[#allocation20_spill] sm:$0xff]  ;;  %v10251_v21 = vld [vmem:[#allocation23_spill] sm:$0xff] }
 0x1b4   : > { %10248 = vst [vmem:[#allocation13_spill] sm:$0xff] %v9498_v33  ;;  %10249 = vst [vmem:[#allocation14_spill] sm:$0xff] %v9502_v58  ;;  %v9506_v15 = vpop.f32.mrf.mxu0  ;;  %v5416_v9 = vrot.slane %v5414_v1, 5  ;;  %v6020_v57 = vrot.slane %v5867_v14, 5  ;;  %v5425_v35 = vor.u32 %v5424_v3, %v5421_v6  ;;  %v5402_v28 = vrot.slane %v5401_v26, 4 }
 0x1b5   : > { %v9504_v22 = vpop.f32.mrf.mxu1  ;;  %v5435_v40 = vor.u32 %v5434_v59, %v9494_v55  ;;  %v5412_v19 = vrot.slane %v5411_v30, 4  ;;  %v9515_v37 = vadd.f32 %v9443_v27, %v10250_v53  ;;  %v9518_v46 = vadd.f32 %v7250_v61, %v10251_v21  ;;  %v5081_v59 = vld [vmem:[#allocation2 + $0xd4] sm:$0x1] }
 0x1b6   : > { %7444 = vmatmul.mubr.msk.bf16.gmra.mxu1 %vm1225_vm5, %v9399_v23  ;;  %v9520_v1 = vpop.f32.mrf.mxu0  ;;  %v10252_v14 = vcombine.low %v9243_v18, %v9253_v4  ;;  %v6881_v6 = vrot.slane %v5866_v8, 9  ;;  %v5443_v26 = vshrl.u32 %v5079_v39, 16  ;;  %v5446_v30 = vshll.u32 %v5079_v39, 16 }
 0x1b7   : > { %7447 = vmatprep.mubr.msk.bf16.mxu1 %vm1225_vm5, %v9421_v51  ;;  %v2153_v23 = vpop.f32.mrf.mxu1  ;;  %v5440_v51 = vrot.slane %v5438_v41, 5  ;;  %v10253_v27 = vcombine.low %v9293_v52, %v9297_v60  ;;  %v5426_v61 = vrot.slane %v5425_v35, 4  ;;  %v5436_v3 = vrot.slane %v5435_v40, 4  ;;  %v10254_v40 = vld [vmem:[#allocation28_spill] sm:$0xff] }
 0x1b8   : > { %7474 = vmatmul.mubr.msk.bf16.gmra.mxu0 %vm1225_vm5, %v10252_v14  ;;  %v5452_v53 = vshll.u32 %v5080_v20, 16  ;;  %v5456_v21 = vshrl.u32 %v5080_v20, 16  ;;  %v6022_v58 = vrot.slane %v6020_v57, 4  ;;  %v6023_v24 = vrot.slane %v5868_v25, 5  ;;  %v9537_v39 = vpop.f32.mrf.mxu0  ;;  %v9546_v14 = vld [vmem:[#allocation2 + $0xd0] sm:$0xf] }
 0x1b9   : > { %7477 = vmatprep.mubr.msk.bf16.mxu0 %vm1225_vm5, %v10253_v27  ;;  %v7254_v33 = vpop.f32.mrf.mxu1  ;;  %v5445_v18 = vrot.slane %v5443_v26, 4  ;;  %v5448_v4 = vrot.slane %v5446_v30, 5  ;;  %v5407_v8 = vsel %vm8151_vm7, %v5402_v28, %v9463_v2  ;;  %v5417_v41 = vsel %vm8151_vm7, %v5412_v19, %v5416_v9 }
 0x1ba   : > { %v9535_v52 = vrot.slane %v5452_v53, 5  ;;  %v5458_v60 = vrot.slane %v5456_v21, 4  ;;  %v9540_v20 = vadd.f32 %v2140_v32, %v10254_v40  ;;  %v9544_v25 = vsel %vm8107_vm13, %v6881_v6, %v6020_v57  ;;  %v10255_v32 = vld [vmem:[#allocation27_spill] sm:$0xff] }
 0x1bb   : > { %v2156_v35 = vpop.f32.mrf.mxu1  ;;  %v5449_v26 = vor.u32 %v5448_v4, %v5445_v18  ;;  %v5462_v2 = vshll.u32 %v5081_v59, 16  ;;  %v5431_v9 = vsel %vm8151_vm7, %v5426_v61, %v9494_v55  ;;  %v5441_v28 = vsel %vm8151_vm7, %v5436_v3, %v5440_v51  ;;  %v10256_v55 = vld [vmem:[#allocation29_spill] sm:$0xff]  ;;  %v10258_v18 = vld [vmem:[#allocation30_spill] sm:$0xff] }
 0x1bc   : > { %v5459_v19 = vor.u32 %v5458_v60, %v9535_v52  ;;  %v2771_v30 = vadd.f32 %v10255_v32, %v9009_v36  ;;  %v6848_v57 = vcombine.low %v5407_v8, %v5417_v41  ;;  %v9560_v6 = vsel %vm8107_vm13, %v6022_v58, %v6023_v24  ;;  %v10261_v60 = vld [vmem:[#allocation32_spill] sm:$0xff] }
 0x1bd   : > { %v7293_v27 = vpop.f32.mrf.mxu1  ;;  %v9562_v59 = vrot.slane %v5449_v26, 4  ;;  %v2769_v61 = vadd.f32 %v10256_v55, %v9037_v12  ;;  %v6027_v51 = vrot.slane %v9546_v14, 5  ;;  %v9570_v36 = vrot.slane %v5462_v2, 5  ;;  %v10262_v26 = vld [vmem:[#allocation34_spill] sm:$0xff] }
 0x1be   : > { %7448 = vmatmul.mubr.msk.bf16.gmra.mxu1 %vm1225_vm5, %v9471_v0  ;;  %v9568_v3 = vrot.slane %v5459_v19, 4  ;;  %v3193_v0 = vadd.f32 %v7293_v27, %v2771_v30  ;;  %v10257_v24 = vcombine.low %v9306_v43, %v9310_v29  ;;  %v6849_v58 = vcombine.low %v5431_v9, %v5441_v28  ;;  %v10263_v43 = vld [vmem:[#allocation36_spill] sm:$0xff]  ;;  %v10264_v28 = vld [vmem:[#allocation35_spill] sm:$0xff] }
 0x1bf   : > { %7451 = vmatprep.mubr.msk.bf16.mxu1 %vm1225_vm5, %v6847_v10  ;;  %v7327_v53 = vpop.f32.mrf.mxu0  ;;  %v3032_v21 = vpop.f32.mrf.mxu1  ;;  %v2230_v12 = vadd.f32 %v9504_v22, %v10258_v18  ;;  %v10259_v10 = vld [vmem:[#allocation31_spill] sm:$0xff]  ;;  %v10260_v41 = vcombine.low %v9381_v62, %v9389_v63  ;;  %v2228_v40 = vadd.f32 %v2153_v23, %v10261_v60  ;;  %v2231_v2 = vadd.f32 %v7254_v33, %v10262_v26  ;;  %v10265_v62 = vld [vmem:[#allocation40_spill] sm:$0xff]  ;;  %v10267_v23 = vld [vmem:[#allocation41_spill] sm:$0xff] }
 0x1c0   : > { %7478 = vmatmul.mubr.msk.bf16.gmra.mxu0 %vm1225_vm5, %v10257_v24  ;;  %v3191_v4 = vadd.f32 %v3032_v21, %v2769_v61  ;;  %v2772_v8 = vadd.f32 %v10259_v10, %v9044_v5  ;;  %v2229_v29 = vadd.f32 %v2156_v35, %v10263_v43  ;;  %v2770_v22 = vadd.f32 %v10264_v28, %v9052_v34  ;;  %v10266_v30 = vld [vmem:[#allocation48_spill] sm:$0xff]  ;;  %v10268_v34 = vld [vmem:[#allocation49_spill] sm:$0xff]  ;;  %v10269_v61 = vld [vmem:[#allocation42_spill] sm:$0xff] }
 0x1c1   : > { %7481 = vmatprep.mubr.msk.bf16.mxu0 %vm1225_vm5, %v10260_v41  ;;  %v3822_v19 = vpop.f32.mrf.mxu0  ;;  %v7294_v9 = vpop.f32.mrf.mxu1  ;;  %v5455_v5 = vsel %vm8151_vm7, %v9562_v59, %v9535_v52  ;;  %v2775_v63 = vadd.f32 %v10265_v62, %v9090_v38  ;;  %v2773_v27 = vadd.f32 %v10267_v23, %v10266_v30  ;;  %v5465_v33 = vsel %vm8151_vm7, %v9568_v3, %v9570_v36  ;;  %v10270_v24 = vld [vmem:[#allocation26_spill] sm:$0xff]  ;;  %v10272_v59 = vld [vmem:[#allocation11_spill] sm:$0xff]  ;;  %v10274_v41 = vld [vmem:[#allocation56_spill] sm:$0xff] }
 0x1c2   : > { %v3194_v32 = vadd.f32 %v7294_v9, %v2772_v8  ;;  %v2776_v21 = vadd.f32 %v10269_v61, %v10268_v34  ;;  %v10271_v18 = vld [vmem:[#allocation54_spill] sm:$0xff]  ;;  %v10273_v10 = vld [vmem:[#allocation55_spill] sm:$0xff]  ;;  %v9613_v60 = vadd.f32 %v10274_v41, %v9335_v50  ;;  %v9617_v3 = vadd.f32 %v10275_v31, %v9364_v13  ;;  %v10276_v36 = vld [vmem:[#allocation57_spill] sm:$0xff] }
 0x1c3   : > { %v7328_v35 = vpop.f32.mrf.mxu0  ;;  %v3035_v55 = vpop.f32.mrf.mxu1  ;;  %v9605_v52 = vadd.f32 %v10271_v18, %v10270_v24  ;;  %v9609_v38 = vadd.f32 %v10273_v10, %v10272_v59  ;;  %v9621_v26 = vadd.f32 %v10276_v36, %v9368_v49  ;;  %v10277_v28 = vld [vmem:[#allocation58_spill] sm:$0xff]  ;;  %v10279_v50 = vld [vmem:[#allocation7_spill] sm:$0xff]  ;;  %v10282_v24 = vld [vmem:[#allocation9_spill] sm:$0xff]  ;;  %v9662_v18 = vadd.f32 %v9489_v54, %v2230_v12 }
 0x1c4   : > { %v3192_v8 = vadd.f32 %v3035_v55, %v2770_v22  ;;  %v9625_v62 = vadd.f32 %v10277_v28, %v9377_v56  ;;  %v10278_v22 = vld [vmem:[#allocation37_spill] sm:$0xff]  ;;  %v9633_v23 = vadd.f32 %v10279_v50, %v9438_v17  ;;  %v10280_v13 = vld [vmem:[#allocation59_spill] sm:$0xff]  ;;  %v10281_v34 = vld [vmem:[#allocation38_spill] sm:$0xff]  ;;  %v9646_v56 = vadd.f32 %v9407_v16, %v9492_v48 }
 0x1c5   : > { %v3825_v43 = vpop.f32.mrf.mxu0  ;;  %v7297_v9 = vpop.f32.mrf.mxu1  ;;  %v9629_v30 = vadd.f32 %v10278_v22, %v9425_v45  ;;  %v9637_v55 = vadd.f32 %v10280_v13, %v9441_v42  ;;  %v9642_v61 = vadd.f32 %v10281_v34, %v9455_v7  ;;  %v9650_v45 = vadd.f32 %v9427_v47, %v9515_v37  ;;  %v10284_v47 = vld [vmem:[#allocation39_spill] sm:$0xff]  ;;  %v10285_v48 = vld [vmem:[#allocation8_spill] sm:$0xff]  ;;  %v10291_v22 = vld [vmem:[#allocation14_spill] sm:$0xff] }
 0x1c6   : > { %7452 = vmatmul.mubr.msk.bf16.gmra.mxu1 %vm1225_vm5, %v6848_v57  ;;  %v3197_v49 = vadd.f32 %v7297_v9, %v2775_v63  ;;  %v9655_v57 = vadd.f32 %v10282_v24, %v9518_v46  ;;  %v10283_v63 = vld [vmem:[#allocation10_spill] sm:$0xff]  ;;  %v9665_v16 = vadd.f32 %v9506_v15, %v2228_v40  ;;  %v10286_v37 = vcombine.low %v10284_v47, %v10285_v48  ;;  %v10287_v54 = vld [vmem:[#allocation12_spill] sm:$0xff]  ;;  %v10290_v31 = vld [vmem:[#allocation43_spill] sm:$0xff] }
 0x1c7   : > { %7455 = vmatprep.mubr.msk.bf16.mxu1 %vm1225_vm5, %v6849_v58  ;;  %v7331_v17 = vpop.f32.mrf.mxu0  ;;  %v3048_v42 = vpop.f32.mrf.mxu1  ;;  %v9659_v7 = vadd.f32 %v10283_v63, %v9540_v20  ;;  %v9672_v59 = vadd.f32 %v9520_v1, %v2231_v2  ;;  %v9675_v46 = vadd.f32 %v9537_v39, %v2229_v29  ;;  %v9677_v20 = vadd.f32 %v7327_v53, %v3193_v0  ;;  %v5869_v2 = vld [vmem:[#allocation2 + $0xcc] sm:$0xe]  ;;  %v5871_v39 = vld [vmem:[#allocation2 + $0xd4] sm:$0x1]  ;;  %v10289_v0 = vld [vmem:[#allocation24_spill] sm:$0xff] }
 0x1c8   : > { %7482 = vmatmul.mubr.msk.bf16.gmra.mxu0 %vm1225_vm5, %v10286_v37  ;;  %v3195_v58 = vadd.f32 %v3048_v42, %v2773_v27  ;;  %v10288_v12 = vcombine.low %v9459_v11, %v10287_v54  ;;  %v9683_v10 = vadd.f32 %v3822_v19, %v3191_v4  ;;  %v9685_v41 = vadd.f32 %v7328_v35, %v3194_v32  ;;  %v10292_v4 = vld [vmem:[#allocation13_spill] sm:$0xff]  ;;  %v10293_v35 = vld [vmem:[#allocation46_spill] sm:$0xff]  ;;  %v10296_v42 = vld [vmem:[#allocation52_spill] sm:$0xff] }
 0x1c9   : > { %v3838_v15 = vpop.f32.mrf.mxu0  ;;  %v7298_v40 = vpop.f32.mrf.mxu1  ;;  %v9687_v27 = vadd.f32 %v3825_v43, %v3192_v8  ;;  %v9689_v1 = vadd.f32 %v7331_v17, %v3197_v49  ;;  %v6850_v29 = vcombine.low %v5455_v5, %v5465_v33  ;;  %v2774_v36 = vadd.f32 %v10290_v31, %v10289_v0  ;;  %v10294_v8 = vld [vmem:[#allocation44_spill] sm:$0xff]  ;;  %v10295_v17 = vld [vmem:[#allocation17_spill] sm:$0xff]  ;;  %v10297_v47 = vld [vmem:[#allocation50_spill] sm:$0xff] }
 0x1ca   : > { %7485 = vmatprep.mubr.msk.bf16.mxu0 %vm1225_vm5, %v10288_v12  ;;  %v3198_v53 = vadd.f32 %v7298_v40, %v2776_v21  ;;  %v9693_v11 = vadd.f32 %v3838_v15, %v3195_v58  ;;  %v6897_v19 = vcombine.low %v10292_v4, %v10291_v22  ;;  %v2779_v43 = vadd.f32 %v10294_v8, %v10293_v35  ;;  %v10298_v48 = vld [vmem:[#allocation45_spill] sm:$0xff]  ;;  %v10299_v12 = vld [vmem:[#allocation15_spill] sm:$0xff] }
 0x1cb   : > { %v7332_v9 = vpop.f32.mrf.mxu0  ;;  %v3051_v28 = vpop.f32.mrf.mxu1  ;;  %v6898_v5 = vcombine.low %v9544_v25, %v9560_v6  ;;  %v6882_v33 = vrot.slane %v5869_v2, 9  ;;  %v6029_v21 = vrot.slane %v6027_v51, 4  ;;  %v6030_v13 = vrot.slane %v5871_v39, 5  ;;  %v10300_v15 = vld [vmem:[#allocation47_spill] sm:$0xff]  ;;  %v10303_v8 = vld [vmem:[#allocation53_spill] sm:$0xff] }
 0x1cc   : > { %v3196_v32 = vadd.f32 %v3051_v28, %v2774_v36  ;;  %v9699_v50 = vadd.f32 %v7332_v9, %v3198_v53  ;;  %v2209_v24 = vadd.f32 %v10296_v42, %v10295_v17  ;;  %v2777_v37 = vadd.f32 %v10298_v48, %v10297_v47  ;;  %v10301_v36 = vld [vmem:[#allocation51_spill] sm:$0xff] }
 0x1cd   : > { %v3841_v49 = vpop.f32.mrf.mxu0  ;;  %v7301_v34 = vpop.f32.mrf.mxu1  ;;  %v2780_v40 = vadd.f32 %v10300_v15, %v10299_v12  ;;  %v6028_v39 = vsel %vm8107_vm13, %v6882_v33, %v6027_v51  ;;  %v10302_v35 = vld [vmem:[#allocation19_spill] sm:$0xff]  ;;  %v10305_v33 = vld [vmem:[#allocation22_spill] sm:$0xff] }
 0x1ce   : > { %7456 = vmatmul.mubr.msk.bf16.gmra.mxu1 %vm1225_vm5, %v6850_v29  ;;  %v3201_v63 = vadd.f32 %v7301_v34, %v2779_v43  ;;  %v9710_v58 = vadd.f32 %v3841_v49, %v3196_v32  ;;  %v6031_v29 = vsel %vm8107_vm13, %v6029_v21, %v6030_v13  ;;  %v2778_v9 = vadd.f32 %v10301_v36, %v2209_v24 }
 0x1cf   : > { %v7335_v54 = vpop.f32.mrf.mxu0  ;;  %v3064_v25 = vpop.f32.mrf.mxu1  ;;  %v2783_v14 = vadd.f32 %v10303_v8, %v10302_v35  ;;  %v2213_v21 = vadd.f32 %v10305_v33, %v10304_v44 }
 0x1d0   : > { %7486 = vmatmul.mubr.msk.bf16.gmra.mxu0 %vm1225_vm5, %v6897_v19  ;;  %v3199_v6 = vadd.f32 %v3064_v25, %v2777_v37  ;;  %v9715_v2 = vadd.f32 %v7335_v54, %v3201_v63  ;;  %v6899_v19 = vcombine.low %v6028_v39, %v6031_v29  ;;  %v10306_v37 = vld [vmem:[#allocation21_spill] sm:$0xff] }
 0x1d1   : > { %7489 = vmatprep.mubr.msk.bf16.mxu0 %vm1225_vm5, %v6898_v5  ;;  %v3854_v53 = vpop.f32.mrf.mxu0  ;;  %v7302_v0 = vpop.f32.mrf.mxu1  ;;  %v2782_v54 = vadd.f32 %v10306_v37, %v2213_v21 }
 0x1d2   : > { %v3202_v31 = vadd.f32 %v7302_v0, %v2780_v40  ;;  %v9725_v28 = vadd.f32 %v3854_v53, %v3199_v6 }
 0x1d3   : > { %v7336_v22 = vpop.f32.mrf.mxu0  ;;  %v3067_v4 = vpop.f32.mrf.mxu1 }
 0x1d4   : > { %v3200_v32 = vadd.f32 %v3067_v4, %v2778_v9  ;;  %v9729_v43 = vadd.f32 %v7336_v22, %v3202_v31 }
 0x1d5   : > { %v3857_v51 = vpop.f32.mrf.mxu0  ;;  %v7305_v5 = vpop.f32.mrf.mxu1 }
 0x1d6   : > { %v3205_v13 = vadd.f32 %v7305_v5, %v2783_v14  ;;  %v9733_v49 = vadd.f32 %v3857_v51, %v3200_v32 }
 0x1d7   : > { %v7339_v34 = vpop.f32.mrf.mxu0  ;;  %v3080_v17 = vpop.f32.mrf.mxu1 }
 0x1d8   : > { %7490 = vmatmul.mubr.msk.bf16.gmra.mxu0 %vm1225_vm5, %v6899_v19  ;;  %v3203_v42 = vadd.f32 %v3080_v17, %v9605_v52  ;;  %v9737_v24 = vadd.f32 %v7339_v34, %v3205_v13 }
 0x1d9   : > { %v3870_v63 = vpop.f32.mrf.mxu0  ;;  %v7306_v47 = vpop.f32.mrf.mxu1 }
 0x1da   : > { %v3206_v48 = vadd.f32 %v7306_v47, %v9609_v38  ;;  %v9741_v25 = vadd.f32 %v3870_v63, %v3203_v42 }
 0x1db   : > { %v7340_v6 = vpop.f32.mrf.mxu0  ;;  %v3083_v12 = vpop.f32.mrf.mxu1 }
 0x1dc   : > { %v3204_v15 = vadd.f32 %v3083_v12, %v2782_v54  ;;  %v9743_v40 = vadd.f32 %v7340_v6, %v3206_v48 }
 0x1dd   : > { %v3873_v39 = vpop.f32.mrf.mxu0  ;;  %v7309_v29 = vpop.f32.mrf.mxu1 }
 0x1de   : > { %v3209_v53 = vadd.f32 %v7309_v29, %v9613_v60  ;;  %v9746_v52 = vadd.f32 %v3873_v39, %v3204_v15 }
 0x1df   : > { %v3096_v0 = vpop.f32.mrf.mxu1 }
 0x1e0   : > { %v3207_v31 = vadd.f32 %v3096_v0, %v9617_v3 }
 0x1e1   : > { %v7343_v36 = vpop.f32.mrf.mxu0  ;;  %v7310_v38 = vpop.f32.mrf.mxu1 }
 0x1e2   : > { %v3210_v9 = vadd.f32 %v7310_v38, %v9621_v26  ;;  %v9750_v22 = vadd.f32 %v7343_v36, %v3209_v53 }
 0x1e3   : > { %v3886_v4 = vpop.f32.mrf.mxu0  ;;  %v3099_v19 = vpop.f32.mrf.mxu1 }
 0x1e4   : > { %v3208_v32 = vadd.f32 %v3099_v19, %v9625_v62  ;;  %v9753_v35 = vadd.f32 %v3886_v4, %v3207_v31 }
 0x1e5   : > { %v7344_v8 = vpop.f32.mrf.mxu0  ;;  %v7313_v14 = vpop.f32.mrf.mxu1 }
 0x1e6   : > { %v3213_v60 = vadd.f32 %v7313_v14, %v9629_v30  ;;  %v9756_v51 = vadd.f32 %v7344_v8, %v3210_v9 }
 0x1e7   : > { %v3889_v5 = vpop.f32.mrf.mxu0  ;;  %v3112_v3 = vpop.f32.mrf.mxu1 }
 0x1e8   : > { %v3211_v44 = vadd.f32 %v3112_v3, %v9633_v23  ;;  %v9759_v33 = vadd.f32 %v3889_v5, %v3208_v32 }
 0x1e9   : > { %v7347_v26 = vpop.f32.mrf.mxu0  ;;  %v7314_v21 = vpop.f32.mrf.mxu1 }
 0x1ea   : > { %10307 = vst [vmem:[#allocation16_spill] sm:$0xff] %v9759_v33  ;;  %v3214_v13 = vadd.f32 %v7314_v21, %v9637_v55  ;;  %v9762_v34 = vadd.f32 %v7347_v26, %v3213_v60 }
 0x1eb   : > { %v3902_v62 = vpop.f32.mrf.mxu0  ;;  %v3115_v17 = vpop.f32.mrf.mxu1 }
 0x1ec   : > { %10308 = vst [vmem:[#allocation18_spill] sm:$0xff] %v9762_v34  ;;  %v3212_v42 = vadd.f32 %v3115_v17, %v9642_v61  ;;  %v9765_v63 = vadd.f32 %v3902_v62, %v3211_v44 }
 0x1ed   : > { %v7348_v30 = vpop.f32.mrf.mxu0  ;;  %v7317_v47 = vpop.f32.mrf.mxu1 }
 0x1ee   : > { %10309 = vst [vmem:[#allocation20_spill] sm:$0xff] %v9765_v63  ;;  %v3217_v48 = vadd.f32 %v7317_v47, %v9646_v56  ;;  %v9768_v37 = vadd.f32 %v7348_v30, %v3214_v13 }
 0x1ef   : > { %v3905_v23 = vpop.f32.mrf.mxu0  ;;  %v3128_v54 = vpop.f32.mrf.mxu1 }
 0x1f0   : > { %10310 = vst [vmem:[#allocation23_spill] sm:$0xff] %v9768_v37  ;;  %v3215_v6 = vadd.f32 %v3128_v54, %v9650_v45  ;;  %v9771_v12 = vadd.f32 %v3905_v23, %v3212_v42 }
 0x1f1   : > { %v7351_v55 = vpop.f32.mrf.mxu0  ;;  %v7318_v15 = vpop.f32.mrf.mxu1 }
 0x1f2   : > { %10311 = vst [vmem:[#allocation28_spill] sm:$0xff] %v9771_v12  ;;  %v3218_v39 = vadd.f32 %v7318_v15, %v9655_v57  ;;  %v9774_v29 = vadd.f32 %v7351_v55, %v3217_v48 }
 0x1f3   : > { %v3918_v61 = vpop.f32.mrf.mxu0  ;;  %v3131_v53 = vpop.f32.mrf.mxu1 }
 0x1f4   : > { %10312 = vst [vmem:[#allocation27_spill] sm:$0xff] %v9774_v29  ;;  %v3216_v0 = vadd.f32 %v3131_v53, %v9659_v7  ;;  %v9777_v31 = vadd.f32 %v3918_v61, %v3215_v6 }
 0x1f5   : > { %v7352_v56 = vpop.f32.mrf.mxu0 }
 0x1f6   : > { %10313 = vst [vmem:[#allocation29_spill] sm:$0xff] %v9777_v31  ;;  %v9779_v36 = vadd.f32 %v7352_v56, %v3218_v39 }
 0x1f7   : > { %v3921_v38 = vpop.f32.mrf.mxu0 }
 0x1f8   : > { %10314 = vst [vmem:[#allocation30_spill] sm:$0xff] %v9779_v36  ;;  %v9781_v9 = vadd.f32 %v3921_v38, %v3216_v0 }
 0x1fa   : > { %10315 = vst [vmem:[#allocation31_spill] sm:$0xff] %v9781_v9 }
 0x20d   : > { %v7321_v45 = vpop.f32.mrf.mxu1 }
 0x20e   : > { %v3221_v4 = vadd.f32 %v7321_v45, %v9662_v18 }
 0x20f   : > { %v3144_v19 = vpop.f32.mrf.mxu1 }
 0x210   : > { %v3219_v57 = vadd.f32 %v3144_v19, %v9665_v16 }
 0x211   : > { %v7322_v32 = vpop.f32.mrf.mxu1 }
 0x212   : > { %v3222_v8 = vadd.f32 %v7322_v32, %v9672_v59 }
 0x213   : > { %v3147_v14 = vpop.f32.mrf.mxu1 }
 0x214   : > { %v3220_v7 = vadd.f32 %v3147_v14, %v9675_v46 }
 0x216   : > { %v9787_v60 = vpop.f32.mrf.mxu1 }
 0x218   : > { %v7355_v5 = vpop.f32.mrf.mxu0  ;;  %v9789_v3 = vpop.f32.mrf.mxu1 }
 0x219   : > { %v9791_v44 = vadd.f32 %v7355_v5, %v3221_v4 }
 0x21a   : > { %v3934_v26 = vpop.f32.mrf.mxu0  ;;  %v9793_v21 = vpop.f32.mrf.mxu1 }
 0x21b   : > { %10316 = vst [vmem:[#allocation32_spill] sm:$0xff] %v9791_v44  ;;  %v9795_v18 = vadd.f32 %v3934_v26, %v3219_v57 }
 0x21c   : > { %v7356_v13 = vpop.f32.mrf.mxu0  ;;  %v9797_v16 = vpop.f32.mrf.mxu1 }
 0x21d   : > { %10317 = vst [vmem:[#allocation34_spill] sm:$0xff] %v9795_v18  ;;  %v9799_v62 = vadd.f32 %v7356_v13, %v3222_v8 }
 0x21e   : > { %v3937_v59 = vpop.f32.mrf.mxu0  ;;  %v9801_v17 = vpop.f32.mrf.mxu1 }
 0x21f   : > { %10318 = vst [vmem:[#allocation36_spill] sm:$0xff] %v9799_v62  ;;  %v9803_v46 = vadd.f32 %v3937_v59, %v3220_v7 }
 0x220   : > { %v9805_v42 = vpop.f32.mrf.mxu0  ;;  %v9807_v30 = vpop.f32.mrf.mxu1 }
 0x221   : > { %10319 = vst [vmem:[#allocation35_spill] sm:$0xff] %v9803_v46 }
 0x222   : > { %v9809_v47 = vpop.f32.mrf.mxu0  ;;  %v9811_v48 = vpop.f32.mrf.mxu1 }
 0x224   : > { %v9813_v23 = vpop.f32.mrf.mxu0  ;;  %v9815_v54 = vpop.f32.mrf.mxu1 }
 0x226   : > { %v9817_v6 = vpop.f32.mrf.mxu0  ;;  %v9819_v55 = vpop.f32.mrf.mxu1 }
 0x228   : > { %v9821_v15 = vpop.f32.mrf.mxu0  ;;  %v9823_v39 = vpop.f32.mrf.mxu1 }
 0x22a   : > { %v9825_v61 = vpop.f32.mrf.mxu0  ;;  %v9827_v53 = vpop.f32.mrf.mxu1 }
 0x22c   : > { %v9829_v0 = vpop.f32.mrf.mxu0  ;;  %v9831_v56 = vpop.f32.mrf.mxu1 }
 0x22e   : > { %v9833_v38 = vpop.f32.mrf.mxu0  ;;  %v9835_v45 = vpop.f32.mrf.mxu1 }
 0x230   : > { %v9837_v4 = vpop.f32.mrf.mxu0  ;;  %v9839_v19 = vpop.f32.mrf.mxu1 }
 0x232   : > { %v9841_v57 = vpop.f32.mrf.mxu0  ;;  %v9843_v32 = vpop.f32.mrf.mxu1 }
 0x234   : > { %v9845_v8 = vpop.f32.mrf.mxu0  ;;  %v9847_v14 = vpop.f32.mrf.mxu1 }
 0x236   : > { %v9849_v7 = vpop.f32.mrf.mxu0  ;;  %v9851_v5 = vpop.f32.mrf.mxu1 }
 0x238   : > { %v9853_v26 = vpop.f32.mrf.mxu0  ;;  %v9855_v13 = vpop.f32.mrf.mxu1 }
 0x23a   : > { %v9857_v59 = vpop.f32.mrf.mxu0  ;;  %v9859_v46 = vpop.f32.mrf.mxu1 }
 0x23b   : > { %10320 = vst [vmem:[#allocation40_spill] sm:$0xff] %v9859_v46 }
 0x23c   : > { %v9861_v62 = vpop.f32.mrf.mxu0  ;;  %v9863_v18 = vpop.f32.mrf.mxu1 }
 0x23d   : > { %10321 = vst [vmem:[#allocation48_spill] sm:$0xff] %v9863_v18 }
 0x23e   : > { %v9865_v44 = vpop.f32.mrf.mxu0  ;;  %v9867_v9 = vpop.f32.mrf.mxu1 }
 0x23f   : > { %10322 = vst [vmem:[#allocation41_spill] sm:$0xff] %v9867_v9 }
 0x240   : > { %v9869_v36 = vpop.f32.mrf.mxu0  ;;  %v9871_v31 = vpop.f32.mrf.mxu1 }
 0x241   : > { %10323 = vst [vmem:[#allocation49_spill] sm:$0xff] %v9869_v36  ;;  %10324 = vst [vmem:[#allocation42_spill] sm:$0xff] %v9871_v31 }
 0x242   : > { %v9873_v29 = vpop.f32.mrf.mxu0  ;;  %v9875_v12 = vpop.f32.mrf.mxu1 }
 0x243   : > { %10325 = vst [vmem:[#allocation26_spill] sm:$0xff] %v9873_v29  ;;  %10326 = vst [vmem:[#allocation54_spill] sm:$0xff] %v9875_v12 }
 0x244   : > { %v9877_v37 = vpop.f32.mrf.mxu0  ;;  %v9879_v63 = vpop.f32.mrf.mxu1 }
 0x245   : > { %10327 = vst [vmem:[#allocation11_spill] sm:$0xff] %v9877_v37  ;;  %10328 = vst [vmem:[#allocation55_spill] sm:$0xff] %v9879_v63 }
 0x246   : > { %v9881_v34 = vpop.f32.mrf.mxu0  ;;  %v9883_v33 = vpop.f32.mrf.mxu1 }
 0x247   : > { %10329 = vst [vmem:[#allocation56_spill] sm:$0xff] %v9881_v34  ;;  %10330 = vst [vmem:[#allocation33_spill] sm:$0xff] %v9883_v33 }
 0x248   : > { %v9885_v18 = vpop.f32.mrf.mxu0  ;;  %v9887_v46 = vpop.f32.mrf.mxu1 }
 0x249   : > { %10331 = vst [vmem:[#allocation57_spill] sm:$0xff] %v9885_v18  ;;  %10332 = vst [vmem:[#allocation58_spill] sm:$0xff] %v9887_v46 }
 0x24a   : > { %v9889_v9 = vpop.f32.mrf.mxu0  ;;  %v9891_v36 = vpop.f32.mrf.mxu1 }
 0x24b   : > { %10333 = vst [vmem:[#allocation37_spill] sm:$0xff] %v9889_v9  ;;  %10334 = vst [vmem:[#allocation7_spill] sm:$0xff] %v9891_v36 }
 0x24c   : > { %v9893_v31 = vpop.f32.mrf.mxu0  ;;  %v9895_v29 = vpop.f32.mrf.mxu1 }
 0x24d   : > { %10335 = vst [vmem:[#allocation59_spill] sm:$0xff] %v9893_v31  ;;  %10336 = vst [vmem:[#allocation38_spill] sm:$0xff] %v9895_v29 }
 0x24e   : > { %v9897_v12 = vpop.f32.mrf.mxu0  ;;  %v9899_v63 = vpop.f32.mrf.mxu1 }
 0x24f   : > { %10337 = vst [vmem:[#allocation9_spill] sm:$0xff] %v9897_v12  ;;  %10338 = vst [vmem:[#allocation10_spill] sm:$0xff] %v9899_v63  ;;  %v4549_v12 = vadd.f32 %v9787_v60, %v9677_v20  ;;  %v4548_v20 = vadd.f32 %v9797_v16, %v9687_v27 }
 0x250   : > { %v9901_v34 = vpop.f32.mrf.mxu0  ;;  %v9903_v33 = vpop.f32.mrf.mxu1 }
 0x251   : > { %10339 = vst [vmem:[#allocation39_spill] sm:$0xff] %v9901_v34  ;;  %10340 = vst [vmem:[#allocation8_spill] sm:$0xff] %v9903_v33  ;;  %v4547_v33 = vadd.f32 %v9789_v3, %v9683_v10 }
 0x252   : > { %v9905_v18 = vpop.f32.mrf.mxu0  ;;  %v9907_v46 = vpop.f32.mrf.mxu1 }
 0x253   : > { %10341 = vst [vmem:[#allocation12_spill] sm:$0xff] %v9905_v18  ;;  %10342 = vst [vmem:[#allocation24_spill] sm:$0xff] %v9907_v46  ;;  %v4970_v10 = vadd.f32 %v9809_v47, %v4547_v33  ;;  %v4554_v47 = vadd.f32 %v9811_v48, %v9699_v50 }
 0x254   : > { %v9909_v9 = vpop.f32.mrf.mxu0  ;;  %v9911_v36 = vpop.f32.mrf.mxu1 }
 0x255   : > { %10343 = vst [vmem:[#allocation43_spill] sm:$0xff] %v9909_v9  ;;  %10344 = vst [vmem:[#allocation14_spill] sm:$0xff] %v9911_v36  ;;  %v4550_v9 = vadd.f32 %v9793_v21, %v9685_v41  ;;  %v4972_v36 = vadd.f32 %v9805_v42, %v4549_v12 }
 0x256   : > { %v9913_v31 = vpop.f32.mrf.mxu0  ;;  %v7429_v29 = vpop.f32.mrf.mxu1 }
 0x257   : > { %10345 = vst [vmem:[#allocation13_spill] sm:$0xff] %v9913_v31  ;;  %v5762_v60 = vadd.f32 %v7429_v29, %v4972_v36  ;;  %v4973_v12 = vadd.f32 %v9813_v23, %v4550_v9  ;;  %v4971_v29 = vadd.f32 %v9817_v6, %v4548_v20  ;;  %v4557_v20 = vadd.f32 %v9819_v55, %v9715_v2 }
 0x258   : > { %v9917_v63 = vpop.f32.mrf.mxu0  ;;  %v5601_v34 = vpop.f32.mrf.mxu1  ;;  %v4558_v2 = vadd.f32 %v9827_v53, %v9729_v43  ;;  %v4561_v43 = vadd.f32 %v9835_v45, %v9737_v24  ;;  %v4562_v24 = vadd.f32 %v9843_v32, %v9743_v40  ;;  %v4565_v40 = vadd.f32 %v9851_v5, %v9750_v22  ;;  %v10349_v22 = vld [vmem:[#allocation40_spill] sm:$0xff] }
 0x259   : > { %10346 = vst [vmem:[#allocation46_spill] sm:$0xff] %v9917_v63  ;;  %v4553_v63 = vadd.f32 %v9801_v17, %v9689_v1  ;;  %v5760_v41 = vadd.f32 %v5601_v34, %v4970_v10  ;;  %v4566_v5 = vadd.f32 %v10349_v22, %v9756_v51  ;;  %v10355_v51 = vld [vmem:[#allocation41_spill] sm:$0xff]  ;;  %v10370_v22 = vld [vmem:[#allocation58_spill] sm:$0xff] }
 0x25a   : > { %v9921_v18 = vpop.f32.mrf.mxu0  ;;  %v7430_v46 = vpop.f32.mrf.mxu1 }
 0x25b   : > { %10347 = vst [vmem:[#allocation44_spill] sm:$0xff] %v9921_v18  ;;  %v5763_v16 = vadd.f32 %v7430_v46, %v4973_v12  ;;  %v4976_v9 = vadd.f32 %v9821_v15, %v4553_v63  ;;  %v4552_v46 = vadd.f32 %v9815_v54, %v9710_v58  ;;  %v4977_v15 = vadd.f32 %v9829_v0, %v4554_v47 }
 0x25c   : > { %v9927_v31 = vpop.f32.mrf.mxu0  ;;  %v5604_v37 = vpop.f32.mrf.mxu1  ;;  %v4555_v58 = vadd.f32 %v9823_v39, %v9725_v28  ;;  %v4980_v12 = vadd.f32 %v9837_v4, %v4557_v20  ;;  %v4556_v28 = vadd.f32 %v9831_v56, %v9733_v49  ;;  %v4559_v49 = vadd.f32 %v9839_v19, %v9741_v25 }
 0x25d   : > { %10348 = vst [vmem:[#allocation17_spill] sm:$0xff] %v9927_v31  ;;  %v4551_v31 = vadd.f32 %v9807_v30, %v9693_v11  ;;  %v5761_v34 = vadd.f32 %v5604_v37, %v4971_v29  ;;  %v4975_v54 = vadd.f32 %v9833_v38, %v4552_v46  ;;  %v4560_v25 = vadd.f32 %v9847_v14, %v9746_v52 }
 0x25e   : > { %v9934_v3 = vpop.f32.mrf.mxu0  ;;  %v7433_v18 = vpop.f32.mrf.mxu1  ;;  %v4563_v52 = vadd.f32 %v9855_v13, %v9753_v35  ;;  %v10352_v35 = vld [vmem:[#allocation48_spill] sm:$0xff] }
 0x25f   : > { %v5766_v23 = vadd.f32 %v7433_v18, %v4976_v9  ;;  %v4974_v50 = vadd.f32 %v9825_v61, %v4551_v31 }
 0x260   : > { %v7463_v21 = vpop.f32.mrf.mxu0  ;;  %v5617_v42 = vpop.f32.mrf.mxu1 }
 0x261   : > { %v6328_v27 = vadd.f32 %v7463_v21, %v5762_v60  ;;  %v5764_v63 = vadd.f32 %v5617_v42, %v4974_v50 }
 0x262   : > { %v6167_v36 = vpop.f32.mrf.mxu0  ;;  %v7434_v33 = vpop.f32.mrf.mxu1 }
 0x263   : > { %6424 = vst [vmem:[%s9944_s25 + $0x10] sm:$0xff] %v6328_v27  ;;  %v6326_v1 = vadd.f32 %v6167_v36, %v5760_v41  ;;  %v5767_v31 = vadd.f32 %v7434_v33, %v4977_v15  ;;  %v4978_v27 = vadd.f32 %v9841_v57, %v4555_v58  ;;  %v4981_v36 = vadd.f32 %v9845_v8, %v4558_v2 }
 0x264   : > { %v7464_v11 = vpop.f32.mrf.mxu0  ;;  %v5620_v17 = vpop.f32.mrf.mxu1 }
 0x265   : > { %6422 = vst [vmem:[%s9944_s25] sm:$0xff] %v6326_v1  ;;  %v6329_v30 = vadd.f32 %v7464_v11, %v5763_v16  ;;  %v5765_v0 = vadd.f32 %v5620_v17, %v4975_v54  ;;  %v4979_v1 = vadd.f32 %v9849_v7, %v4556_v28  ;;  %v4984_v11 = vadd.f32 %v9853_v26, %v4561_v43  ;;  %v10351_v54 = vld [vmem:[#allocation16_spill] sm:$0xff]  ;;  %v10358_v43 = vld [vmem:[#allocation42_spill] sm:$0xff] }
 0x266   : > { %v6170_v48 = vpop.f32.mrf.mxu0  ;;  %v7437_v6 = vpop.f32.mrf.mxu1  ;;  %v4564_v13 = vadd.f32 %v10352_v35, %v10351_v54  ;;  %v10372_v54 = vld [vmem:[#allocation30_spill] sm:$0xff]  ;;  %v10373_v35 = vld [vmem:[#allocation7_spill] sm:$0xff] }
 0x267   : > { %6425 = vst [vmem:[%s9944_s25 + $0x18] sm:$0xff] %v6329_v30  ;;  %v6327_v37 = vadd.f32 %v6170_v48, %v5761_v34  ;;  %v5770_v38 = vadd.f32 %v7437_v6, %v4980_v12  ;;  %v4982_v30 = vadd.f32 %v9857_v59, %v4559_v49  ;;  %v4985_v48 = vadd.f32 %v9861_v62, %v4562_v24  ;;  %v10354_v12 = vld [vmem:[#allocation18_spill] sm:$0xff] }
 0x268   : > { %v7467_v60 = vpop.f32.mrf.mxu0  ;;  %v5633_v10 = vpop.f32.mrf.mxu1 }
 0x269   : > { %6423 = vst [vmem:[%s9944_s25 + $0x8] sm:$0xff] %v6327_v37  ;;  %v6332_v18 = vadd.f32 %v7467_v60, %v5766_v23  ;;  %v5768_v4 = vadd.f32 %v5633_v10, %v4978_v27  ;;  %v4983_v37 = vadd.f32 %v9865_v44, %v4560_v25  ;;  %v10350_v10 = vld [vmem:[#allocation49_spill] sm:$0xff]  ;;  %v10364_v25 = vld [vmem:[#allocation55_spill] sm:$0xff] }
 0x26a   : > { %v6183_v61 = vpop.f32.mrf.mxu0  ;;  %v7438_v41 = vpop.f32.mrf.mxu1  ;;  %v4988_v58 = vadd.f32 %v10350_v10, %v4565_v40  ;;  %v10371_v10 = vld [vmem:[#allocation9_spill] sm:$0xff] }
 0x26b   : > { %6428 = vst [vmem:[%s9944_s25 + $0x30] sm:$0xff] %v6332_v18  ;;  %v6330_v55 = vadd.f32 %v6183_v61, %v5764_v63  ;;  %v5771_v57 = vadd.f32 %v7438_v41, %v4981_v36  ;;  %v10353_v41 = vld [vmem:[#allocation26_spill] sm:$0xff] }
 0x26c   : > { %v7468_v21 = vpop.f32.mrf.mxu0  ;;  %v5636_v42 = vpop.f32.mrf.mxu1  ;;  %v4986_v2 = vadd.f32 %v10353_v41, %v4563_v52  ;;  %v10374_v41 = vld [vmem:[#allocation39_spill] sm:$0xff] }
 0x26d   : > { %6426 = vst [vmem:[%s9944_s25 + $0x20] sm:$0xff] %v6330_v55  ;;  %v6333_v39 = vadd.f32 %v7468_v21, %v5767_v31  ;;  %v5769_v8 = vadd.f32 %v5636_v42, %v4979_v1  ;;  %v4569_v21 = vadd.f32 %v10355_v51, %v10354_v12  ;;  %v10361_v1 = vld [vmem:[#allocation54_spill] sm:$0xff]  ;;  %v10375_v12 = vld [vmem:[#allocation31_spill] sm:$0xff] }
 0x26e   : > { %v6186_v16 = vpop.f32.mrf.mxu0  ;;  %v7441_v29 = vpop.f32.mrf.mxu1  ;;  %v10376_v51 = vld [vmem:[#allocation38_spill] sm:$0xff] }
 0x26f   : > { %6429 = vst [vmem:[%s9944_s25 + $0x38] sm:$0xff] %v6333_v39  ;;  %v6331_v53 = vadd.f32 %v6186_v16, %v5765_v0  ;;  %v5774_v7 = vadd.f32 %v7441_v29, %v4984_v11  ;;  %v10356_v39 = vld [vmem:[#allocation11_spill] sm:$0xff]  ;;  %v10357_v29 = vld [vmem:[#allocation20_spill] sm:$0xff] }
 0x270   : > { %v7471_v33 = vpop.f32.mrf.mxu0  ;;  %v5649_v47 = vpop.f32.mrf.mxu1 }
 0x271   : > { %6427 = vst [vmem:[%s9944_s25 + $0x28] sm:$0xff] %v6331_v53  ;;  %v6336_v56 = vadd.f32 %v7471_v33, %v5770_v38  ;;  %v5772_v26 = vadd.f32 %v5649_v47, %v4982_v30  ;;  %v4989_v38 = vadd.f32 %v10356_v39, %v4566_v5  ;;  %v4567_v53 = vadd.f32 %v10358_v43, %v10357_v29  ;;  %v10359_v33 = vld [vmem:[#allocation56_spill] sm:$0xff]  ;;  %v10379_v43 = vld [vmem:[#allocation10_spill] sm:$0xff] }
 0x272   : > { %v6199_v34 = vpop.f32.mrf.mxu0  ;;  %v7442_v9 = vpop.f32.mrf.mxu1  ;;  %v4987_v47 = vadd.f32 %v10359_v33, %v4564_v13  ;;  %v4574_v13 = vadd.f32 %v10373_v35, %v10372_v54  ;;  %v10377_v39 = vld [vmem:[#allocation12_spill] sm:$0xff]  ;;  %v10380_v33 = vld [vmem:[#allocation43_spill] sm:$0xff] }
 0x273   : > { %6432 = vst [vmem:[%s9944_s25 + $0x50] sm:$0xff] %v6336_v56  ;;  %v6334_v45 = vadd.f32 %v6199_v34, %v5768_v4  ;;  %v5775_v59 = vadd.f32 %v7442_v9, %v4985_v48  ;;  %v10367_v48 = vld [vmem:[#allocation33_spill] sm:$0xff]  ;;  %v10378_v29 = vld [vmem:[#allocation32_spill] sm:$0xff] }
 0x274   : > { %v7472_v17 = vpop.f32.mrf.mxu0  ;;  %v5652_v46 = vpop.f32.mrf.mxu1 }
 0x275   : > { %6430 = vst [vmem:[%s9944_s25 + $0x40] sm:$0xff] %v6334_v45  ;;  %v6337_v19 = vadd.f32 %v7472_v17, %v5771_v57  ;;  %v5773_v62 = vadd.f32 %v5652_v46, %v4983_v37  ;;  %v10360_v57 = vld [vmem:[#allocation23_spill] sm:$0xff]  ;;  %v10362_v45 = vld [vmem:[#allocation57_spill] sm:$0xff]  ;;  %v10363_v46 = vld [vmem:[#allocation28_spill] sm:$0xff] }
 0x276   : > { %v6202_v23 = vpop.f32.mrf.mxu0  ;;  %v7445_v50 = vpop.f32.mrf.mxu1  ;;  %v4570_v34 = vadd.f32 %v10361_v1, %v10360_v57  ;;  %v10381_v57 = vld [vmem:[#allocation34_spill] sm:$0xff]  ;;  %v10382_v1 = vld [vmem:[#allocation8_spill] sm:$0xff] }
 0x277   : > { %6433 = vst [vmem:[%s9944_s25 + $0x58] sm:$0xff] %v6337_v19  ;;  %v6335_v32 = vadd.f32 %v6202_v23, %v5769_v8  ;;  %v5778_v44 = vadd.f32 %v7445_v50, %v4988_v58  ;;  %v4992_v8 = vadd.f32 %v10362_v45, %v4569_v21  ;;  %v4568_v19 = vadd.f32 %v10364_v25, %v10363_v46  ;;  %v10365_v23 = vld [vmem:[#allocation37_spill] sm:$0xff]  ;;  %v10385_v46 = vld [vmem:[#allocation24_spill] sm:$0xff] }
 0x278   : > { %v7475_v6 = vpop.f32.mrf.mxu0  ;;  %v5665_v20 = vpop.f32.mrf.mxu1  ;;  %v4990_v50 = vadd.f32 %v10365_v23, %v4567_v53  ;;  %v4572_v21 = vadd.f32 %v10376_v51, %v10375_v12  ;;  %v4577_v53 = vadd.f32 %v10379_v43, %v10378_v29  ;;  %v10383_v45 = vld [vmem:[#allocation13_spill] sm:$0xff] }
 0x279   : > { %6431 = vst [vmem:[%s9944_s25 + $0x48] sm:$0xff] %v6335_v32  ;;  %v6340_v14 = vadd.f32 %v7475_v6, %v5774_v7  ;;  %v5776_v28 = vadd.f32 %v5665_v20, %v4986_v2  ;;  %v4991_v58 = vadd.f32 %v10371_v10, %v4568_v19 }
 0x27a   : > { %v6215_v63 = vpop.f32.mrf.mxu0  ;;  %v7446_v15 = vpop.f32.mrf.mxu1 }
 0x27b   : > { %6436 = vst [vmem:[%s9944_s25 + $0x70] sm:$0xff] %v6340_v14  ;;  %v6338_v60 = vadd.f32 %v6215_v63, %v5772_v26  ;;  %v5779_v36 = vadd.f32 %v7446_v15, %v4989_v38  ;;  %v10366_v26 = vld [vmem:[#allocation27_spill] sm:$0xff]  ;;  %v10369_v15 = vld [vmem:[#allocation29_spill] sm:$0xff] }
 0x27c   : > { %v7476_v18 = vpop.f32.mrf.mxu0  ;;  %v5668_v31 = vpop.f32.mrf.mxu1  ;;  %v4573_v6 = vadd.f32 %v10367_v48, %v10366_v26  ;;  %v10368_v14 = vld [vmem:[#allocation59_spill] sm:$0xff]  ;;  %v4571_v5 = vadd.f32 %v10370_v22, %v10369_v15  ;;  %v10388_v26 = vld [vmem:[#allocation14_spill] sm:$0xff]  ;;  %v10390_v15 = vld [vmem:[#allocation17_spill] sm:$0xff] }
 0x27d   : > { %6434 = vst [vmem:[%s9944_s25 + $0x60] sm:$0xff] %v6338_v60  ;;  %v6341_v61 = vadd.f32 %v7476_v18, %v5775_v59  ;;  %v5777_v24 = vadd.f32 %v5668_v31, %v4987_v47  ;;  %v4993_v59 = vadd.f32 %v10368_v14, %v4570_v34  ;;  %v4997_v47 = vadd.f32 %v10380_v33, %v4574_v13 }
 0x27e   : > { %v6218_v55 = vpop.f32.mrf.mxu0  ;;  %v7449_v0 = vpop.f32.mrf.mxu1  ;;  %v4996_v2 = vadd.f32 %v10374_v41, %v4573_v6  ;;  %v4994_v38 = vadd.f32 %v10377_v39, %v4571_v5  ;;  %v4575_v34 = vadd.f32 %v10382_v1, %v10381_v57 }
 0x27f   : > { %6437 = vst [vmem:[%s9944_s25 + $0x78] sm:$0xff] %v6341_v61  ;;  %v6339_v42 = vadd.f32 %v6218_v55, %v5773_v62  ;;  %v5782_v30 = vadd.f32 %v7449_v0, %v4992_v8  ;;  %v4995_v8 = vadd.f32 %v10383_v45, %v4572_v21 }
 0x280   : > { %v7479_v27 = vpop.f32.mrf.mxu0  ;;  %v5681_v16 = vpop.f32.mrf.mxu1 }
 0x281   : > { %6435 = vst [vmem:[%s9944_s25 + $0x68] sm:$0xff] %v6339_v42  ;;  %v6344_v4 = vadd.f32 %v7479_v27, %v5778_v44  ;;  %v5780_v52 = vadd.f32 %v5681_v16, %v4990_v50 }
 0x282   : > { %v6231_v49 = vpop.f32.mrf.mxu0  ;;  %v7450_v56 = vpop.f32.mrf.mxu1 }
 0x283   : > { %6440 = vst [vmem:[%s9944_s25 + $0x90] sm:$0xff] %v6344_v4  ;;  %v6342_v9 = vadd.f32 %v6231_v49, %v5776_v28  ;;  %v5783_v62 = vadd.f32 %v7450_v56, %v4993_v59 }
 0x284   : > { %v7480_v11 = vpop.f32.mrf.mxu0  ;;  %v5684_v17 = vpop.f32.mrf.mxu1 }
 0x285   : > { %6438 = vst [vmem:[%s9944_s25 + $0x80] sm:$0xff] %v6342_v9  ;;  %v6345_v7 = vadd.f32 %v7480_v11, %v5779_v36  ;;  %v5781_v44 = vadd.f32 %v5684_v17, %v4991_v58  ;;  %v10384_v17 = vld [vmem:[#allocation36_spill] sm:$0xff] }
 0x286   : > { %v6234_v40 = vpop.f32.mrf.mxu0  ;;  %v7453_v32 = vpop.f32.mrf.mxu1  ;;  %v4578_v25 = vadd.f32 %v10385_v46, %v10384_v17 }
 0x287   : > { %6441 = vst [vmem:[%s9944_s25 + $0x98] sm:$0xff] %v6345_v7  ;;  %v6343_v20 = vadd.f32 %v6234_v40, %v5777_v24  ;;  %v5786_v28 = vadd.f32 %v7453_v32, %v4996_v2  ;;  %v10387_v32 = vld [vmem:[#allocation35_spill] sm:$0xff] }
 0x288   : > { %v7483_v37 = vpop.f32.mrf.mxu0  ;;  %v5697_v63 = vpop.f32.mrf.mxu1  ;;  %v4576_v48 = vadd.f32 %v10388_v26, %v10387_v32  ;;  %v5001_v22 = vadd.f32 %v10390_v15, %v4578_v25 }
 0x289   : > { %6439 = vst [vmem:[%s9944_s25 + $0x88] sm:$0xff] %v6343_v20  ;;  %v6348_v60 = vadd.f32 %v7483_v37, %v5782_v30  ;;  %v5784_v36 = vadd.f32 %v5697_v63, %v4994_v38  ;;  %v10386_v30 = vld [vmem:[#allocation46_spill] sm:$0xff] }
 0x28a   : > { %v6247_v18 = vpop.f32.mrf.mxu0  ;;  %v7454_v31 = vpop.f32.mrf.mxu1  ;;  %v5000_v23 = vadd.f32 %v10386_v30, %v4577_v53  ;;  %v4999_v58 = vadd.f32 %v9934_v3, %v4576_v48 }
 0x28b   : > { %6444 = vst [vmem:[%s9944_s25 + $0xb0] sm:$0xff] %v6348_v60  ;;  %v6346_v61 = vadd.f32 %v6247_v18, %v5780_v52  ;;  %v5787_v24 = vadd.f32 %v7454_v31, %v4997_v47  ;;  %v10389_v52 = vld [vmem:[#allocation44_spill] sm:$0xff] }
 0x28c   : > { %v7484_v55 = vpop.f32.mrf.mxu0  ;;  %v5700_v0 = vpop.f32.mrf.mxu1  ;;  %v4998_v14 = vadd.f32 %v10389_v52, %v4575_v34 }
 0x28d   : > { %6442 = vst [vmem:[%s9944_s25 + $0xa0] sm:$0xff] %v6346_v61  ;;  %v6349_v42 = vadd.f32 %v7484_v55, %v5783_v62  ;;  %v5785_v7 = vadd.f32 %v5700_v0, %v4995_v8 }
 0x28e   : > { %v6250_v27 = vpop.f32.mrf.mxu0  ;;  %v7457_v16 = vpop.f32.mrf.mxu1 }
 0x28f   : > { %6445 = vst [vmem:[%s9944_s25 + $0xb8] sm:$0xff] %v6349_v42  ;;  %v6347_v4 = vadd.f32 %v6250_v27, %v5781_v44  ;;  %v5790_v20 = vadd.f32 %v7457_v16, %v5000_v23 }
 0x290   : > { %v7487_v49 = vpop.f32.mrf.mxu0  ;;  %v5713_v56 = vpop.f32.mrf.mxu1 }
 0x291   : > { %6443 = vst [vmem:[%s9944_s25 + $0xa8] sm:$0xff] %v6347_v4  ;;  %v6352_v9 = vadd.f32 %v7487_v49, %v5786_v28  ;;  %v5788_v63 = vadd.f32 %v5713_v56, %v4998_v14 }
 0x292   : > { %v6263_v11 = vpop.f32.mrf.mxu0  ;;  %v7458_v40 = vpop.f32.mrf.mxu1 }
 0x293   : > { %6448 = vst [vmem:[%s9944_s25 + $0xd0] sm:$0xff] %v6352_v9  ;;  %v6350_v19 = vadd.f32 %v6263_v11, %v5784_v36  ;;  %v5791_v10 = vadd.f32 %v7458_v40, %v5001_v22 }
 0x294   : > { %v7488_v50 = vpop.f32.mrf.mxu0  ;;  %v5716_v60 = vpop.f32.mrf.mxu1 }
 0x295   : > { %6446 = vst [vmem:[%s9944_s25 + $0xc0] sm:$0xff] %v6350_v19  ;;  %v6353_v6 = vadd.f32 %v7488_v50, %v5787_v24  ;;  %v5789_v54 = vadd.f32 %v5716_v60, %v4999_v58 }
 0x296   : > { %v6266_v59 = vpop.f32.mrf.mxu0 }
 0x297   : > { %6449 = vst [vmem:[%s9944_s25 + $0xd8] sm:$0xff] %v6353_v6  ;;  %v6351_v37 = vadd.f32 %v6266_v59, %v5785_v7 }
 0x298   : > { %v7491_v5 = vpop.f32.mrf.mxu0 }
 0x299   : > { %6447 = vst [vmem:[%s9944_s25 + $0xc8] sm:$0xff] %v6351_v37  ;;  %v6356_v62 = vadd.f32 %v7491_v5, %v5790_v20 }
 0x29a   : > { %v6279_v18 = vpop.f32.mrf.mxu0 }
 0x29b   : > { %6452 = vst [vmem:[%s9944_s25 + $0xf0] sm:$0xff] %v6356_v62  ;;  %v6354_v31 = vadd.f32 %v6279_v18, %v5788_v63 }
 0x29c   : > { %v7492_v35 = vpop.f32.mrf.mxu0 }
 0x29d   : > { %6450 = vst [vmem:[%s9944_s25 + $0xe0] sm:$0xff] %v6354_v31  ;;  %v6357_v13 = vadd.f32 %v7492_v35, %v5791_v10 }
 0x29e   : > { %v6282_v61 = vpop.f32.mrf.mxu0 }
 0x29f   : > { %6453 = vst [vmem:[%s9944_s25 + $0xf8] sm:$0xff] %v6357_v13  ;;  %v6355_v3 = vadd.f32 %v6282_v61, %v5789_v54 }
 0x2a1   : > { %6451 = vst [vmem:[%s9944_s25 + $0xe8] sm:$0xff] %v6355_v3 }
 0x2a2   : > { %7615 = shalt.err (!%p7612_p3)
}
 0x2a3   : > { %s7616_s12 = scalar_lea.hbm %s10059_s7, 4096  ;;  %s7620_s16 = scalar_lea.hbm %s10112_s5, 8192 }
 0x2a4   : > { %p7617_p4 = scmp.ne.s32.totalorder %s10059_s7, %s7616_s12  ;;  %p7621_p9 = scmp.lt.s32.totalorder %s10059_s7, %s10112_s5 }
 0x2a5   : > { %p7622_p10 = scmp.lt.s32.totalorder %s7620_s16, %s7616_s12 }
 0x2a6   : > { %p7618_p7 = pnand %p7617_p4, %p7736_p5 }
 0x2a7   : > { %p7623_p11 = por %p7622_p10, %p7621_p9 }
 0x2a8   : > { %p7619_p8 = pneg %p7618_p7 }
 0x2aa   : > { %p7624_p12 = pnand %p7623_p11, %p7619_p8 }
 0x2ac   : > { %7627 = shalt.err (!%p7624_p12)
}
 0x2ad   : > { %s7666_s25 = smov 128   ;;  %s7667_s26 = smov 8  }
 0x2ae   : > { %7505 = dma.vmem_to_hbm [thread:$0]  (%p7736_p5), %s10061_s13, 4096, %s10059_s7, %s10067_s22, %s7666_s25, %s7666_s25, %s7667_s26  }
 0x2af PF: > { %p7511_p13 = scmp.ge.s32.totalorder %s7662_s21, 2  ;;  %s6483_s30 = sand.u32 1, %s7650_s18  }
 0x2b0   : > { %s6484_s6 = scalar_lea.sflag [#allocation5], %s6483_s30 }
 0x2b1   : > { %p7508_p0 = pnand %p7511_p13, %p7740_p6 }
 0x2b3   : > { %p7509_p1 = pneg %p7508_p0 }
 0x2b5   : > { %7645 = dma.done.wait (%p7509_p1), %s6484_s6, 4096  }
 0x2b6   : > { %7647 = vsyncadd (%p7509_p1), %s6484_s6, 4294963200  ;;  %p15_p2 = scmp.ge.s32.totalorder %s7723_s24, 4   ;;  %s10391_s18 = smov %s7654_s19 }
 0x2b7   : > { %s10392_s19 = smov %s7658_s20  ;;  %s10393_s20 = smov %s7734_s27 }
 0x2b8   : > { %s10394_s21 = smov %s7723_s24  ;;  %17 = sbr.rel (!%p15_p2) target bundleno = 3 (0x3), region = 86 }
 0x2bd   :  { %6489 = vsyncpa [#allocation5], 1 }
 0x2be   :  { %6491 = vsyncpa [#allocation5 + $0x1], 1 }

</bundles_post_ra>
